<compile_context>
chip_gen: v7x
topology: tpu7x:2x2x1
jax: 0.10.0
libtpu: 0.0.40
codegen_flags: <defaults>
</compile_context>

<pallas_src>
import functools

import jax
import jax.numpy as jnp
from jax.experimental import pallas as pl
from jax.experimental.pallas import tpu as pltpu

EPS = 1e-5


def _deconv_block_kernel(x_ref, a1_ref, b1_ref, w2k_ref, b2_ref, m1_ref, m2_ref,
                         o_ref, *,
                         C1, C2, T1, Tp, p_t, k_s1, k_s2, Wp, S_pad, n1, n2, n_pad2):
    # x_ref  : (1, C1*T, S_pad)            rows = (ci, t_in), lanes = padded H*W plane
    # a1_ref : (C1*T1, C1*T)               combined ConvTranspose3d weight (temporal deconv)
    # b1_ref : (C1, 1, 1)                  deconv bias
    # w2k_ref: (k_s1*k_s2, C2*T1, C1*T1)   per-tap kron(w2_tap, I_T1) spatial-conv weights
    # b2_ref : (C2, 1, 1)                  conv bias
    # m1_ref : (1, 1, S_pad)  1.0 on the stage-1 interior (H1 x W1) of the padded plane
    # m2_ref : (1, 1, S_pad)  1.0 on the valid conv-output region (H2 x W2)
    # o_ref  : (1, C2, Tp, S_pad)
    f32 = jnp.float32
    mask1 = m1_ref[...]                       # (1, 1, S_pad)
    mask2 = m2_ref[...]

    # ---- stage 1: ConvTranspose3d along time == one MXU matmul ----
    pre1 = jnp.dot(a1_ref[...], x_ref[0], preferred_element_type=f32)     # (C1*T1, S_pad)
    z1 = jnp.tanh(pre1.reshape(C1, T1, S_pad) + b1_ref[...])              # (C1, T1, S_pad)

    # vectorized masked InstanceNorm (single-pass statistics), ring/tail zeroed for stage 2
    zm1 = z1 * mask1
    s1 = jnp.sum(jnp.sum(zm1, axis=2, keepdims=True), axis=1, keepdims=True)        # (C1,1,1)
    q1 = jnp.sum(jnp.sum(zm1 * z1, axis=2, keepdims=True), axis=1, keepdims=True)   # (C1,1,1)
    inv_n1 = 1.0 / float(n1)
    mean1 = s1 * inv_n1
    var1 = q1 * inv_n1 - mean1 * mean1
    y1 = (z1 - mean1) * jax.lax.rsqrt(var1 + EPS) * mask1
    slab = y1.reshape(C1 * T1, S_pad)                                      # rows = (ci, t)

    # ---- stage 2: Conv3d (1,k_s1,k_s2) == k_s1*k_s2 fat block-diagonal MXU matmuls ----
    acc = jnp.dot(w2k_ref[0], slab, preferred_element_type=f32)            # (C2*T1, S_pad)
    for idx in range(1, k_s1 * k_s2):
        dh, dw = divmod(idx, k_s2)
        off = dh * Wp + dw
        shifted = pltpu.roll(slab, (-off) % S_pad, axis=1)                 # XLU lane rotate
        acc = acc + jnp.dot(w2k_ref[idx], shifted, preferred_element_type=f32)

    # ---- tanh + InstanceNorm3d over (Tp, H2*W2); temporal pad frames handled analytically ----
    z2 = jnp.tanh(acc.reshape(C2, T1, S_pad) + b2_ref[...])                # interior frames
    tb = jnp.tanh(b2_ref[...])                                             # (C2,1,1) pad-frame value
    zm2 = z2 * mask2
    s2 = jnp.sum(jnp.sum(zm2, axis=2, keepdims=True), axis=1, keepdims=True)
    q2 = jnp.sum(jnp.sum(zm2 * z2, axis=2, keepdims=True), axis=1, keepdims=True)
    s2 = s2 + float(n_pad2) * tb
    q2 = q2 + float(n_pad2) * tb * tb
    inv_n2 = 1.0 / float(n2)
    mean2 = s2 * inv_n2
    var2 = q2 * inv_n2 - mean2 * mean2
    inv_std2 = jax.lax.rsqrt(var2 + EPS)

    o_ref[0, :, p_t:p_t + T1, :] = (z2 - mean2) * inv_std2
    if p_t > 0:
        padv = jnp.broadcast_to((tb - mean2) * inv_std2, (C2, p_t, S_pad))
        o_ref[0, :, 0:p_t, :] = padv
        o_ref[0, :, p_t + T1:Tp, :] = padv


def deconv_block_3d(x, Wd, bd, Wc, bc, kernel_size, stride, padding):
    """Pallas implementation of DeConvBlock3D.forward. x: (N, C1, T, H, W) float32."""
    k_t, k_s1, k_s2 = kernel_size
    s_t, s_s1, s_s2 = stride
    p_t, p_s1, p_s2 = padding
    # TODO(synk): general spatial stride (s_s1, s_s2) > 1 not implemented (iBVPNet always uses 1).
    assert s_s1 == 1 and s_s2 == 1
    N, C1, T, H, W = x.shape
    C2 = Wc.shape[0]
    assert Wd.shape == (C1, C1, k_t, 1, 1)
    assert Wc.shape == (C2, C1, 1, k_s1, k_s2)
    assert 0 <= p_t <= k_t - 1

    # ConvTranspose3d output sizes (spatial kernel is 1 => spatial "padding" is a crop).
    T1 = (T - 1) * s_t - 2 * p_t + k_t
    H1, W1 = H - 2 * p_s1, W - 2 * p_s2
    assert T1 > 0 and H1 > 0 and W1 > 0
    # Conv3d (1,k_s1,k_s2), stride 1, padding (p_t,p_s1,p_s2).
    Tp, Hp, Wp = T1 + 2 * p_t, H1 + 2 * p_s1, W1 + 2 * p_s2
    H2, W2 = Hp - k_s1 + 1, Wp - k_s2 + 1
    assert H2 > 0 and W2 > 0

    S = Hp * Wp
    S_pad = ((S + 127) // 128) * 128                    # lane-dense flat spatial plane

    f32 = jnp.float32
    x = x.astype(f32)

    # Embed the (cropped) input into the zero-padded plane, flatten H*W, pad lanes to S_pad.
    xc = x[:, :, :, p_s1:H - p_s1, p_s2:W - p_s2]
    xp = jnp.pad(xc, ((0, 0), (0, 0), (0, 0), (p_s1, p_s1), (p_s2, p_s2)))
    xf = xp.reshape(N, C1 * T, S)
    if S_pad > S:
        xf = jnp.pad(xf, ((0, 0), (0, 0), (0, S_pad - S)))

    # Combined stage-1 weight: A[(co,t_out), (ci,t_in)] = Wd[ci,co,k], k = t_out + p_t - t_in*s_t.
    w1 = Wd[:, :, :, 0, 0].astype(f32)                                    # (ci, co, k)
    k_idx = jnp.arange(T1)[:, None] + p_t - jnp.arange(T)[None, :] * s_t  # (T1, T)
    valid = (k_idx >= 0) & (k_idx < k_t)
    k_cl = jnp.clip(k_idx, 0, k_t - 1)
    a4 = w1[:, :, k_cl] * valid[None, None, :, :].astype(f32)             # (ci, co, t_out, t_in)
    a1 = jnp.transpose(a4, (1, 2, 0, 3)).reshape(C1 * T1, C1 * T)

    # Stage-2 weights: per-tap block-diagonal kron(w2_tap, I_T1) -> (taps, C2*T1, C1*T1).
    w2taps = jnp.transpose(Wc[:, :, 0, :, :].astype(f32), (2, 3, 0, 1)).reshape(k_s1 * k_s2, C2, C1)
    eyeT = jnp.eye(T1, dtype=f32)
    w2k = jnp.einsum('koc,ij->koicj', w2taps, eyeT).reshape(k_s1 * k_s2, C2 * T1, C1 * T1)

    # Spatial masks on the flattened padded plane.
    s_idx = jnp.arange(S_pad)
    hh, ww = s_idx // Wp, s_idx % Wp
    in1 = (hh >= p_s1) & (hh < p_s1 + H1) & (ww >= p_s2) & (ww < p_s2 + W1) & (s_idx < S)
    in2 = (hh < H2) & (ww < W2) & (s_idx < S)
    mask1 = in1.astype(f32).reshape(1, 1, S_pad)
    mask2 = in2.astype(f32).reshape(1, 1, S_pad)

    b1 = bd.astype(f32).reshape(C1, 1, 1)
    b2 = bc.astype(f32).reshape(C2, 1, 1)

    kern = functools.partial(
        _deconv_block_kernel,
        C1=C1, C2=C2, T1=T1, Tp=Tp, p_t=p_t, k_s1=k_s1, k_s2=k_s2, Wp=Wp,
        S_pad=S_pad, n1=T1 * H1 * W1, n2=Tp * H2 * W2, n_pad2=2 * p_t * H2 * W2)

    out = pl.pallas_call(
        kern,
        out_shape=jax.ShapeDtypeStruct((N, C2, Tp, S_pad), f32),
        grid=(N,),
        in_specs=[
            pl.BlockSpec((1, C1 * T, S_pad), lambda n: (n, 0, 0)),
            pl.BlockSpec((C1 * T1, C1 * T), lambda n: (0, 0)),
            pl.BlockSpec((C1, 1, 1), lambda n: (0, 0, 0)),
            pl.BlockSpec((k_s1 * k_s2, C2 * T1, C1 * T1), lambda n: (0, 0, 0)),
            pl.BlockSpec((C2, 1, 1), lambda n: (0, 0, 0)),
            pl.BlockSpec((1, 1, S_pad), lambda n: (0, 0, 0)),
            pl.BlockSpec((1, 1, S_pad), lambda n: (0, 0, 0)),
        ],
        out_specs=pl.BlockSpec((1, C2, Tp, S_pad), lambda n: (n, 0, 0, 0)),
        compiler_params=pltpu.CompilerParams(dimension_semantics=("parallel",)),
    )(xf, a1, b1, w2k, b2, mask1, mask2)

    # Unflatten the lane-dense spatial plane and crop to the valid conv output.
    out = out[..., :S].reshape(N, C2, Tp, Hp, Wp)[:, :, :, :H2, :W2]
    return out


# ---------------- pure-JAX reference (mirrors the PyTorch module) ----------------
def _instance_norm(y):
    m = jnp.mean(y, axis=(2, 3, 4), keepdims=True)
    v = jnp.mean(jnp.square(y - m), axis=(2, 3, 4), keepdims=True)
    return (y - m) / jnp.sqrt(v + EPS)


def reference(x, Wd, bd, Wc, bc, kernel_size, stride, padding):
    k_t, k_s1, k_s2 = kernel_size
    s_t, s_s1, s_s2 = stride
    p_t, p_s1, p_s2 = padding
    N, C1, T, H, W = x.shape
    hi = jax.lax.Precision.HIGHEST
    # ConvTranspose3d == dilated conv with flipped / transposed kernel.
    W_eq = jnp.flip(Wd, axis=(2, 3, 4)).transpose(1, 0, 2, 3, 4)
    y = jax.lax.conv_general_dilated(
        x, W_eq, window_strides=(1, 1, 1),
        padding=[(k_t - 1 - p_t, k_t - 1 - p_t), (0, 0), (0, 0)],
        lhs_dilation=(s_t, 1, 1),
        dimension_numbers=("NCDHW", "OIDHW", "NCDHW"), precision=hi)
    y = y[:, :, :, p_s1:H - p_s1, p_s2:W - p_s2]        # spatial padding (kernel 1) == crop
    y = y + bd[None, :, None, None, None]
    y = _instance_norm(jnp.tanh(y))
    y = jax.lax.conv_general_dilated(
        y, Wc, window_strides=(1, s_s1, s_s2),
        padding=[(p_t, p_t), (p_s1, p_s1), (p_s2, p_s2)],
        dimension_numbers=("NCDHW", "OIDHW", "NCDHW"), precision=hi)
    y = y + bc[None, :, None, None, None]
    return _instance_norm(jnp.tanh(y))


if __name__ == "__main__":
    # DeConvBlock3D(in_channel=4, out_channel=6, kernel_size=[4,3,3], stride=[2,1,1], padding=[1,1,1])
    N, C1, C2 = 2, 4, 6
    T, H, W = 8, 16, 16
    kernel_size = (4, 3, 3)
    stride = (2, 1, 1)
    padding = (1, 1, 1)
    k_t, k_s1, k_s2 = kernel_size

    key = jax.random.PRNGKey(0)
    kx, kw1, kb1, kw2, kb2 = jax.random.split(key, 5)
    x = jax.random.normal(kx, (N, C1, T, H, W), jnp.float32)
    Wd = 0.25 * jax.random.normal(kw1, (C1, C1, k_t, 1, 1), jnp.float32)      # ConvTranspose3d (in,out,kT,1,1)
    bd = 0.10 * jax.random.normal(kb1, (C1,), jnp.float32)
    Wc = 0.25 * jax.random.normal(kw2, (C2, C1, 1, k_s1, k_s2), jnp.float32)  # Conv3d (out,in,1,kH,kW)
    bc = 0.10 * jax.random.normal(kb2, (C2,), jnp.float32)

    out = deconv_block_3d(x, Wd, bd, Wc, bc, kernel_size, stride, padding)
    out = jax.block_until_ready(out)

    ref = jax.block_until_ready(reference(x, Wd, bd, Wc, bc, kernel_size, stride, padding))
    err = float(jnp.max(jnp.abs(out - ref)))
    # Tolerance covers MXU f32 pass decomposition; implementation bugs show up at O(0.1 .. 1).
    if out.shape == ref.shape and err < 2e-2:
        print("KERNEL_OK")
    else:
        raise SystemExit(f"mismatch: shape {out.shape} vs {ref.shape}, max abs err {err}")
</pallas_src>

<mosaic_0001>
module attributes {stable_mosaic.version = 11 : i64} {
  func.func @_deconv_block_kernel(%arg0: i32, %arg1: memref<1x32x256xf32, #tpu.memory_space<vmem>>, %arg2: memref<64x32xf32, #tpu.memory_space<vmem>>, %arg3: memref<4x1x1xf32, #tpu.memory_space<vmem>>, %arg4: memref<9x96x64xf32, #tpu.memory_space<vmem>>, %arg5: memref<6x1x1xf32, #tpu.memory_space<vmem>>, %arg6: memref<1x1x256xf32, #tpu.memory_space<vmem>>, %arg7: memref<1x1x256xf32, #tpu.memory_space<vmem>>, %arg8: memref<1x6x18x256xf32, #tpu.memory_space<vmem>>) attributes {dimension_semantics = [#tpu.dimension_semantics<parallel>], iteration_bounds = array<i64: 2>, scalar_prefetch = 0 : i64, scratch_operands = 0 : i64, tpu.core_type = #tpu.core_type<tc>, window_params = [{transform_indices = @transform_0, window_bounds = array<i64: 1, 32, 256>}, {pipeline_mode = #tpu.pipeline_mode<synchronous>, transform_indices = @transform_1, window_bounds = array<i64: 64, 32>}, {pipeline_mode = #tpu.pipeline_mode<synchronous>, transform_indices = @transform_2, window_bounds = array<i64: 4, 1, 1>}, {pipeline_mode = #tpu.pipeline_mode<synchronous>, transform_indices = @transform_3, window_bounds = array<i64: 9, 96, 64>}, {pipeline_mode = #tpu.pipeline_mode<synchronous>, transform_indices = @transform_4, window_bounds = array<i64: 6, 1, 1>}, {pipeline_mode = #tpu.pipeline_mode<synchronous>, transform_indices = @transform_5, window_bounds = array<i64: 1, 1, 256>}, {pipeline_mode = #tpu.pipeline_mode<synchronous>, transform_indices = @transform_6, window_bounds = array<i64: 1, 1, 256>}, {transform_indices = @transform_7, window_bounds = array<i64: 1, 6, 18, 256>}]} {
    %c0 = arith.constant 0 : index
    %c0_0 = arith.constant 0 : index
    %c0_1 = arith.constant 0 : index
    %0 = vector.load %arg6[%c0, %c0_0, %c0_1] : memref<1x1x256xf32, #tpu.memory_space<vmem>>, vector<1x1x256xf32>
    %c0_2 = arith.constant 0 : index
    %c0_3 = arith.constant 0 : index
    %c0_4 = arith.constant 0 : index
    %1 = vector.load %arg7[%c0_2, %c0_3, %c0_4] : memref<1x1x256xf32, #tpu.memory_space<vmem>>, vector<1x1x256xf32>
    %c0_5 = arith.constant 0 : index
    %c0_6 = arith.constant 0 : index
    %2 = vector.load %arg2[%c0_5, %c0_6] : memref<64x32xf32, #tpu.memory_space<vmem>>, vector<64x32xf32>
    %c0_7 = arith.constant 0 : index
    %c0_8 = arith.constant 0 : index
    %c0_9 = arith.constant 0 : index
    %3 = vector.load %arg1[%c0_7, %c0_8, %c0_9] : memref<1x32x256xf32, #tpu.memory_space<vmem>>, vector<1x32x256xf32>
    %4 = vector.shape_cast %3 : vector<1x32x256xf32> to vector<32x256xf32>
    %cst = arith.constant dense<0.000000e+00> : vector<64x256xf32>
    %5 = tpu.matmul %2, %4, %cst {dimension_numbers = #tpu.dot_dimension_numbers<[1], [0], [0], [1], [0, 0, 1, 1], [], []>} : vector<64x32xf32>, vector<32x256xf32>, vector<64x256xf32> -> vector<64x256xf32>
    %6 = vector.shape_cast %5 : vector<64x256xf32> to vector<4x16x256xf32>
    %c0_10 = arith.constant 0 : index
    %c0_11 = arith.constant 0 : index
    %c0_12 = arith.constant 0 : index
    %7 = vector.load %arg3[%c0_10, %c0_11, %c0_12] : memref<4x1x1xf32, #tpu.memory_space<vmem>>, vector<4x1x1xf32>
    %8 = vector.broadcast %7 : vector<4x1x1xf32> to vector<4x16x256xf32>
    %9 = arith.addf %6, %8 : vector<4x16x256xf32>
    %10 = math.tanh %9 : vector<4x16x256xf32>
    %11 = vector.broadcast %0 : vector<1x1x256xf32> to vector<4x16x256xf32>
    %12 = arith.mulf %10, %11 : vector<4x16x256xf32>
    %cst_13 = arith.constant dense<0.000000e+00> : vector<4x16xf32>
    %13 = vector.multi_reduction <add>, %12, %cst_13 [2] : vector<4x16x256xf32> to vector<4x16xf32>
    %14 = vector.shape_cast %13 : vector<4x16xf32> to vector<4x16x1xf32>
    %cst_14 = arith.constant dense<0.000000e+00> : vector<4x1xf32>
    %15 = vector.multi_reduction <add>, %14, %cst_14 [1] : vector<4x16x1xf32> to vector<4x1xf32>
    %16 = vector.shape_cast %15 : vector<4x1xf32> to vector<4x1x1xf32>
    %17 = arith.mulf %12, %10 : vector<4x16x256xf32>
    %cst_15 = arith.constant dense<0.000000e+00> : vector<4x16xf32>
    %18 = vector.multi_reduction <add>, %17, %cst_15 [2] : vector<4x16x256xf32> to vector<4x16xf32>
    %19 = vector.shape_cast %18 : vector<4x16xf32> to vector<4x16x1xf32>
    %cst_16 = arith.constant dense<0.000000e+00> : vector<4x1xf32>
    %20 = vector.multi_reduction <add>, %19, %cst_16 [1] : vector<4x16x1xf32> to vector<4x1xf32>
    %21 = vector.shape_cast %20 : vector<4x1xf32> to vector<4x1x1xf32>
    %cst_17 = arith.constant 3.18877544E-4 : f32
    %22 = vector.broadcast %cst_17 : f32 to vector<4x1x1xf32>
    %23 = arith.mulf %16, %22 : vector<4x1x1xf32>
    %cst_18 = arith.constant 3.18877544E-4 : f32
    %24 = vector.broadcast %cst_18 : f32 to vector<4x1x1xf32>
    %25 = arith.mulf %21, %24 : vector<4x1x1xf32>
    %26 = arith.mulf %23, %23 : vector<4x1x1xf32>
    %27 = arith.subf %25, %26 : vector<4x1x1xf32>
    %28 = vector.broadcast %23 : vector<4x1x1xf32> to vector<4x16x256xf32>
    %29 = arith.subf %10, %28 : vector<4x16x256xf32>
    %cst_19 = arith.constant 9.99999974E-6 : f32
    %30 = vector.broadcast %cst_19 : f32 to vector<4x1x1xf32>
    %31 = arith.addf %27, %30 : vector<4x1x1xf32>
    %32 = math.rsqrt %31 : vector<4x1x1xf32>
    %33 = vector.broadcast %32 : vector<4x1x1xf32> to vector<4x16x256xf32>
    %34 = arith.mulf %29, %33 : vector<4x16x256xf32>
    %35 = vector.broadcast %0 : vector<1x1x256xf32> to vector<4x16x256xf32>
    %36 = arith.mulf %34, %35 : vector<4x16x256xf32>
    %37 = vector.shape_cast %36 : vector<4x16x256xf32> to vector<64x256xf32>
    %c0_20 = arith.constant 0 : index
    %c0_21 = arith.constant 0 : index
    %c0_22 = arith.constant 0 : index
    %38 = vector.load %arg4[%c0_20, %c0_21, %c0_22] : memref<9x96x64xf32, #tpu.memory_space<vmem>>, vector<1x96x64xf32>
    %39 = vector.shape_cast %38 : vector<1x96x64xf32> to vector<96x64xf32>
    %cst_23 = arith.constant dense<0.000000e+00> : vector<96x256xf32>
    %40 = tpu.matmul %39, %37, %cst_23 {dimension_numbers = #tpu.dot_dimension_numbers<[1], [0], [0], [1], [0, 0, 1, 1], [], []>} : vector<96x64xf32>, vector<64x256xf32>, vector<96x256xf32> -> vector<96x256xf32>
    %c255_i32 = arith.constant 255 : i32
    %41 = tpu.dynamic_rotate %37 by %c255_i32 dim 1 : vector<64x256xf32>, i32 -> vector<64x256xf32>
    %c1 = arith.constant 1 : index
    %c0_24 = arith.constant 0 : index
    %c0_25 = arith.constant 0 : index
    %42 = vector.load %arg4[%c1, %c0_24, %c0_25] : memref<9x96x64xf32, #tpu.memory_space<vmem>>, vector<1x96x64xf32>
    %43 = vector.shape_cast %42 : vector<1x96x64xf32> to vector<96x64xf32>
    %cst_26 = arith.constant dense<0.000000e+00> : vector<96x256xf32>
    %44 = tpu.matmul %43, %41, %cst_26 {dimension_numbers = #tpu.dot_dimension_numbers<[1], [0], [0], [1], [0, 0, 1, 1], [], []>} : vector<96x64xf32>, vector<64x256xf32>, vector<96x256xf32> -> vector<96x256xf32>
    %45 = arith.addf %40, %44 : vector<96x256xf32>
    %c254_i32 = arith.constant 254 : i32
    %46 = tpu.dynamic_rotate %37 by %c254_i32 dim 1 : vector<64x256xf32>, i32 -> vector<64x256xf32>
    %c2 = arith.constant 2 : index
    %c0_27 = arith.constant 0 : index
    %c0_28 = arith.constant 0 : index
    %47 = vector.load %arg4[%c2, %c0_27, %c0_28] : memref<9x96x64xf32, #tpu.memory_space<vmem>>, vector<1x96x64xf32>
    %48 = vector.shape_cast %47 : vector<1x96x64xf32> to vector<96x64xf32>
    %cst_29 = arith.constant dense<0.000000e+00> : vector<96x256xf32>
    %49 = tpu.matmul %48, %46, %cst_29 {dimension_numbers = #tpu.dot_dimension_numbers<[1], [0], [0], [1], [0, 0, 1, 1], [], []>} : vector<96x64xf32>, vector<64x256xf32>, vector<96x256xf32> -> vector<96x256xf32>
    %50 = arith.addf %45, %49 : vector<96x256xf32>
    %c240_i32 = arith.constant 240 : i32
    %51 = tpu.dynamic_rotate %37 by %c240_i32 dim 1 : vector<64x256xf32>, i32 -> vector<64x256xf32>
    %c3 = arith.constant 3 : index
    %c0_30 = arith.constant 0 : index
    %c0_31 = arith.constant 0 : index
    %52 = vector.load %arg4[%c3, %c0_30, %c0_31] : memref<9x96x64xf32, #tpu.memory_space<vmem>>, vector<1x96x64xf32>
    %53 = vector.shape_cast %52 : vector<1x96x64xf32> to vector<96x64xf32>
    %cst_32 = arith.constant dense<0.000000e+00> : vector<96x256xf32>
    %54 = tpu.matmul %53, %51, %cst_32 {dimension_numbers = #tpu.dot_dimension_numbers<[1], [0], [0], [1], [0, 0, 1, 1], [], []>} : vector<96x64xf32>, vector<64x256xf32>, vector<96x256xf32> -> vector<96x256xf32>
    %55 = arith.addf %50, %54 : vector<96x256xf32>
    %c239_i32 = arith.constant 239 : i32
    %56 = tpu.dynamic_rotate %37 by %c239_i32 dim 1 : vector<64x256xf32>, i32 -> vector<64x256xf32>
    %c4 = arith.constant 4 : index
    %c0_33 = arith.constant 0 : index
    %c0_34 = arith.constant 0 : index
    %57 = vector.load %arg4[%c4, %c0_33, %c0_34] : memref<9x96x64xf32, #tpu.memory_space<vmem>>, vector<1x96x64xf32>
    %58 = vector.shape_cast %57 : vector<1x96x64xf32> to vector<96x64xf32>
    %cst_35 = arith.constant dense<0.000000e+00> : vector<96x256xf32>
    %59 = tpu.matmul %58, %56, %cst_35 {dimension_numbers = #tpu.dot_dimension_numbers<[1], [0], [0], [1], [0, 0, 1, 1], [], []>} : vector<96x64xf32>, vector<64x256xf32>, vector<96x256xf32> -> vector<96x256xf32>
    %60 = arith.addf %55, %59 : vector<96x256xf32>
    %c238_i32 = arith.constant 238 : i32
    %61 = tpu.dynamic_rotate %37 by %c238_i32 dim 1 : vector<64x256xf32>, i32 -> vector<64x256xf32>
    %c5 = arith.constant 5 : index
    %c0_36 = arith.constant 0 : index
    %c0_37 = arith.constant 0 : index
    %62 = vector.load %arg4[%c5, %c0_36, %c0_37] : memref<9x96x64xf32, #tpu.memory_space<vmem>>, vector<1x96x64xf32>
    %63 = vector.shape_cast %62 : vector<1x96x64xf32> to vector<96x64xf32>
    %cst_38 = arith.constant dense<0.000000e+00> : vector<96x256xf32>
    %64 = tpu.matmul %63, %61, %cst_38 {dimension_numbers = #tpu.dot_dimension_numbers<[1], [0], [0], [1], [0, 0, 1, 1], [], []>} : vector<96x64xf32>, vector<64x256xf32>, vector<96x256xf32> -> vector<96x256xf32>
    %65 = arith.addf %60, %64 : vector<96x256xf32>
    %c224_i32 = arith.constant 224 : i32
    %66 = tpu.dynamic_rotate %37 by %c224_i32 dim 1 : vector<64x256xf32>, i32 -> vector<64x256xf32>
    %c6 = arith.constant 6 : index
    %c0_39 = arith.constant 0 : index
    %c0_40 = arith.constant 0 : index
    %67 = vector.load %arg4[%c6, %c0_39, %c0_40] : memref<9x96x64xf32, #tpu.memory_space<vmem>>, vector<1x96x64xf32>
    %68 = vector.shape_cast %67 : vector<1x96x64xf32> to vector<96x64xf32>
    %cst_41 = arith.constant dense<0.000000e+00> : vector<96x256xf32>
    %69 = tpu.matmul %68, %66, %cst_41 {dimension_numbers = #tpu.dot_dimension_numbers<[1], [0], [0], [1], [0, 0, 1, 1], [], []>} : vector<96x64xf32>, vector<64x256xf32>, vector<96x256xf32> -> vector<96x256xf32>
    %70 = arith.addf %65, %69 : vector<96x256xf32>
    %c223_i32 = arith.constant 223 : i32
    %71 = tpu.dynamic_rotate %37 by %c223_i32 dim 1 : vector<64x256xf32>, i32 -> vector<64x256xf32>
    %c7 = arith.constant 7 : index
    %c0_42 = arith.constant 0 : index
    %c0_43 = arith.constant 0 : index
    %72 = vector.load %arg4[%c7, %c0_42, %c0_43] : memref<9x96x64xf32, #tpu.memory_space<vmem>>, vector<1x96x64xf32>
    %73 = vector.shape_cast %72 : vector<1x96x64xf32> to vector<96x64xf32>
    %cst_44 = arith.constant dense<0.000000e+00> : vector<96x256xf32>
    %74 = tpu.matmul %73, %71, %cst_44 {dimension_numbers = #tpu.dot_dimension_numbers<[1], [0], [0], [1], [0, 0, 1, 1], [], []>} : vector<96x64xf32>, vector<64x256xf32>, vector<96x256xf32> -> vector<96x256xf32>
    %75 = arith.addf %70, %74 : vector<96x256xf32>
    %c222_i32 = arith.constant 222 : i32
    %76 = tpu.dynamic_rotate %37 by %c222_i32 dim 1 : vector<64x256xf32>, i32 -> vector<64x256xf32>
    %c8 = arith.constant 8 : index
    %c0_45 = arith.constant 0 : index
    %c0_46 = arith.constant 0 : index
    %77 = vector.load %arg4[%c8, %c0_45, %c0_46] : memref<9x96x64xf32, #tpu.memory_space<vmem>>, vector<1x96x64xf32>
    %78 = vector.shape_cast %77 : vector<1x96x64xf32> to vector<96x64xf32>
    %cst_47 = arith.constant dense<0.000000e+00> : vector<96x256xf32>
    %79 = tpu.matmul %78, %76, %cst_47 {dimension_numbers = #tpu.dot_dimension_numbers<[1], [0], [0], [1], [0, 0, 1, 1], [], []>} : vector<96x64xf32>, vector<64x256xf32>, vector<96x256xf32> -> vector<96x256xf32>
    %80 = arith.addf %75, %79 : vector<96x256xf32>
    %81 = vector.shape_cast %80 : vector<96x256xf32> to vector<6x16x256xf32>
    %c0_48 = arith.constant 0 : index
    %c0_49 = arith.constant 0 : index
    %c0_50 = arith.constant 0 : index
    %82 = vector.load %arg5[%c0_48, %c0_49, %c0_50] : memref<6x1x1xf32, #tpu.memory_space<vmem>>, vector<6x1x1xf32>
    %83 = vector.broadcast %82 : vector<6x1x1xf32> to vector<6x16x256xf32>
    %84 = arith.addf %81, %83 : vector<6x16x256xf32>
    %85 = math.tanh %84 : vector<6x16x256xf32>
    %c0_51 = arith.constant 0 : index
    %c0_52 = arith.constant 0 : index
    %c0_53 = arith.constant 0 : index
    %86 = vector.load %arg5[%c0_51, %c0_52, %c0_53] : memref<6x1x1xf32, #tpu.memory_space<vmem>>, vector<6x1x1xf32>
    %87 = math.tanh %86 : vector<6x1x1xf32>
    %88 = vector.broadcast %1 : vector<1x1x256xf32> to vector<6x16x256xf32>
    %89 = arith.mulf %85, %88 : vector<6x16x256xf32>
    %cst_54 = arith.constant dense<0.000000e+00> : vector<6x16xf32>
    %90 = vector.multi_reduction <add>, %89, %cst_54 [2] : vector<6x16x256xf32> to vector<6x16xf32>
    %91 = vector.shape_cast %90 : vector<6x16xf32> to vector<6x16x1xf32>
    %cst_55 = arith.constant dense<0.000000e+00> : vector<6x1xf32>
    %92 = vector.multi_reduction <add>, %91, %cst_55 [1] : vector<6x16x1xf32> to vector<6x1xf32>
    %93 = vector.shape_cast %92 : vector<6x1xf32> to vector<6x1x1xf32>
    %94 = arith.mulf %89, %85 : vector<6x16x256xf32>
    %cst_56 = arith.constant dense<0.000000e+00> : vector<6x16xf32>
    %95 = vector.multi_reduction <add>, %94, %cst_56 [2] : vector<6x16x256xf32> to vector<6x16xf32>
    %96 = vector.shape_cast %95 : vector<6x16xf32> to vector<6x16x1xf32>
    %cst_57 = arith.constant dense<0.000000e+00> : vector<6x1xf32>
    %97 = vector.multi_reduction <add>, %96, %cst_57 [1] : vector<6x16x1xf32> to vector<6x1xf32>
    %98 = vector.shape_cast %97 : vector<6x1xf32> to vector<6x1x1xf32>
    %cst_58 = arith.constant 3.920000e+02 : f32
    %99 = vector.broadcast %cst_58 : f32 to vector<6x1x1xf32>
    %100 = arith.mulf %99, %87 : vector<6x1x1xf32>
    %101 = arith.addf %93, %100 : vector<6x1x1xf32>
    %cst_59 = arith.constant 3.920000e+02 : f32
    %102 = vector.broadcast %cst_59 : f32 to vector<6x1x1xf32>
    %103 = arith.mulf %102, %87 : vector<6x1x1xf32>
    %104 = arith.mulf %103, %87 : vector<6x1x1xf32>
    %105 = arith.addf %98, %104 : vector<6x1x1xf32>
    %cst_60 = arith.constant 2.83446716E-4 : f32
    %106 = vector.broadcast %cst_60 : f32 to vector<6x1x1xf32>
    %107 = arith.mulf %101, %106 : vector<6x1x1xf32>
    %cst_61 = arith.constant 2.83446716E-4 : f32
    %108 = vector.broadcast %cst_61 : f32 to vector<6x1x1xf32>
    %109 = arith.mulf %105, %108 : vector<6x1x1xf32>
    %110 = arith.mulf %107, %107 : vector<6x1x1xf32>
    %111 = arith.subf %109, %110 : vector<6x1x1xf32>
    %cst_62 = arith.constant 9.99999974E-6 : f32
    %112 = vector.broadcast %cst_62 : f32 to vector<6x1x1xf32>
    %113 = arith.addf %111, %112 : vector<6x1x1xf32>
    %114 = math.rsqrt %113 : vector<6x1x1xf32>
    %115 = vector.broadcast %107 : vector<6x1x1xf32> to vector<6x16x256xf32>
    %116 = arith.subf %85, %115 : vector<6x16x256xf32>
    %117 = vector.broadcast %114 : vector<6x1x1xf32> to vector<6x16x256xf32>
    %118 = arith.mulf %116, %117 : vector<6x16x256xf32>
    %c0_63 = arith.constant 0 : index
    %c0_64 = arith.constant 0 : index
    %c1_65 = arith.constant 1 : index
    %c0_66 = arith.constant 0 : index
    %119 = vector.load %arg8[%c0_63, %c0_64, %c1_65, %c0_66] : memref<1x6x18x256xf32, #tpu.memory_space<vmem>>, vector<1x6x16x256xf32>
    %120 = vector.shape_cast %119 : vector<1x6x16x256xf32> to vector<6x16x256xf32>
    %121 = vector.shape_cast %118 : vector<6x16x256xf32> to vector<1x6x16x256xf32>
    tpu.vector_store %arg8[%c0_63, %c0_64, %c1_65, %c0_66], %121 {strides = array<i32>} : memref<1x6x18x256xf32, #tpu.memory_space<vmem>>, vector<1x6x16x256xf32>,
    %122 = arith.subf %87, %107 : vector<6x1x1xf32>
    %123 = arith.mulf %122, %114 : vector<6x1x1xf32>
    %124 = vector.shape_cast %123 : vector<6x1x1xf32> to vector<6x1x1xf32>
    %125 = vector.broadcast %124 : vector<6x1x1xf32> to vector<6x1x256xf32>
    %c0_67 = arith.constant 0 : index
    %c0_68 = arith.constant 0 : index
    %c0_69 = arith.constant 0 : index
    %c0_70 = arith.constant 0 : index
    %126 = vector.load %arg8[%c0_67, %c0_68, %c0_69, %c0_70] : memref<1x6x18x256xf32, #tpu.memory_space<vmem>>, vector<1x6x1x256xf32>
    %127 = vector.shape_cast %126 : vector<1x6x1x256xf32> to vector<6x1x256xf32>
    %128 = vector.shape_cast %125 : vector<6x1x256xf32> to vector<1x6x1x256xf32>
    tpu.vector_store %arg8[%c0_67, %c0_68, %c0_69, %c0_70], %128 {strides = array<i32>} : memref<1x6x18x256xf32, #tpu.memory_space<vmem>>, vector<1x6x1x256xf32>,
    %c0_71 = arith.constant 0 : index
    %c0_72 = arith.constant 0 : index
    %c17 = arith.constant 17 : index
    %c0_73 = arith.constant 0 : index
    %129 = vector.load %arg8[%c0_71, %c0_72, %c17, %c0_73] : memref<1x6x18x256xf32, #tpu.memory_space<vmem>>, vector<1x6x1x256xf32>
    %130 = vector.shape_cast %129 : vector<1x6x1x256xf32> to vector<6x1x256xf32>
    %131 = vector.shape_cast %125 : vector<6x1x256xf32> to vector<1x6x1x256xf32>
    tpu.vector_store %arg8[%c0_71, %c0_72, %c17, %c0_73], %131 {strides = array<i32>} : memref<1x6x18x256xf32, #tpu.memory_space<vmem>>, vector<1x6x1x256xf32>,
    return
  }
  func.func @transform_0(%arg0: i32) -> (i32, i32, i32) {
    %c0_i32 = arith.constant 0 : i32
    %c0_i32_0 = arith.constant 0 : i32
    %c0_i32_1 = arith.constant 0 : i32
    return %arg0, %c0_i32, %c0_i32_0 : i32, i32, i32
  }
  func.func @transform_1(%arg0: i32) -> (i32, i32) {
    %c0_i32 = arith.constant 0 : i32
    %c0_i32_0 = arith.constant 0 : i32
    %c0_i32_1 = arith.constant 0 : i32
    return %c0_i32, %c0_i32_0 : i32, i32
  }
  func.func @transform_2(%arg0: i32) -> (i32, i32, i32) {
    %c0_i32 = arith.constant 0 : i32
    %c0_i32_0 = arith.constant 0 : i32
    %c0_i32_1 = arith.constant 0 : i32
    %c0_i32_2 = arith.constant 0 : i32
    return %c0_i32, %c0_i32_0, %c0_i32_1 : i32, i32, i32
  }
  func.func @transform_3(%arg0: i32) -> (i32, i32, i32) {
    %c0_i32 = arith.constant 0 : i32
    %c0_i32_0 = arith.constant 0 : i32
    %c0_i32_1 = arith.constant 0 : i32
    %c0_i32_2 = arith.constant 0 : i32
    return %c0_i32, %c0_i32_0, %c0_i32_1 : i32, i32, i32
  }
  func.func @transform_4(%arg0: i32) -> (i32, i32, i32) {
    %c0_i32 = arith.constant 0 : i32
    %c0_i32_0 = arith.constant 0 : i32
    %c0_i32_1 = arith.constant 0 : i32
    %c0_i32_2 = arith.constant 0 : i32
    return %c0_i32, %c0_i32_0, %c0_i32_1 : i32, i32, i32
  }
  func.func @transform_5(%arg0: i32) -> (i32, i32, i32) {
    %c0_i32 = arith.constant 0 : i32
    %c0_i32_0 = arith.constant 0 : i32
    %c0_i32_1 = arith.constant 0 : i32
    %c0_i32_2 = arith.constant 0 : i32
    return %c0_i32, %c0_i32_0, %c0_i32_1 : i32, i32, i32
  }
  func.func @transform_6(%arg0: i32) -> (i32, i32, i32) {
    %c0_i32 = arith.constant 0 : i32
    %c0_i32_0 = arith.constant 0 : i32
    %c0_i32_1 = arith.constant 0 : i32
    %c0_i32_2 = arith.constant 0 : i32
    return %c0_i32, %c0_i32_0, %c0_i32_1 : i32, i32, i32
  }
  func.func @transform_7(%arg0: i32) -> (i32, i32, i32, i32) {
    %c0_i32 = arith.constant 0 : i32
    %c0_i32_0 = arith.constant 0 : i32
    %c0_i32_1 = arith.constant 0 : i32
    %c0_i32_2 = arith.constant 0 : i32
    return %arg0, %c0_i32, %c0_i32_0, %c0_i32_1 : i32, i32, i32, i32
  }
}

</mosaic_0001>

<bundles_post_ra>
// kernel: tpu_custom_call.1
= control target key start
LH: loop header
LB: loop body
LE: loop exit
PB: predicated region body
PF: predicated region fallthrough
CT: control target
= control target key end

     0   :  { %s4913_s24 = smov 0   ;;  %s6747_s0 = inlined_call_operand.vmem [shape: f32[2,32,256], index: 0, kind: input, shape index: {}]   ;;  %s6748_s1 = inlined_call_operand.vmem [shape: f32[64,32], index: 1, kind: input, shape index: {}]   ;;  %s6749_s2 = inlined_call_operand.vmem [shape: f32[4,1,1], index: 2, kind: input, shape index: {}]   ;;  %s6750_s3 = inlined_call_operand.vmem [shape: f32[9,96,64], index: 3, kind: input, shape index: {}]   ;;  %s6751_s4 = inlined_call_operand.vmem [shape: f32[6,1,1], index: 4, kind: input, shape index: {}]   ;;  %s6752_s5 = inlined_call_operand.vmem [shape: f32[1,1,256], index: 5, kind: input, shape index: {}]   ;;  %s6753_s6 = inlined_call_operand.vmem [shape: f32[1,1,256], index: 6, kind: input, shape index: {}]   ;;  %s6754_s7 = inlined_call_operand.vmem [shape: f32[2,6,18,256], index: 7, kind: output, shape index: {}]  }
   0x1 LB: > { %s3800_s25 = sadd.s32 4294967295, %s4861_s24   ;;  %p3804_p0 = scmp.ge.s32.totalorder %s4861_s24, 1  ;;  %s4861_s24 = sphi %s4913_s24, %s17_s24  }
   0x2   : > { %p237_p1 = scmp.lt.s32.totalorder %s4861_s24, 3 }
   0x4   : > { %p238_p2 = pnand %p3804_p0, %p237_p1 }
   0x5   : > { %p269_p3 = scmp.lt.s32.totalorder (!%p238_p2), %s3800_s25, 1  ;;  %v4863_v0 = vmov (!%p238_p2), 0.0   ;;  %v4864_v1 = vmov (!%p238_p2), 0   ;;  %v3816_v2 = vld [vmem:[%s6749_s2] ss:$0 sm:$0xff] (!%p238_p2)  ;;  %vm297_vm0 = vcmask (!%p238_p2), 261120   ;;  %v508_v26 = vlaneseq (!%p238_p2) }
   0x6   : > { %241 = sbr.rel (%p238_p2) target bundleno = 1398 (0x576), region = 48  ;;  %386 = vmatprep.mubr.f32.mxu0 (!%p238_p2), %v4863_v0  ;;  %1847 = vmatprep.mubr.f32.mxu1 (!%p238_p2), %v4863_v0  ;;  %v3818_v3 = vld [vmem:[%s6749_s2 + $0x2] ss:$0 sm:$0xff] (!%p238_p2)  ;;  %v3817_v4 = vld [vmem:[%s6749_s2 + $0x1] ss:$0 sm:$0xff] (!%p238_p2)  ;;  %v282_v19 = vld [vmem:[%s6748_s1 + $0x8] sm:$0xff] (!%p238_p2) }
   0x7   : > { %4409 = vset.pattern.permute.xlu0 (!%p238_p2), %v4864_v1  ;;  %4410 = vset.pattern.permute.xlu1 (!%p238_p2), %v4864_v1  ;;  %v3819_v5 = vld [vmem:[%s6749_s2 + $0x3] ss:$0 sm:$0xff] (!%p238_p2)  ;;  %v283_v20 = vld [vmem:[%s6748_s1 + $0x10] sm:$0xff] (!%p238_p2)  ;;  %v284_v21 = vld [vmem:[%s6748_s1 + $0x18] sm:$0xff] (!%p238_p2)  ;;  %v4982_v32 = vshrl.u32 (!%p238_p2), %v508_v26, 7  ;;  %s4866_s13 = smov (!%p238_p2), 127  }
   0x8   : > { %460 = vperm.xlu0 (!%p238_p2), %4409, %v3816_v2   ;;  %468 = vperm.xlu1 (!%p238_p2), %4410, %v3818_v3   ;;  %v281_v18 = vld [vmem:[%s6748_s1] sm:$0xff] (!%p238_p2)  ;;  %v286_v23 = vld [vmem:[%s6748_s1 + $0x28] sm:$0xff] (!%p238_p2)  ;;  %v287_v24 = vld [vmem:[%s6748_s1 + $0x30] sm:$0xff] (!%p238_p2)  ;;  %s4867_s14 = smov (!%p238_p2), 110   ;;  %s4868_s15 = smov (!%p238_p2), 96   ;;  %vm802_vm3 = vcmask (!%p238_p2), 523264  }
   0x9   : > { %v285_v22 = vld [vmem:[%s6748_s1 + $0x20] sm:$0xff] (!%p238_p2)  ;;  %v288_v25 = vld [vmem:[%s6748_s1 + $0x38] sm:$0xff] (!%p238_p2)  ;;  %v4985_v37 = vsub.s32 (!%p238_p2), 0, %v4982_v32  ;;  %v514_v39 = vsub.s32 (!%p238_p2), 1, %v4982_v32  ;;  %s4869_s16 = smov (!%p238_p2), 126   ;;  %s4870_s17 = smov (!%p238_p2), 95  }
   0xa   : > { %v279_v38 = vld [vmem:[%s6752_s5] sm:$0x3] (!%p238_p2)  ;;  %s4871_s18 = smov (!%p238_p2), 112   ;;  %s4872_s19 = smov (!%p238_p2), 94   ;;  %vm3531_vm10 = vcmask (!%p238_p2), 1040384   ;;  %vm6613_vm11 = vcmp.lt.s32.totalorder (!%p238_p2), %v508_v26, 256 }
   0xb   : > { %v4992_v45 = vrot.slane (!%p238_p2), %v279_v38, %v4985_v37  ;;  %v4996_v46 = vrot.slane (!%p238_p2), %v279_v38, %v514_v39 }
   0xc   : > { %464 = vperm.xlu0 (!%p238_p2), %4409, %v3817_v4   ;;  %472 = vperm.xlu1 (!%p238_p2), %4410, %v3819_v5  }
   0xd   : > { %s6758_s25 = smov (!%p269_p3, %s3800_s25), 1 }
   0xe   : > { %s4037_s30 = sshll.u32 %s6758_s25, 6  ;;  %s4390_s10 = smul.u32 288, %s6758_s25 }
   0xf   : > { %s273_s12 = scalar_lea.vmem %s6747_s0, %s4037_s30 }
  0x10   : > { %v290_v6 = vld [vmem:[%s273_s12 + $0x8] sm:$0xff]  ;;  %v292_v7 = vld [vmem:[%s273_s12 + $0x18] sm:$0xff]  ;;  %v289_v8 = vld [vmem:[%s273_s12] sm:$0xff] }
  0x11   : > { %v4038_v9 = vpack.c.bf16 %v292_v7, %v290_v6  ;;  %v291_v10 = vld [vmem:[%s273_s12 + $0x10] sm:$0xff]  ;;  %v294_v11 = vld [vmem:[%s273_s12 + $0x28] sm:$0xff]  ;;  %v296_v12 = vld [vmem:[%s273_s12 + $0x38] sm:$0xff] }
  0x12   : > { %v4040_v13 = vpack.c.bf16 %v291_v10, %v289_v8  ;;  %v4042_v14 = vpack.c.bf16 %v296_v12, %v294_v11  ;;  %v293_v15 = vld [vmem:[%s273_s12 + $0x20] sm:$0xff]  ;;  %v295_v16 = vld [vmem:[%s273_s12 + $0x30] sm:$0xff]  ;;  %s4865_s12 = smov 111  }
  0x13   : > { %4039 = vmatprep.subr.bf16.mxu0 %v4038_v9  ;;  %v4044_v17 = vpack.c.bf16 %v295_v16, %v293_v15 }
  0x14   : > { %4041 = vmatpush1.bf16.msra.mxu0 %v4040_v13 }
  0x15   : > { %4043 = vmatprep.subr.bf16.mxu0 %v4042_v14 }
  0x18   : > { %4045 = vmatpush1.bf16.msra.mxu0 %v4044_v17 }
  0x1b   : > { %3808 = vmatmul.mubr.msk.f32.vlgmr.msra.gmra.mrb[0].mxu0 %vm297_vm0, %v281_v18 }
  0x1c   : > { %392 = vmatprep.mubr.f32.mxu0 %v4863_v0 }
  0x1f   : > { %3809 = vmatmul.mubr.msk.f32.gmra.mrb[2].mxu0 %vm297_vm0, %v282_v19 }
  0x20   : > { %398 = vmatprep.mubr.f32.mxu0 %v4863_v0 }
  0x23   : > { %3810 = vmatmul.mubr.msk.f32.gmra.mrb[4].mxu0 %vm297_vm0, %v283_v20 }
  0x24   : > { %404 = vmatprep.mubr.f32.mxu0 %v4863_v0 }
  0x27   : > { %3811 = vmatmul.mubr.msk.f32.gmra.mrb[6].mxu0 %vm297_vm0, %v284_v21 }
  0x28   : > { %410 = vmatprep.mubr.f32.mxu0 %v4863_v0 }
  0x2b   : > { %3812 = vmatmul.mubr.msk.f32.gmra.mrb[8].mxu0 %vm297_vm0, %v285_v22 }
  0x2c   : > { %416 = vmatprep.mubr.f32.mxu0 %v4863_v0 }
  0x2f   : > { %3813 = vmatmul.mubr.msk.f32.gmra.mrb[10].mxu0 %vm297_vm0, %v286_v23 }
  0x30   : > { %422 = vmatprep.mubr.f32.mxu0 %v4863_v0 }
  0x33   : > { %3814 = vmatmul.mubr.msk.f32.gmra.mrb[12].mxu0 %vm297_vm0, %v287_v24 }
  0x34   : > { %428 = vmatprep.mubr.f32.mxu0 %v4863_v0 }
  0x37   : > { %3815 = vmatmul.mubr.msk.f32.gmra.mrb[14].mxu0 %vm297_vm0, %v288_v25 }
  0x38   : > { %903 = vmatprep.mubr.f32.mxu0 %v4863_v0 }
  0x87   : > { %v461_v27 = vpop.permute.xlu0 %460  ;;  %v469_v53 = vpop.permute.xlu1 %468 }
  0x8b   : > { %v465_v40 = vpop.permute.xlu0 %464  ;;  %v473_v16 = vpop.permute.xlu1 %472 }
  0xee   : > { %v388_v28 = vpop.f32.mrb[0].mxu0 }
  0xef   : > { %v475_v29 = vadd.f32 %v461_v27, %v388_v28  ;;  %v390_v30 = vpop.f32.mrb[1].mxu0 }
  0xf0   : > { %v476_v31 = vadd.f32 %v461_v27, %v390_v30 }
  0xf1   : > { %4731 = vtanh.f32 %v475_v29 }
  0xf2   : > { %4733 = vtanh.f32 %v476_v31  ;;  %v394_v33 = vpop.f32.mrb[2].mxu0 }
  0xf3   : > { %v477_v34 = vadd.f32 %v461_v27, %v394_v33  ;;  %v396_v35 = vpop.f32.mrb[3].mxu0 }
  0xf4   : > { %v478_v36 = vadd.f32 %v461_v27, %v396_v35 }
  0xf5   : > { %4735 = vtanh.f32 %v477_v34 }
  0xf6   : > { %4737 = vtanh.f32 %v478_v36  ;;  %v400_v41 = vpop.f32.mrb[4].mxu0 }
  0xf7   : > { %v479_v42 = vadd.f32 %v465_v40, %v400_v41  ;;  %v402_v43 = vpop.f32.mrb[5].mxu0 }
  0xf8   : > { %v480_v44 = vadd.f32 %v465_v40, %v402_v43 }
  0xf9   : > { %4739 = vtanh.f32 %v479_v42 }
  0xfa   : > { %4741 = vtanh.f32 %v480_v44  ;;  %v406_v47 = vpop.f32.mrb[6].mxu0 }
  0xfb   : > { %v4998_v48 = vpop.eup %4731  ;;  %v481_v49 = vadd.f32 %v465_v40, %v406_v47  ;;  %v408_v50 = vpop.f32.mrb[7].mxu0 }
  0xfc   : > { %v5000_v51 = vpop.eup %4733  ;;  %v482_v52 = vadd.f32 %v465_v40, %v408_v50  ;;  %v518_v54 = vmul.f32 %v4998_v48, %v4992_v45 }
  0xfd   : > { %4743 = vtanh.f32 %v481_v49  ;;  %v519_v55 = vmul.f32 %v5000_v51, %v4996_v46 }
  0xfe   : > { %4745 = vtanh.f32 %v482_v52  ;;  %v412_v56 = vpop.f32.mrb[8].mxu0  ;;  %v586_v57 = vmul.f32 %v4998_v48, %v518_v54 }
  0xff   : > { %v5007_v58 = vpop.eup %4735  ;;  %v483_v59 = vadd.f32 %v469_v53, %v412_v56  ;;  %v414_v60 = vpop.f32.mrb[9].mxu0  ;;  %v534_v61 = vadd.f32 %v519_v55, %v518_v54  ;;  %v587_v62 = vmul.f32 %v5000_v51, %v519_v55 }
 0x100   : > { %v5010_v63 = vpop.eup %4737  ;;  %v484_v1 = vadd.f32 %v469_v53, %v414_v60  ;;  %v520_v2 = vmul.f32 %v5007_v58, %v4992_v45 }
 0x101   : > { %4747 = vtanh.f32 %v483_v59  ;;  %535 = vadd.xlane.f32.xlu0 %v534_v61  ;;  %v521_v3 = vmul.f32 %v5010_v63, %v4996_v46  ;;  %v602_v5 = vadd.f32 %v587_v62, %v586_v57 }
 0x102   : > { %4749 = vtanh.f32 %v484_v1  ;;  %v418_v4 = vpop.f32.mrb[10].mxu0  ;;  %v588_v10 = vmul.f32 %v5007_v58, %v520_v2 }
 0x103   : > { %v5016_v6 = vpop.eup %4739  ;;  %v485_v7 = vadd.f32 %v469_v53, %v418_v4  ;;  %v420_v8 = vpop.f32.mrb[11].mxu0  ;;  %v537_v9 = vadd.f32 %v521_v3, %v520_v2  ;;  %v589_v11 = vmul.f32 %v5010_v63, %v521_v3 }
 0x104   : > { %v5020_v12 = vpop.eup %4741  ;;  %v486_v13 = vadd.f32 %v469_v53, %v420_v8  ;;  %v522_v14 = vmul.f32 %v5016_v6, %v4992_v45 }
 0x105   : > { %4751 = vtanh.f32 %v485_v7  ;;  %603 = vadd.xlane.f32.xlu0 %v602_v5  ;;  %538 = vadd.xlane.f32.xlu1 %v537_v9  ;;  %v523_v15 = vmul.f32 %v5020_v12, %v4996_v46  ;;  %v605_v22 = vadd.f32 %v589_v11, %v588_v10 }
 0x106   : > { %4753 = vtanh.f32 %v486_v13  ;;  %v424_v17 = vpop.f32.mrb[12].mxu0  ;;  %v590_v18 = vmul.f32 %v5016_v6, %v522_v14 }
 0x107   : > { %v5027_v19 = vpop.eup %4743  ;;  %v487_v20 = vadd.f32 %v473_v16, %v424_v17  ;;  %v426_v21 = vpop.f32.mrb[13].mxu0  ;;  %v540_v23 = vadd.f32 %v523_v15, %v522_v14  ;;  %v591_v24 = vmul.f32 %v5020_v12, %v523_v15 }
 0x108   : > { %v5030_v25 = vpop.eup %4745  ;;  %v488_v27 = vadd.f32 %v473_v16, %v426_v21  ;;  %v524_v28 = vmul.f32 %v5027_v19, %v4992_v45 }
 0x109   : > { %4755 = vtanh.f32 %v487_v20  ;;  %606 = vadd.xlane.f32.xlu0 %v605_v22  ;;  %541 = vadd.xlane.f32.xlu1 %v540_v23  ;;  %v525_v29 = vmul.f32 %v5030_v25, %v4996_v46  ;;  %v608_v31 = vadd.f32 %v591_v24, %v590_v18 }
 0x10a   : > { %4757 = vtanh.f32 %v488_v27  ;;  %v430_v30 = vpop.f32.mrb[14].mxu0  ;;  %v592_v38 = vmul.f32 %v5027_v19, %v524_v28 }
 0x10b   : > { %v5036_v33 = vpop.eup %4747  ;;  %v489_v34 = vadd.f32 %v473_v16, %v430_v30  ;;  %v432_v35 = vpop.f32.mrb[15].mxu0  ;;  %v543_v36 = vadd.f32 %v525_v29, %v524_v28  ;;  %v593_v40 = vmul.f32 %v5030_v25, %v525_v29 }
 0x10c   : > { %v5040_v41 = vpop.eup %4749  ;;  %v490_v42 = vadd.f32 %v473_v16, %v432_v35  ;;  %v526_v43 = vmul.f32 %v5036_v33, %v4992_v45 }
 0x10d   : > { %4759 = vtanh.f32 %v489_v34  ;;  %609 = vadd.xlane.f32.xlu1 %v608_v31  ;;  %544 = vadd.xlane.f32.xlu0 %v543_v36  ;;  %v527_v44 = vmul.f32 %v5040_v41, %v4996_v46  ;;  %v611_v49 = vadd.f32 %v593_v40, %v592_v38 }
 0x10e   : > { %4761 = vtanh.f32 %v490_v42  ;;  %v594_v52 = vmul.f32 %v5036_v33, %v526_v43 }
 0x10f   : > { %v5046_v47 = vpop.eup %4751  ;;  %v546_v50 = vadd.f32 %v527_v44, %v526_v43  ;;  %v595_v53 = vmul.f32 %v5040_v41, %v527_v44 }
 0x110   : > { %v5050_v54 = vpop.eup %4753  ;;  %v528_v55 = vmul.f32 %v5046_v47, %v4992_v45 }
 0x111   : > { %612 = vadd.xlane.f32.xlu0 %v611_v49  ;;  %547 = vadd.xlane.f32.xlu1 %v546_v50  ;;  %v529_v56 = vmul.f32 %v5050_v54, %v4996_v46  ;;  %v614_v59 = vadd.f32 %v595_v53, %v594_v52 }
 0x112   : > { %v596_v61 = vmul.f32 %v5046_v47, %v528_v55 }
 0x113   : > { %v5056_v57 = vpop.eup %4755  ;;  %v549_v60 = vadd.f32 %v529_v56, %v528_v55  ;;  %v597_v62 = vmul.f32 %v5050_v54, %v529_v56 }
 0x114   : > { %v5060_v1 = vpop.eup %4757  ;;  %v530_v2 = vmul.f32 %v5056_v57, %v4992_v45 }
 0x115   : > { %615 = vadd.xlane.f32.xlu1 %v614_v59  ;;  %550 = vadd.xlane.f32.xlu0 %v549_v60  ;;  %v531_v3 = vmul.f32 %v5060_v1, %v4996_v46  ;;  %v617_v5 = vadd.f32 %v597_v62, %v596_v61 }
 0x116   : > { %v598_v8 = vmul.f32 %v5056_v57, %v530_v2 }
 0x117   : > { %v5066_v4 = vpop.eup %4759  ;;  %v552_v7 = vadd.f32 %v531_v3, %v530_v2  ;;  %v599_v9 = vmul.f32 %v5060_v1, %v531_v3 }
 0x118   : > { %v5070_v10 = vpop.eup %4761  ;;  %v532_v11 = vmul.f32 %v5066_v4, %v4992_v45 }
 0x119   : > { %618 = vadd.xlane.f32.xlu0 %v617_v5  ;;  %553 = vadd.xlane.f32.xlu1 %v552_v7  ;;  %v533_v13 = vmul.f32 %v5070_v10, %v4996_v46  ;;  %v620_v14 = vadd.f32 %v599_v9, %v598_v8 }
 0x11a   : > { %v600_v16 = vmul.f32 %v5066_v4, %v532_v11 }
 0x11b   : > { %v555_v15 = vadd.f32 %v533_v13, %v532_v11  ;;  %v601_v17 = vmul.f32 %v5070_v10, %v533_v13 }
 0x11d   : > { %621 = vadd.xlane.f32.xlu1 %v620_v14  ;;  %556 = vadd.xlane.f32.xlu0 %v555_v15  ;;  %v623_v18 = vadd.f32 %v601_v17, %v600_v16 }
 0x121   : > { %624 = vadd.xlane.f32.xlu0 %v623_v18 }
 0x18e   : > { %v536_v20 = vpop.xlane.xlu0 %535 }
 0x192   : > { %v604_v21 = vpop.xlane.xlu0 %603  ;;  %v539_v22 = vpop.xlane.xlu1 %538 }
 0x193   : > { %v558_v23 = vadd.f32 %v539_v22, %v536_v20 }
 0x195   : > { %v559_v24 = vrot.slane %v558_v23, 4 }
 0x196   : > { %v607_v27 = vpop.xlane.xlu0 %606  ;;  %v542_v28 = vpop.xlane.xlu1 %541 }
 0x197   : > { %v560_v29 = vadd.f32 %v559_v24, %v558_v23  ;;  %v626_v30 = vadd.f32 %v607_v27, %v604_v21 }
 0x199   : > { %v561_v31 = vrot.slane %v560_v29, 2  ;;  %v627_v34 = vrot.slane %v626_v30, 4 }
 0x19a   : > { %v610_v35 = vpop.xlane.xlu1 %609  ;;  %v545_v36 = vpop.xlane.xlu0 %544 }
 0x19b   : > { %v562_v38 = vadd.f32 %v561_v31, %v560_v29  ;;  %v628_v40 = vadd.f32 %v627_v34, %v626_v30  ;;  %v565_v42 = vadd.f32 %v545_v36, %v542_v28 }
 0x19d   : > { %v563_v43 = vrot.slane %v562_v38, 1  ;;  %v629_v44 = vrot.slane %v628_v40, 2  ;;  %v566_v49 = vrot.slane %v565_v42, 4 }
 0x19e   : > { %v613_v50 = vpop.xlane.xlu0 %612  ;;  %v548_v52 = vpop.xlane.xlu1 %547 }
 0x19f   : > { %v564_v53 = vadd.f32 %v563_v43, %v562_v38  ;;  %v630_v55 = vadd.f32 %v629_v44, %v628_v40  ;;  %v567_v56 = vadd.f32 %v566_v49, %v565_v42  ;;  %v633_v59 = vadd.f32 %v613_v50, %v610_v35 }
 0x1a1   : > { %v631_v60 = vrot.slane %v630_v55, 1  ;;  %v568_v61 = vrot.slane %v567_v56, 2  ;;  %v634_v62 = vrot.slane %v633_v59, 4  ;;  %v5078_v2 = vmul.f32 0.00031887754, %v564_v53 }
 0x1a2   : > { %v616_v3 = vpop.xlane.xlu1 %615  ;;  %v551_v5 = vpop.xlane.xlu0 %550 }
 0x1a3   : > { %v632_v7 = vadd.f32 %v631_v60, %v630_v55  ;;  %v569_v8 = vadd.f32 %v568_v61, %v567_v56  ;;  %v635_v9 = vadd.f32 %v634_v62, %v633_v59  ;;  %v572_v11 = vadd.f32 %v551_v5, %v548_v52 }
 0x1a4   : > { %v662_v14 = vmul.f32 %v5078_v2, %v5078_v2 }
 0x1a5   : > { %v658_v13 = vmul.f32 0.00031887754, %v632_v7  ;;  %v570_v15 = vrot.slane %v569_v8, 1  ;;  %v636_v16 = vrot.slane %v635_v9, 2  ;;  %v573_v18 = vrot.slane %v572_v11, 4 }
 0x1a6   : > { %v619_v17 = vpop.xlane.xlu0 %618  ;;  %v554_v24 = vpop.xlane.xlu1 %553 }
 0x1a7   : > { %v640_v20 = vadd.f32 %v619_v17, %v616_v3  ;;  %v666_v21 = vsub.f32 %v658_v13, %v662_v14  ;;  %v571_v22 = vadd.f32 %v570_v15, %v569_v8  ;;  %v637_v23 = vadd.f32 %v636_v16, %v635_v9 }
 0x1a8   : > { %v574_v27 = vadd.f32 %v573_v18, %v572_v11  ;;  %v670_v15 = vsub.f32 %v4998_v48, %v5078_v2  ;;  %v671_v16 = vsub.f32 %v5000_v51, %v5078_v2  ;;  %v672_v17 = vsub.f32 %v5007_v58, %v5078_v2 }
 0x1a9   : > { %v641_v28 = vrot.slane %v640_v20, 4  ;;  %v686_v29 = vadd.f32 1e-05, %v666_v21  ;;  %v638_v30 = vrot.slane %v637_v23, 1  ;;  %v5082_v34 = vmul.f32 0.00031887754, %v571_v22 }
 0x1aa   : > { %v557_v31 = vpop.xlane.xlu0 %556  ;;  %v575_v35 = vrot.slane %v574_v27, 2  ;;  %v622_v44 = vpop.xlane.xlu1 %621 }
 0x1ab   : > { %v642_v36 = vadd.f32 %v641_v28, %v640_v20  ;;  %v579_v38 = vadd.f32 %v557_v31, %v554_v24  ;;  %4763 = vrsqrt.f32 %v686_v29  ;;  %v639_v40 = vadd.f32 %v638_v30, %v637_v23 }
 0x1ac   : > { %v576_v42 = vadd.f32 %v575_v35, %v574_v27  ;;  %v663_v52 = vmul.f32 %v5082_v34, %v5082_v34  ;;  %v673_v20 = vsub.f32 %v5010_v63, %v5078_v2 }
 0x1ad   : > { %v643_v43 = vrot.slane %v642_v36, 2  ;;  %v580_v49 = vrot.slane %v579_v38, 4  ;;  %v659_v53 = vmul.f32 0.00031887754, %v639_v40 }
 0x1ae   : > { %v625_v50 = vpop.xlane.xlu0 %624  ;;  %v577_v55 = vrot.slane %v576_v42, 1 }
 0x1af   : > { %v647_v56 = vadd.f32 %v625_v50, %v622_v44  ;;  %v644_v59 = vadd.f32 %v643_v43, %v642_v36  ;;  %v581_v60 = vadd.f32 %v580_v49, %v579_v38  ;;  %v667_v61 = vsub.f32 %v659_v53, %v663_v52 }
 0x1b0   : > { %v578_v62 = vadd.f32 %v577_v55, %v576_v42  ;;  %v674_v43 = vsub.f32 %v5016_v6, %v5082_v34  ;;  %v675_v50 = vsub.f32 %v5020_v12, %v5082_v34  ;;  %v676_v52 = vsub.f32 %v5027_v19, %v5082_v34 }
 0x1b1   : > { %v648_v3 = vrot.slane %v647_v56, 4  ;;  %v645_v5 = vrot.slane %v644_v59, 1  ;;  %v582_v7 = vrot.slane %v581_v60, 2  ;;  %v687_v8 = vadd.f32 1e-05, %v667_v61 }
 0x1b2   : > { %v5086_v9 = vmul.f32 0.00031887754, %v578_v62  ;;  %v677_v53 = vsub.f32 %v5030_v25, %v5082_v34 }
 0x1b3   : > { %v649_v11 = vadd.f32 %v648_v3, %v647_v56  ;;  %v646_v13 = vadd.f32 %v645_v5, %v644_v59  ;;  %v583_v14 = vadd.f32 %v582_v7, %v581_v60  ;;  %4765 = vrsqrt.f32 %v687_v8 }
 0x1b4   : > { %v664_v21 = vmul.f32 %v5086_v9, %v5086_v9  ;;  %v678_v8 = vsub.f32 %v5036_v33, %v5086_v9 }
 0x1b5   : > { %v4764_v18 = vpop.eup %4763  ;;  %v660_v22 = vmul.f32 0.00031887754, %v646_v13  ;;  %v584_v23 = vrot.slane %v583_v14, 1  ;;  %v650_v24 = vrot.slane %v649_v11, 2  ;;  %v679_v13 = vsub.f32 %v5040_v41, %v5086_v9 }
 0x1b6   : > { %v694_v27 = vmul.f32 %v4764_v18, %v670_v15  ;;  %v696_v28 = vmul.f32 %v4764_v18, %v672_v17  ;;  %v695_v48 = vmul.f32 %v4764_v18, %v671_v16  ;;  %v697_v51 = vmul.f32 %v4764_v18, %v673_v20 }
 0x1b7   : > { %v668_v29 = vsub.f32 %v660_v22, %v664_v21  ;;  %v585_v30 = vadd.f32 %v584_v23, %v583_v14  ;;  %v651_v31 = vadd.f32 %v650_v24, %v649_v11  ;;  %v680_v14 = vsub.f32 %v5046_v47, %v5086_v9 }
 0x1b8   : > { %v5099_v58 = vmul.f32 %v694_v27, %v4992_v45  ;;  %v5102_v35 = vmul.f32 %v696_v28, %v4992_v45  ;;  %v5105_v63 = vmul.f32 %v695_v48, %v4996_v46  ;;  %v5108_v38 = vmul.f32 %v697_v51, %v4996_v46 }
 0x1b9   : > { %v688_v2 = vadd.f32 1e-05, %v668_v29  ;;  %v657_v36 = vmul.f32 0.00031887754, %v585_v30  ;;  %v652_v40 = vrot.slane %v651_v31, 1  ;;  %v681_v15 = vsub.f32 %v5050_v54, %v5086_v9 }
 0x1ba   : > { %v5112_v42 = vpack.i.bf16 %v5102_v35, %v5099_v58  ;;  %v5120_v49 = vpack.i.bf16 %v5108_v38, %v5105_v63  ;;  %v4062_v7 = vpack.c.bf16 %v5108_v38, %v5105_v63  ;;  %v4064_v22 = vpack.c.bf16 %v5102_v35, %v5099_v58  ;;  %v3913_v58 = vld [vmem:[%s6750_s3 + $0x1c8] sm:$0xff] }
 0x1bb   : > { %4767 = vrsqrt.f32 %v688_v2  ;;  %v653_v44 = vadd.f32 %v652_v40, %v651_v31  ;;  %v665_v55 = vmul.f32 %v657_v36, %v657_v36  ;;  %v682_v27 = vsub.f32 %v5056_v57, %v657_v36 }
 0x1bc   : > { %4412 = vrot.lane.b32.xlu1 %v5112_v42, %s4865_s12  ;;  %4417 = vrot.lane.b32.xlu0 %v5120_v49, %s4865_s12  ;;  %v683_v28 = vsub.f32 %v5060_v1, %v657_v36  ;;  %v684_v48 = vsub.f32 %v5066_v4, %v657_v36  ;;  %v685_v29 = vsub.f32 %v5070_v10, %v657_v36 }
 0x1bd   : > { %v4766_v6 = vpop.eup %4765  ;;  %v661_v56 = vmul.f32 0.00031887754, %v653_v44 }
 0x1be   : > { %v698_v59 = vmul.f32 %v4766_v6, %v674_v43  ;;  %v700_v60 = vmul.f32 %v4766_v6, %v676_v52  ;;  %v699_v61 = vmul.f32 %v4766_v6, %v675_v50  ;;  %v701_v62 = vmul.f32 %v4766_v6, %v677_v53 }
 0x1bf   : > { %v669_v3 = vsub.f32 %v661_v56, %v665_v55  ;;  %v5273_v55 = vand.u32 127, %v508_v26 }
 0x1c0   : > { %v5131_v5 = vmul.f32 %v698_v59, %v4992_v45  ;;  %v5134_v12 = vmul.f32 %v700_v60, %v4992_v45  ;;  %v5137_v19 = vmul.f32 %v699_v61, %v4996_v46  ;;  %v5140_v25 = vmul.f32 %v701_v62, %v4996_v46 }
 0x1c1   : > { %v689_v34 = vadd.f32 1e-05, %v669_v3  ;;  %vm1699_vm1 = vcmp.lt.s32.totalorder %v5273_v55, 111  ;;  %vm772_vm2 = vcmp.lt.s32.totalorder %v5273_v55, 127  ;;  %vm1958_vm4 = vcmp.lt.s32.totalorder %v5273_v55, 110 }
 0x1c2   : > { %v5148_v11 = vpack.i.bf16 %v5134_v12, %v5131_v5  ;;  %v5160_v33 = vpack.i.bf16 %v5140_v25, %v5137_v19  ;;  %v4066_v51 = vpack.c.bf16 %v5140_v25, %v5137_v19  ;;  %v4068_v1 = vpack.c.bf16 %v5134_v12, %v5131_v5  ;;  %v3914_v5 = vld [vmem:[%s6750_s3 + $0x1d0] sm:$0xff] }
 0x1c3   : > { %4769 = vrsqrt.f32 %v689_v34  ;;  %vm2217_vm5 = vcmp.lt.s32.totalorder %v5273_v55, 96  ;;  %vm1181_vm6 = vcmp.lt.s32.totalorder %v5273_v55, 126  ;;  %vm2476_vm7 = vcmp.lt.s32.totalorder %v5273_v55, 95 }
 0x1c4   : > { %4422 = vrot.lane.b32.xlu1 %v5148_v11, %s4865_s12  ;;  %vm1440_vm8 = vcmp.lt.s32.totalorder %v5273_v55, 112  ;;  %vm2735_vm9 = vcmp.lt.s32.totalorder %v5273_v55, 94  ;;  %v3864_v55 = vld [vmem:[%s6750_s3 + $0x100] sm:$0xff] }
 0x1c5   : > { %v4768_v16 = vpop.eup %4767 }
 0x1c6   : > { %v703_v17 = vmul.f32 %v4768_v16, %v679_v13  ;;  %v705_v18 = vmul.f32 %v4768_v16, %v681_v15  ;;  %v702_v20 = vmul.f32 %v4768_v16, %v678_v8  ;;  %v704_v21 = vmul.f32 %v4768_v16, %v680_v14 }
 0x1c8   : > { %v5163_v41 = vmul.f32 %v703_v17, %v4996_v46  ;;  %v5166_v47 = vmul.f32 %v705_v18, %v4996_v46  ;;  %v5169_v54 = vmul.f32 %v702_v20, %v4992_v45  ;;  %v5172_v9 = vmul.f32 %v704_v21, %v4992_v45  ;;  %4427 = vrot.lane.b32.xlu1 %v5160_v33, %s4865_s12 }
 0x1ca   : > { %v5180_v23 = vpack.i.bf16 %v5166_v47, %v5163_v41  ;;  %v5184_v24 = vpack.i.bf16 %v5172_v9, %v5169_v54  ;;  %v4070_v44 = vpack.c.bf16 %v5166_v47, %v5163_v41  ;;  %v4072_v50 = vpack.c.bf16 %v5172_v9, %v5169_v54  ;;  %v3823_v47 = vld [vmem:[%s6750_s3 + $0x78] sm:$0xff] }
 0x1cc   : > { %4432 = vrot.lane.b32.xlu0 %v5184_v24, %s4865_s12  ;;  %4437 = vrot.lane.b32.xlu1 %v5180_v23, %s4865_s12 }
 0x1cd   : > { %v4770_v30 = vpop.eup %4769 }
 0x1ce   : > { %v707_v31 = vmul.f32 %v4770_v30, %v683_v28  ;;  %v709_v2 = vmul.f32 %v4770_v30, %v685_v29  ;;  %v706_v40 = vmul.f32 %v4770_v30, %v682_v27  ;;  %v708_v57 = vmul.f32 %v4770_v30, %v684_v48 }
 0x1d0   : > { %v5199_v4 = vmul.f32 %v707_v31, %v4996_v46  ;;  %v5202_v10 = vmul.f32 %v709_v2, %v4996_v46  ;;  %v5205_v36 = vmul.f32 %v706_v40, %v4992_v45  ;;  %v5208_v43 = vmul.f32 %v708_v57, %v4992_v45 }
 0x1d2   : > { %v5216_v52 = vpack.i.bf16 %v5202_v10, %v5199_v4  ;;  %v5220_v46 = vpack.i.bf16 %v5208_v43, %v5205_v36  ;;  %v4074_v45 = vpack.c.bf16 %v5202_v10, %v5199_v4  ;;  %v4076_v53 = vpack.c.bf16 %v5208_v43, %v5205_v36 }
 0x1d4   : > { %4447 = vrot.lane.b32.xlu1 %v5216_v52, %s4865_s12  ;;  %4442 = vrot.lane.b32.xlu0 %v5220_v46, %s4865_s12 }
 0x1d8   : > { %4457 = vrot.lane.b32.xlu1 %v5120_v49, %s4866_s13  ;;  %4452 = vrot.lane.b32.xlu0 %v5112_v42, %s4866_s13 }
 0x1dc   : > { %4467 = vrot.lane.b32.xlu1 %v5160_v33, %s4866_s13  ;;  %4462 = vrot.lane.b32.xlu0 %v5148_v11, %s4866_s13 }
 0x1e0   : > { %4477 = vrot.lane.b32.xlu1 %v5180_v23, %s4866_s13  ;;  %4472 = vrot.lane.b32.xlu0 %v5184_v24, %s4866_s13 }
 0x1e4   : > { %4487 = vrot.lane.b32.xlu1 %v5120_v49, %s4867_s14  ;;  %4482 = vrot.lane.b32.xlu0 %v5112_v42, %s4867_s14 }
 0x1e8   : > { %4502 = vrot.lane.b32.xlu1 %v5216_v52, %s4866_s13  ;;  %4492 = vrot.lane.b32.xlu0 %v5220_v46, %s4866_s13  ;;  %s6605_s13 = scalar_lea.vmem %s6754_s7, %s4390_s10 }
 0x1ec   : > { %4507 = vrot.lane.b32.xlu1 %v5160_v33, %s4867_s14  ;;  %4497 = vrot.lane.b32.xlu0 %v5148_v11, %s4867_s14 }
 0x1f0   : > { %4517 = vrot.lane.b32.xlu1 %v5180_v23, %s4867_s14  ;;  %4512 = vrot.lane.b32.xlu0 %v5184_v24, %s4867_s14 }
 0x1f4   : > { %4527 = vrot.lane.b32.xlu1 %v5216_v52, %s4867_s14  ;;  %4522 = vrot.lane.b32.xlu0 %v5220_v46, %s4867_s14 }
 0x1f8   : > { %4537 = vrot.lane.b32.xlu1 %v5120_v49, %s4868_s15  ;;  %4532 = vrot.lane.b32.xlu0 %v5112_v42, %s4868_s15 }
 0x1fc   : > { %4547 = vrot.lane.b32.xlu1 %v5160_v33, %s4868_s15  ;;  %4542 = vrot.lane.b32.xlu0 %v5148_v11, %s4868_s15 }
 0x200   : > { %4557 = vrot.lane.b32.xlu1 %v5180_v23, %s4868_s15  ;;  %4552 = vrot.lane.b32.xlu0 %v5184_v24, %s4868_s15 }
 0x204   : > { %4567 = vrot.lane.b32.xlu1 %v5216_v52, %s4868_s15  ;;  %4562 = vrot.lane.b32.xlu0 %v5220_v46, %s4868_s15 }
 0x208   : > { %4577 = vrot.lane.b32.xlu1 %v5120_v49, %s4869_s16  ;;  %4572 = vrot.lane.b32.xlu0 %v5112_v42, %s4869_s16 }
 0x20c   : > { %4587 = vrot.lane.b32.xlu1 %v5160_v33, %s4869_s16  ;;  %4582 = vrot.lane.b32.xlu0 %v5148_v11, %s4869_s16 }
 0x210   : > { %4597 = vrot.lane.b32.xlu1 %v5180_v23, %s4869_s16  ;;  %4592 = vrot.lane.b32.xlu0 %v5184_v24, %s4869_s16 }
 0x214   : > { %4607 = vrot.lane.b32.xlu1 %v5120_v49, %s4870_s17  ;;  %4602 = vrot.lane.b32.xlu0 %v5112_v42, %s4870_s17 }
 0x218   : > { %4622 = vrot.lane.b32.xlu1 %v5216_v52, %s4869_s16  ;;  %4612 = vrot.lane.b32.xlu0 %v5220_v46, %s4869_s16 }
 0x21c   : > { %4627 = vrot.lane.b32.xlu1 %v5160_v33, %s4870_s17  ;;  %4617 = vrot.lane.b32.xlu0 %v5148_v11, %s4870_s17 }
 0x220   : > { %4637 = vrot.lane.b32.xlu1 %v5180_v23, %s4870_s17  ;;  %4632 = vrot.lane.b32.xlu0 %v5184_v24, %s4870_s17 }
 0x224   : > { %4647 = vrot.lane.b32.xlu1 %v5216_v52, %s4870_s17  ;;  %4642 = vrot.lane.b32.xlu0 %v5220_v46, %s4870_s17 }
 0x228   : > { %4657 = vrot.lane.b32.xlu1 %v5120_v49, %s4871_s18  ;;  %4652 = vrot.lane.b32.xlu0 %v5112_v42, %s4871_s18 }
 0x22c   : > { %4667 = vrot.lane.b32.xlu1 %v5160_v33, %s4871_s18  ;;  %4662 = vrot.lane.b32.xlu0 %v5148_v11, %s4871_s18 }
 0x22e   : > { %v4413_v6 = vpop.permute.xlu1 %4412  ;;  %v4418_v60 = vpop.permute.xlu0 %4417 }
 0x22f   : > { %v4415_v56 = vunpack.i.h.bf16 %v4413_v6  ;;  %v4414_v59 = vunpack.i.l.bf16 %v4413_v6  ;;  %v4420_v61 = vunpack.i.h.bf16 %v4418_v60  ;;  %v4419_v62 = vunpack.i.l.bf16 %v4418_v60 }
 0x230   : > { %4677 = vrot.lane.b32.xlu1 %v5180_v23, %s4871_s18  ;;  %4672 = vrot.lane.b32.xlu0 %v5184_v24, %s4871_s18 }
 0x231   : > { %v1708_v3 = vsel %vm1699_vm1, %v4419_v62, %v4414_v59  ;;  %v1709_v34 = vsel %vm1699_vm1, %v4420_v61, %v4415_v56  ;;  %v1700_v8 = vsel %vm1699_vm1, %v4414_v59, %v4419_v62  ;;  %v1701_v13 = vsel %vm1699_vm1, %v4415_v56, %v4420_v61 }
 0x232   : > { %v5288_v14 = vpack.c.bf16 %v1709_v34, %v1708_v3  ;;  %v5290_v15 = vpack.c.bf16 %v1701_v13, %v1700_v8  ;;  %v4851_v3 = vld [vmem:[%s6751_s4 + $0x3] ss:$0 sm:$0xff]  ;;  %v4852_v34 = vld [vmem:[%s6751_s4 + $0x2] ss:$0 sm:$0xff] }
 0x234   : > { %4687 = vrot.lane.b32.xlu1 %v5120_v49, %s4872_s19  ;;  %4682 = vrot.lane.b32.xlu0 %v5112_v42, %s4872_s19 }
 0x235   : > { %4190 = vmatprep.subr.bf16.mxu1 %v5288_v14 }
 0x236   : > { %4194 = vmatpush1.bf16.msra.mxu1 %v5290_v15  ;;  %v4423_v16 = vpop.permute.xlu1 %4422 }
 0x237   : > { %v4425_v18 = vunpack.i.h.bf16 %v4423_v16  ;;  %v4424_v20 = vunpack.i.l.bf16 %v4423_v16 }
 0x238   : > { %4702 = vrot.lane.b32.xlu1 %v5216_v52, %s4871_s18  ;;  %4692 = vrot.lane.b32.xlu0 %v5220_v46, %s4871_s18 }
 0x23a   : > { %v4428_v17 = vpop.permute.xlu1 %4427 }
 0x23b   : > { %v4430_v21 = vunpack.i.h.bf16 %v4428_v17  ;;  %v4429_v27 = vunpack.i.l.bf16 %v4428_v17 }
 0x23c   : > { %4707 = vrot.lane.b32.xlu1 %v5160_v33, %s4872_s19  ;;  %4697 = vrot.lane.b32.xlu0 %v5148_v11, %s4872_s19 }
 0x23d   : > { %v1710_v49 = vsel %vm1699_vm1, %v4429_v27, %v4424_v20  ;;  %v1711_v28 = vsel %vm1699_vm1, %v4430_v21, %v4425_v18  ;;  %v1702_v48 = vsel %vm1699_vm1, %v4424_v20, %v4429_v27  ;;  %v1703_v29 = vsel %vm1699_vm1, %v4425_v18, %v4430_v21 }
 0x23e   : > { %v4433_v42 = vpop.permute.xlu0 %4432  ;;  %v4438_v30 = vpop.permute.xlu1 %4437  ;;  %v5312_v33 = vpack.c.bf16 %v1711_v28, %v1710_v49  ;;  %v5314_v40 = vpack.c.bf16 %v1703_v29, %v1702_v48  ;;  %v4854_v49 = vld [vmem:[%s6751_s4 + $0x4] ss:$0 sm:$0xff] }
 0x23f   : > { %v4435_v31 = vunpack.i.h.bf16 %v4433_v42  ;;  %v4434_v2 = vunpack.i.l.bf16 %v4433_v42  ;;  %v4440_v11 = vunpack.i.h.bf16 %v4438_v30  ;;  %v4439_v57 = vunpack.i.l.bf16 %v4438_v30  ;;  %v4853_v42 = vld [vmem:[%s6751_s4 + $0x5] ss:$0 sm:$0xff] }
 0x240   : > { %4717 = vrot.lane.b32.xlu1 %v5180_v23, %s4872_s19  ;;  %4712 = vrot.lane.b32.xlu0 %v5184_v24, %s4872_s19  ;;  %v4849_v23 = vld [vmem:[%s6751_s4 + $0x1] ss:$0 sm:$0xff]  ;;  %v4850_v24 = vld [vmem:[%s6751_s4] ss:$0 sm:$0xff] }
 0x241   : > { %4191 = vmatprep.subr.bf16.mxu1 %v5312_v33  ;;  %v1712_v6 = vsel %vm1699_vm1, %v4439_v57, %v4434_v2  ;;  %v1713_v56 = vsel %vm1699_vm1, %v4440_v11, %v4435_v31  ;;  %v1704_v59 = vsel %vm1699_vm1, %v4434_v2, %v4439_v57  ;;  %v1705_v60 = vsel %vm1699_vm1, %v4435_v31, %v4440_v11 }
 0x242   : > { %4195 = vmatpush1.bf16.msra.mxu1 %v5314_v40  ;;  %v5336_v61 = vpack.c.bf16 %v1713_v56, %v1712_v6  ;;  %v5338_v62 = vpack.c.bf16 %v1705_v60, %v1704_v59 }
 0x244   : > { %4727 = vrot.lane.b32.xlu1 %v5216_v52, %s4872_s19  ;;  %4722 = vrot.lane.b32.xlu0 %v5220_v46, %s4872_s19 }
 0x245   : > { %4192 = vmatprep.subr.bf16.mxu1 %v5336_v61 }
 0x246   : > { %4196 = vmatpush1.bf16.msra.mxu1 %v5338_v62  ;;  %v4448_v8 = vpop.permute.xlu1 %4447  ;;  %v4443_v13 = vpop.permute.xlu0 %4442 }
 0x247   : > { %v4450_v16 = vunpack.i.h.bf16 %v4448_v8  ;;  %v4449_v17 = vunpack.i.l.bf16 %v4448_v8  ;;  %v4445_v52 = vunpack.i.h.bf16 %v4443_v13  ;;  %v4444_v18 = vunpack.i.l.bf16 %v4443_v13 }
 0x248   : > { %3003 = vperm.xlu1 %4410, %v4849_v23   ;;  %2999 = vperm.xlu0 %4409, %v4850_v24  }
 0x249   : > { %v1714_v46 = vsel %vm1699_vm1, %v4449_v17, %v4444_v18  ;;  %v1715_v20 = vsel %vm1699_vm1, %v4450_v16, %v4445_v52  ;;  %v1706_v21 = vsel %vm1699_vm1, %v4444_v18, %v4449_v17  ;;  %v1707_v27 = vsel %vm1699_vm1, %v4445_v52, %v4450_v16 }
 0x24a   : > { %v4458_v28 = vpop.permute.xlu1 %4457  ;;  %v4453_v48 = vpop.permute.xlu0 %4452  ;;  %v5367_v29 = vpack.c.bf16 %v1715_v20, %v1714_v46  ;;  %v5369_v30 = vpack.c.bf16 %v1707_v27, %v1706_v21 }
 0x24b   : > { %v4460_v31 = vunpack.i.h.bf16 %v4458_v28  ;;  %v4459_v2 = vunpack.i.l.bf16 %v4458_v28  ;;  %v4455_v11 = vunpack.i.h.bf16 %v4453_v48  ;;  %v4454_v57 = vunpack.i.l.bf16 %v4453_v48 }
 0x24c   : > { %3011 = vperm.xlu1 %4410, %v4851_v3   ;;  %3007 = vperm.xlu0 %4409, %v4852_v34   ;;  %v3907_v34 = vld [vmem:[%s6750_s3 + $0x198] sm:$0xff] }
 0x24d   : > { %v774_v6 = vsel %vm772_vm2, %v4455_v11, %v4460_v31  ;;  %v773_v56 = vsel %vm772_vm2, %v4454_v57, %v4459_v2  ;;  %4193 = vmatprep.subr.bf16.mxu1 %v5367_v29  ;;  %v781_v59 = vsel %vm772_vm2, %v4459_v2, %v4454_v57  ;;  %v782_v60 = vsel %vm772_vm2, %v4460_v31, %v4455_v11 }
 0x24e   : > { %4197 = vmatpush1.bf16.msra.mxu1 %v5369_v30  ;;  %v4468_v23 = vpop.permute.xlu1 %4467  ;;  %v4463_v24 = vpop.permute.xlu0 %4462  ;;  %v4046_v3 = vpack.c.bf16 %v782_v60, %v781_v59  ;;  %v4048_v8 = vpack.c.bf16 %v774_v6, %v773_v56 }
 0x24f   : > { %v4470_v13 = vunpack.i.h.bf16 %v4468_v23  ;;  %v4469_v16 = vunpack.i.l.bf16 %v4468_v23  ;;  %v4465_v17 = vunpack.i.h.bf16 %v4463_v24  ;;  %v4464_v52 = vunpack.i.l.bf16 %v4463_v24 }
 0x250   : > { %3019 = vperm.xlu1 %4410, %v4853_v42   ;;  %3015 = vperm.xlu0 %4409, %v4854_v49   ;;  %v3908_v49 = vld [vmem:[%s6750_s3 + $0x1a0] sm:$0xff] }
 0x251   : > { %v776_v18 = vsel %vm772_vm2, %v4465_v17, %v4470_v13  ;;  %v775_v46 = vsel %vm772_vm2, %v4464_v52, %v4469_v16  ;;  %4047 = vmatprep.subr.bf16.mxu0 %v4046_v3  ;;  %3919 = vmatmul.mubr.msk.f32.vlgmr.msra.gmra.mrb[0].mxu1 %vm802_vm3, %v3907_v34  ;;  %v783_v20 = vsel %vm772_vm2, %v4469_v16, %v4464_v52  ;;  %v3909_v34 = vld [vmem:[%s6750_s3 + $0x1a8] sm:$0xff] }
 0x252   : > { %4049 = vmatpush1.bf16.msra.mxu0 %v4048_v8  ;;  %v4478_v21 = vpop.permute.xlu1 %4477  ;;  %v4473_v27 = vpop.permute.xlu0 %4472  ;;  %1853 = vmatprep.mubr.f32.mxu1 %v4863_v0  ;;  %v784_v42 = vsel %vm772_vm2, %v4470_v13, %v4465_v17  ;;  %v4052_v28 = vpack.c.bf16 %v776_v18, %v775_v46 }
 0x253   : > { %v4480_v48 = vunpack.i.h.bf16 %v4478_v21  ;;  %v4479_v31 = vunpack.i.l.bf16 %v4478_v21  ;;  %v4475_v2 = vunpack.i.h.bf16 %v4473_v27  ;;  %v4474_v11 = vunpack.i.l.bf16 %v4473_v27 }
 0x254   : > { %v4050_v57 = vpack.c.bf16 %v784_v42, %v783_v20 }
 0x255   : > { %v778_v6 = vsel %vm772_vm2, %v4475_v2, %v4480_v48  ;;  %v777_v56 = vsel %vm772_vm2, %v4474_v11, %v4479_v31  ;;  %3920 = vmatmul.mubr.msk.f32.gmra.mrb[2].mxu1 %vm802_vm3, %v3908_v49  ;;  %v785_v59 = vsel %vm772_vm2, %v4479_v31, %v4474_v11  ;;  %v786_v60 = vsel %vm772_vm2, %v4480_v48, %v4475_v2 }
 0x256   : > { %4051 = vmatprep.subr.bf16.mxu0 %v4050_v57  ;;  %v4488_v23 = vpop.permute.xlu1 %4487  ;;  %v4483_v24 = vpop.permute.xlu0 %4482  ;;  %1859 = vmatprep.mubr.f32.mxu1 %v4863_v0  ;;  %v4054_v3 = vpack.c.bf16 %v786_v60, %v785_v59  ;;  %v4056_v8 = vpack.c.bf16 %v778_v6, %v777_v56 }
 0x257   : > { %4053 = vmatpush1.bf16.msra.mxu0 %v4052_v28  ;;  %v4490_v13 = vunpack.i.h.bf16 %v4488_v23  ;;  %v4489_v16 = vunpack.i.l.bf16 %v4488_v23  ;;  %v4485_v17 = vunpack.i.h.bf16 %v4483_v24  ;;  %v4484_v52 = vunpack.i.l.bf16 %v4483_v24  ;;  %v3910_v28 = vld [vmem:[%s6750_s3 + $0x1b0] sm:$0xff] }
 0x258   : > { %4055 = vmatprep.subr.bf16.mxu0 %v4054_v3 }
 0x259   : > { %v1960_v18 = vsel %vm1958_vm4, %v4485_v17, %v4490_v13  ;;  %v1959_v46 = vsel %vm1958_vm4, %v4484_v52, %v4489_v16  ;;  %3921 = vmatmul.mubr.msk.f32.gmra.mrb[4].mxu1 %vm802_vm3, %v3909_v34  ;;  %v1967_v20 = vsel %vm1958_vm4, %v4489_v16, %v4484_v52  ;;  %v1968_v21 = vsel %vm1958_vm4, %v4490_v13, %v4485_v17 }
 0x25a   : > { %v4128_v27 = vpack.c.bf16 %v1960_v18, %v1959_v46  ;;  %v4503_v42 = vpop.permute.xlu1 %4502  ;;  %v4493_v49 = vpop.permute.xlu0 %4492  ;;  %1865 = vmatprep.mubr.f32.mxu1 %v4863_v0  ;;  %v4126_v48 = vpack.c.bf16 %v1968_v21, %v1967_v20  ;;  %v3820_v20 = vld [vmem:[%s6750_s3 + $0x60] sm:$0xff] }
 0x25b   : > { %4057 = vmatpush1.bf16.msra.mxu0 %v4056_v8  ;;  %v4505_v31 = vunpack.i.h.bf16 %v4503_v42  ;;  %v4504_v2 = vunpack.i.l.bf16 %v4503_v42  ;;  %v4495_v11 = vunpack.i.h.bf16 %v4493_v49  ;;  %v4494_v57 = vunpack.i.l.bf16 %v4493_v49  ;;  %v3911_v8 = vld [vmem:[%s6750_s3 + $0x1b8] sm:$0xff] }
 0x25c   : > { %4127 = vmatprep.subr.bf16.mxu1 %v4126_v48 }
 0x25d   : > { %v780_v6 = vsel %vm772_vm2, %v4495_v11, %v4505_v31  ;;  %v779_v56 = vsel %vm772_vm2, %v4494_v57, %v4504_v2  ;;  %3922 = vmatmul.mubr.msk.f32.gmra.mrb[6].mxu1 %vm802_vm3, %v3910_v28  ;;  %v787_v59 = vsel %vm772_vm2, %v4504_v2, %v4494_v57  ;;  %v788_v60 = vsel %vm772_vm2, %v4505_v31, %v4495_v11  ;;  %v3912_v28 = vld [vmem:[%s6750_s3 + $0x1c0] sm:$0xff] }
 0x25e   : > { %v4060_v23 = vpack.c.bf16 %v780_v6, %v779_v56  ;;  %4129 = vmatpush1.bf16.msra.mxu1 %v4128_v27  ;;  %v4508_v24 = vpop.permute.xlu1 %4507  ;;  %v4498_v3 = vpop.permute.xlu0 %4497  ;;  %1871 = vmatprep.mubr.f32.mxu1 %v4863_v0  ;;  %v4058_v34 = vpack.c.bf16 %v788_v60, %v787_v59 }
 0x25f   : > { %v4510_v13 = vunpack.i.h.bf16 %v4508_v24  ;;  %v4509_v16 = vunpack.i.l.bf16 %v4508_v24  ;;  %v4500_v17 = vunpack.i.h.bf16 %v4498_v3  ;;  %v4499_v52 = vunpack.i.l.bf16 %v4498_v3 }
 0x260   : > { %4059 = vmatprep.subr.bf16.mxu0 %v4058_v34 }
 0x261   : > { %v1962_v18 = vsel %vm1958_vm4, %v4500_v17, %v4510_v13  ;;  %v1961_v46 = vsel %vm1958_vm4, %v4499_v52, %v4509_v16  ;;  %3923 = vmatmul.mubr.msk.f32.gmra.mrb[8].mxu1 %vm802_vm3, %v3911_v8  ;;  %4061 = vmatpush1.bf16.msra.mxu0 %v4060_v23  ;;  %v1969_v21 = vsel %vm1958_vm4, %v4509_v16, %v4499_v52  ;;  %v3822_v8 = vld [vmem:[%s6750_s3 + $0x70] sm:$0xff] }
 0x262   : > { %v4132_v27 = vpack.c.bf16 %v1962_v18, %v1961_v46  ;;  %v4518_v42 = vpop.permute.xlu1 %4517  ;;  %v4513_v49 = vpop.permute.xlu0 %4512  ;;  %4063 = vmatprep.subr.bf16.mxu0 %v4062_v7  ;;  %1877 = vmatprep.mubr.f32.mxu1 %v4863_v0  ;;  %v1970_v48 = vsel %vm1958_vm4, %v4510_v13, %v4500_v17  ;;  %v3821_v7 = vld [vmem:[%s6750_s3 + $0x68] sm:$0xff] }
 0x263   : > { %v4520_v31 = vunpack.i.h.bf16 %v4518_v42  ;;  %v4519_v2 = vunpack.i.l.bf16 %v4518_v42  ;;  %v4515_v11 = vunpack.i.h.bf16 %v4513_v49  ;;  %v4514_v57 = vunpack.i.l.bf16 %v4513_v49  ;;  %v3915_v42 = vld [vmem:[%s6750_s3 + $0x1d8] sm:$0xff] }
 0x264   : > { %3832 = vmatmul.mubr.msk.f32.vlgmr.msra.gmra.mrb[16].mxu0 %vm802_vm3, %v3820_v20  ;;  %v4130_v6 = vpack.c.bf16 %v1970_v48, %v1969_v21  ;;  %v3824_v48 = vld [vmem:[%s6750_s3 + $0x80] sm:$0xff] }
 0x265   : > { %v1964_v63 = vsel %vm1958_vm4, %v4515_v11, %v4520_v31  ;;  %v1963_v38 = vsel %vm1958_vm4, %v4514_v57, %v4519_v2  ;;  %3924 = vmatmul.mubr.msk.f32.gmra.mrb[10].mxu1 %vm802_vm3, %v3912_v28  ;;  %4065 = vmatpush1.bf16.msra.mxu0 %v4064_v22  ;;  %v1971_v56 = vsel %vm1958_vm4, %v4519_v2, %v4514_v57  ;;  %v3928_v57 = vld [vmem:[%s6750_s3 + $0x1e0] sm:$0xff] }
 0x266   : > { %v4136_v59 = vpack.c.bf16 %v1964_v63, %v1963_v38  ;;  %4131 = vmatprep.subr.bf16.mxu1 %v4130_v6  ;;  %v4528_v60 = vpop.permute.xlu1 %4527  ;;  %v4523_v23 = vpop.permute.xlu0 %4522  ;;  %4067 = vmatprep.subr.bf16.mxu0 %v4066_v51  ;;  %v1972_v35 = vsel %vm1958_vm4, %v4520_v31, %v4515_v11 }
 0x267   : > { %4133 = vmatpush1.bf16.msra.mxu1 %v4132_v27  ;;  %v4530_v22 = vunpack.i.h.bf16 %v4528_v60  ;;  %v4529_v24 = vunpack.i.l.bf16 %v4528_v60  ;;  %v4525_v3 = vunpack.i.h.bf16 %v4523_v23  ;;  %v4524_v34 = vunpack.i.l.bf16 %v4523_v23  ;;  %909 = vmatprep.mubr.f32.mxu0 %v4863_v0  ;;  %v3825_v60 = vld [vmem:[%s6750_s3 + $0x88] sm:$0xff] }
 0x268   : > { %1883 = vmatprep.mubr.f32.mxu1 %v4863_v0  ;;  %3833 = vmatmul.mubr.msk.f32.gmra.mrb[18].mxu0 %vm802_vm3, %v3821_v7  ;;  %v4134_v19 = vpack.c.bf16 %v1972_v35, %v1971_v56 }
 0x269   : > { %v1966_v25 = vsel %vm1958_vm4, %v4525_v3, %v4530_v22  ;;  %v1965_v51 = vsel %vm1958_vm4, %v4524_v34, %v4529_v24  ;;  %3925 = vmatmul.mubr.msk.f32.gmra.mrb[12].mxu1 %vm802_vm3, %v3913_v58  ;;  %4069 = vmatpush1.bf16.msra.mxu0 %v4068_v1  ;;  %v1973_v13 = vsel %vm1958_vm4, %v4529_v24, %v4524_v34 }
 0x26a   : > { %v4140_v16 = vpack.c.bf16 %v1966_v25, %v1965_v51  ;;  %4135 = vmatprep.subr.bf16.mxu1 %v4134_v19  ;;  %v4538_v17 = vpop.permute.xlu1 %4537  ;;  %v4533_v52 = vpop.permute.xlu0 %4532  ;;  %4071 = vmatprep.subr.bf16.mxu0 %v4070_v44  ;;  %v1974_v12 = vsel %vm1958_vm4, %v4530_v22, %v4525_v3  ;;  %v3929_v22 = vld [vmem:[%s6750_s3 + $0x1e8] sm:$0xff] }
 0x26b   : > { %4137 = vmatpush1.bf16.msra.mxu1 %v4136_v59  ;;  %v4540_v1 = vunpack.i.h.bf16 %v4538_v17  ;;  %v4539_v18 = vunpack.i.l.bf16 %v4538_v17  ;;  %v4535_v46 = vunpack.i.h.bf16 %v4533_v52  ;;  %v4534_v20 = vunpack.i.l.bf16 %v4533_v52  ;;  %915 = vmatprep.mubr.f32.mxu0 %v4863_v0  ;;  %v3826_v17 = vld [vmem:[%s6750_s3 + $0x90] sm:$0xff] }
 0x26c   : > { %1889 = vmatprep.mubr.f32.mxu1 %v4863_v0  ;;  %3834 = vmatmul.mubr.msk.f32.gmra.mrb[20].mxu0 %vm802_vm3, %v3822_v8  ;;  %v4138_v41 = vpack.c.bf16 %v1974_v12, %v1973_v13 }
 0x26d   : > { %3926 = vmatmul.mubr.msk.f32.gmra.mrb[14].mxu1 %vm802_vm3, %v3914_v5  ;;  %4073 = vmatpush1.bf16.msra.mxu0 %v4072_v50  ;;  %v2226_v44 = vsel %vm2217_vm5, %v4539_v18, %v4534_v20  ;;  %v2227_v54 = vsel %vm2217_vm5, %v4540_v1, %v4535_v46  ;;  %v2219_v10 = vsel %vm2217_vm5, %v4535_v46, %v4540_v1  ;;  %v3930_v1 = vld [vmem:[%s6750_s3 + $0x1f0] sm:$0xff] }
 0x26e   : > { %4139 = vmatprep.subr.bf16.mxu1 %v4138_v41  ;;  %v4548_v21 = vpop.permute.xlu1 %4547  ;;  %v4543_v27 = vpop.permute.xlu0 %4542  ;;  %4075 = vmatprep.subr.bf16.mxu0 %v4074_v45  ;;  %v4142_v4 = vpack.c.bf16 %v2227_v54, %v2226_v44  ;;  %v2218_v45 = vsel %vm2217_vm5, %v4534_v20, %v4539_v18  ;;  %v3827_v54 = vld [vmem:[%s6750_s3 + $0x98] sm:$0xff] }
 0x26f   : > { %4141 = vmatpush1.bf16.msra.mxu1 %v4140_v16  ;;  %v4550_v9 = vunpack.i.h.bf16 %v4548_v21  ;;  %v4549_v50 = vunpack.i.l.bf16 %v4548_v21  ;;  %v4545_v49 = vunpack.i.h.bf16 %v4543_v27  ;;  %v4544_v28 = vunpack.i.l.bf16 %v4543_v27  ;;  %921 = vmatprep.mubr.f32.mxu0 %v4863_v0 }
 0x270   : > { %1895 = vmatprep.mubr.f32.mxu1 %v4863_v0  ;;  %3835 = vmatmul.mubr.msk.f32.gmra.mrb[22].mxu0 %vm802_vm3, %v3823_v47  ;;  %v4144_v38 = vpack.c.bf16 %v2219_v10, %v2218_v45 }
 0x271   : > { %3927 = vmatmul.mubr.msk.f32.gmra.mrb[16].mxu1 %vm802_vm3, %v3915_v42  ;;  %4077 = vmatpush1.bf16.msra.mxu0 %v4076_v53  ;;  %v2228_v31 = vsel %vm2217_vm5, %v4549_v50, %v4544_v28  ;;  %v2229_v36 = vsel %vm2217_vm5, %v4550_v9, %v4545_v49  ;;  %v2221_v56 = vsel %vm2217_vm5, %v4545_v49, %v4550_v9 }
 0x272   : > { %4143 = vmatprep.subr.bf16.mxu1 %v4142_v4  ;;  %v4558_v2 = vpop.permute.xlu1 %4557  ;;  %v4553_v11 = vpop.permute.xlu0 %4552  ;;  %927 = vmatprep.mubr.f32.mxu0 %v4863_v0  ;;  %v4146_v7 = vpack.c.bf16 %v2229_v36, %v2228_v31  ;;  %v2220_v59 = vsel %vm2217_vm5, %v4544_v28, %v4549_v50  ;;  %v3931_v4 = vld [vmem:[%s6750_s3 + $0x1f8] sm:$0xff] }
 0x273   : > { %v4560_v43 = vunpack.i.h.bf16 %v4558_v2  ;;  %v4559_v53 = vunpack.i.l.bf16 %v4558_v2  ;;  %v4555_v6 = vunpack.i.h.bf16 %v4553_v11  ;;  %v4554_v63 = vunpack.i.l.bf16 %v4553_v11  ;;  %2088 = vmatprep.mubr.f32.mxu1 %v4863_v0  ;;  %v3932_v11 = vld [vmem:[%s6750_s3 + $0x200] sm:$0xff] }
 0x274   : > { %3836 = vmatmul.mubr.msk.f32.gmra.mrb[24].mxu0 %vm802_vm3, %v3824_v48  ;;  %v4148_v51 = vpack.c.bf16 %v2221_v56, %v2220_v59  ;;  %v3828_v48 = vld [vmem:[%s6750_s3 + $0xa0] sm:$0xff]  ;;  %v3830_v56 = vld [vmem:[%s6750_s3 + $0xb0] sm:$0xff] }
 0x275   : > { %3940 = vmatmul.mubr.msk.f32.vlgmr.msra.gmra.mrb[18].mxu1 %vm802_vm3, %v3928_v57  ;;  %933 = vmatprep.mubr.f32.mxu0 %v4863_v0  ;;  %v2230_v23 = vsel %vm2217_vm5, %v4559_v53, %v4554_v63  ;;  %v2231_v24 = vsel %vm2217_vm5, %v4560_v43, %v4555_v6  ;;  %v2223_v13 = vsel %vm2217_vm5, %v4555_v6, %v4560_v43  ;;  %v3829_v57 = vld [vmem:[%s6750_s3 + $0xa8] sm:$0xff] }
 0x276   : > { %4145 = vmatpush1.bf16.msra.mxu1 %v4144_v38  ;;  %v4568_v58 = vpop.permute.xlu1 %4567  ;;  %v4563_v35 = vpop.permute.xlu0 %4562  ;;  %2094 = vmatprep.mubr.f32.mxu1 %v4863_v0  ;;  %v4150_v8 = vpack.c.bf16 %v2231_v24, %v2230_v23  ;;  %v2222_v16 = vsel %vm2217_vm5, %v4554_v63, %v4559_v53  ;;  %v3933_v53 = vld [vmem:[%s6750_s3 + $0x208] sm:$0xff] }
 0x277   : > { %4147 = vmatprep.subr.bf16.mxu1 %v4146_v7  ;;  %v4570_v3 = vunpack.i.h.bf16 %v4568_v58  ;;  %v4569_v34 = vunpack.i.l.bf16 %v4568_v58  ;;  %v4565_v19 = vunpack.i.h.bf16 %v4563_v35  ;;  %v4564_v25 = vunpack.i.l.bf16 %v4563_v35  ;;  %v3934_v58 = vld [vmem:[%s6750_s3 + $0x210] sm:$0xff] }
 0x278   : > { %3837 = vmatmul.mubr.msk.f32.gmra.mrb[26].mxu0 %vm802_vm3, %v3825_v60  ;;  %v4152_v44 = vpack.c.bf16 %v2223_v13, %v2222_v16  ;;  %v3935_v13 = vld [vmem:[%s6750_s3 + $0x218] sm:$0xff] }
 0x279   : > { %3941 = vmatmul.mubr.msk.f32.gmra.mrb[20].mxu1 %vm802_vm3, %v3929_v22  ;;  %939 = vmatprep.mubr.f32.mxu0 %v4863_v0  ;;  %v2232_v52 = vsel %vm2217_vm5, %v4569_v34, %v4564_v25  ;;  %v2233_v18 = vsel %vm2217_vm5, %v4570_v3, %v4565_v19  ;;  %v2225_v27 = vsel %vm2217_vm5, %v4565_v19, %v4570_v3 }
 0x27a   : > { %4149 = vmatpush1.bf16.msra.mxu1 %v4148_v51  ;;  %v5576_v5 = vpop.permute.xlu1 %4577  ;;  %v5579_v12 = vpop.permute.xlu0 %4572  ;;  %2100 = vmatprep.mubr.f32.mxu1 %v4863_v0  ;;  %v4154_v21 = vpack.c.bf16 %v2233_v18, %v2232_v52  ;;  %v2224_v42 = vsel %vm2217_vm5, %v4564_v25, %v4569_v34  ;;  %v3831_v25 = vld [vmem:[%s6750_s3 + $0xb8] sm:$0xff] }
 0x27b   : > { %4151 = vmatprep.subr.bf16.mxu1 %v4150_v8  ;;  %v4580_v46 = vunpack.i.h.bf16 %v5576_v5  ;;  %v4579_v20 = vunpack.i.l.bf16 %v5576_v5  ;;  %v4575_v41 = vunpack.i.h.bf16 %v5579_v12  ;;  %v4574_v47 = vunpack.i.l.bf16 %v5579_v12  ;;  %v726_v5 = vld [vmem:[%s6750_s3] sm:$0xff] }
 0x27c   : > { %3838 = vmatmul.mubr.msk.f32.gmra.mrb[28].mxu0 %vm802_vm3, %v3826_v17  ;;  %v4156_v10 = vpack.c.bf16 %v2225_v27, %v2224_v42 }
 0x27d   : > { %3942 = vmatmul.mubr.msk.f32.gmra.mrb[22].mxu1 %vm802_vm3, %v3930_v1  ;;  %945 = vmatprep.mubr.f32.mxu0 %v4863_v0  ;;  %v1190_v9 = vsel %vm1181_vm6, %v4579_v20, %v4574_v47  ;;  %v1191_v28 = vsel %vm1181_vm6, %v4580_v46, %v4575_v41  ;;  %v1183_v16 = vsel %vm1181_vm6, %v4575_v41, %v4580_v46 }
 0x27e   : > { %4153 = vmatpush1.bf16.msra.mxu1 %v4152_v44  ;;  %v5607_v50 = vpop.permute.xlu1 %4587  ;;  %v5609_v49 = vpop.permute.xlu0 %4582  ;;  %2106 = vmatprep.mubr.f32.mxu1 %v4863_v0  ;;  %v4078_v45 = vpack.c.bf16 %v1191_v28, %v1190_v9  ;;  %v1182_v17 = vsel %vm1181_vm6, %v4574_v47, %v4579_v20  ;;  %v3936_v47 = vld [vmem:[%s6750_s3 + $0x220] sm:$0xff] }
 0x27f   : > { %4155 = vmatprep.subr.bf16.mxu1 %v4154_v21  ;;  %v4590_v24 = vunpack.i.h.bf16 %v5607_v50  ;;  %v4589_v3 = vunpack.i.l.bf16 %v5607_v50  ;;  %v4585_v34 = vunpack.i.h.bf16 %v5609_v49  ;;  %v4584_v19 = vunpack.i.l.bf16 %v5609_v49 }
 0x280   : > { %3839 = vmatmul.mubr.msk.f32.gmra.mrb[30].mxu0 %vm802_vm3, %v3827_v54  ;;  %4079 = vmatprep.subr.bf16.mxu0 %v4078_v45  ;;  %v4080_v21 = vpack.c.bf16 %v1183_v16, %v1182_v17  ;;  %v727_v45 = vld [vmem:[%s6750_s3 + $0x8] sm:$0xff] }
 0x281   : > { %3943 = vmatmul.mubr.msk.f32.gmra.mrb[0].mxu1 %vm802_vm3, %v3931_v4  ;;  %951 = vmatprep.mubr.f32.mxu0 %v4863_v0  ;;  %v1192_v12 = vsel %vm1181_vm6, %v4589_v3, %v4584_v19  ;;  %v1193_v46 = vsel %vm1181_vm6, %v4590_v24, %v4585_v34  ;;  %v1185_v27 = vsel %vm1181_vm6, %v4585_v34, %v4590_v24  ;;  %v3938_v24 = vld [vmem:[%s6750_s3 + $0x230] sm:$0xff] }
 0x282   : > { %4157 = vmatpush1.bf16.msra.mxu1 %v4156_v10  ;;  %v5627_v31 = vpop.permute.xlu1 %4597  ;;  %v5629_v2 = vpop.permute.xlu0 %4592  ;;  %2112 = vmatprep.mubr.f32.mxu1 %v4863_v0  ;;  %v1184_v42 = vsel %vm1181_vm6, %v4584_v19, %v4589_v3  ;;  %v4082_v54 = vpack.c.bf16 %v1193_v46, %v1192_v12 }
 0x283   : > { %v4600_v52 = vunpack.i.h.bf16 %v5627_v31  ;;  %v4599_v1 = vunpack.i.l.bf16 %v5627_v31  ;;  %v4595_v18 = vunpack.i.h.bf16 %v5629_v2  ;;  %v4594_v44 = vunpack.i.l.bf16 %v5629_v2  ;;  %v3937_v2 = vld [vmem:[%s6750_s3 + $0x228] sm:$0xff] }
 0x284   : > { %3840 = vmatmul.mubr.msk.f32.gmra.mrb[32].mxu0 %vm802_vm3, %v3828_v48 }
 0x285   : > { %3944 = vmatmul.mubr.msk.f32.gmra.mrb[2].mxu1 %vm802_vm3, %v3932_v11  ;;  %957 = vmatprep.mubr.f32.mxu0 %v4863_v0  ;;  %v1194_v9 = vsel %vm1181_vm6, %v4599_v1, %v4594_v44  ;;  %v1195_v50 = vsel %vm1181_vm6, %v4600_v52, %v4595_v18  ;;  %v4084_v11 = vpack.c.bf16 %v1185_v27, %v1184_v42 }
 0x286   : > { %v5641_v36 = vpop.permute.xlu1 %4607  ;;  %v5644_v43 = vpop.permute.xlu0 %4602  ;;  %2118 = vmatprep.mubr.f32.mxu1 %v4863_v0 }
 0x287   : > { %v4610_v6 = vunpack.i.h.bf16 %v5641_v36  ;;  %v4609_v63 = vunpack.i.l.bf16 %v5641_v36  ;;  %v4605_v38 = vunpack.i.h.bf16 %v5644_v43  ;;  %v4604_v7 = vunpack.i.l.bf16 %v5644_v43 }
 0x288   : > { %3841 = vmatmul.mubr.msk.f32.gmra.mrb[34].mxu0 %vm802_vm3, %v3829_v57  ;;  %v1187_v57 = vsel %vm1181_vm6, %v4595_v18, %v4600_v52 }
 0x289   : > { %3945 = vmatmul.mubr.msk.f32.gmra.mrb[4].mxu1 %vm802_vm3, %v3933_v53  ;;  %963 = vmatprep.mubr.f32.mxu0 %v4863_v0  ;;  %v2485_v59 = vsel %vm2476_vm7, %v4609_v63, %v4604_v7  ;;  %v2486_v35 = vsel %vm2476_vm7, %v4610_v6, %v4605_v38  ;;  %v1186_v53 = vsel %vm1181_vm6, %v4594_v44, %v4599_v1 }
 0x28a   : > { %v5666_v60 = vpop.permute.xlu1 %4622  ;;  %v5668_v23 = vpop.permute.xlu0 %4612  ;;  %2124 = vmatprep.mubr.f32.mxu1 %v4863_v0  ;;  %v4158_v22 = vpack.c.bf16 %v2486_v35, %v2485_v59  ;;  %v728_v59 = vld [vmem:[%s6750_s3 + $0x10] sm:$0xff]  ;;  %v2478_v27 = vsel %vm2476_vm7, %v4605_v38, %v4610_v6 }
 0x28b   : > { %v4625_v49 = vunpack.i.h.bf16 %v5666_v60  ;;  %v4624_v28 = vunpack.i.l.bf16 %v5666_v60  ;;  %v4615_v4 = vunpack.i.h.bf16 %v5668_v23  ;;  %v4614_v10 = vunpack.i.l.bf16 %v5668_v23 }
 0x28c   : > { %3842 = vmatmul.mubr.msk.f32.gmra.mrb[36].mxu0 %vm802_vm3, %v3830_v56  ;;  %4159 = vmatprep.subr.bf16.mxu1 %v4158_v22  ;;  %v4086_v56 = vpack.c.bf16 %v1195_v50, %v1194_v9  ;;  %v730_v9 = vld [vmem:[%s6750_s3 + $0x20] sm:$0xff] }
 0x28d   : > { %3946 = vmatmul.mubr.msk.f32.gmra.mrb[6].mxu1 %vm802_vm3, %v3934_v58  ;;  %969 = vmatprep.mubr.f32.mxu0 %v4863_v0  ;;  %v1196_v60 = vsel %vm1181_vm6, %v4624_v28, %v4614_v10  ;;  %v1197_v23 = vsel %vm1181_vm6, %v4625_v49, %v4615_v4  ;;  %v4088_v58 = vpack.c.bf16 %v1187_v57, %v1186_v53  ;;  %v731_v53 = vld [vmem:[%s6750_s3 + $0x28] sm:$0xff] }
 0x28e   : > { %v5690_v51 = vpop.permute.xlu1 %4627  ;;  %v5692_v8 = vpop.permute.xlu0 %4617  ;;  %2130 = vmatprep.mubr.f32.mxu1 %v4863_v0  ;;  %v1188_v16 = vsel %vm1181_vm6, %v4614_v10, %v4624_v28  ;;  %v4090_v52 = vpack.c.bf16 %v1197_v23, %v1196_v60  ;;  %v3952_v28 = vld [vmem:[%s6750_s3 + $0x240] sm:$0xff] }
 0x28f   : > { %v4630_v17 = vunpack.i.h.bf16 %v5690_v51  ;;  %v4629_v1 = vunpack.i.l.bf16 %v5690_v51  ;;  %v4620_v18 = vunpack.i.h.bf16 %v5692_v8  ;;  %v4619_v44 = vunpack.i.l.bf16 %v5692_v8  ;;  %v3939_v8 = vld [vmem:[%s6750_s3 + $0x238] sm:$0xff] }
 0x290   : > { %3843 = vmatmul.mubr.msk.f32.gmra.mrb[38].mxu0 %vm802_vm3, %v3831_v25 }
 0x291   : > { %3947 = vmatmul.mubr.msk.f32.gmra.mrb[8].mxu1 %vm802_vm3, %v3935_v13  ;;  %1076 = vmatprep.mubr.f32.mxu0 %v4863_v0  ;;  %v1189_v13 = vsel %vm1181_vm6, %v4615_v4, %v4625_v49  ;;  %v2487_v6 = vsel %vm2476_vm7, %v4629_v1, %v4619_v44  ;;  %v2488_v38 = vsel %vm2476_vm7, %v4630_v17, %v4620_v18 }
 0x292   : > { %v5724_v20 = vpop.permute.xlu1 %4637  ;;  %v5726_v41 = vpop.permute.xlu0 %4632  ;;  %2136 = vmatprep.mubr.f32.mxu1 %v4863_v0  ;;  %v4162_v10 = vpack.c.bf16 %v2488_v38, %v2487_v6 }
 0x293   : > { %v4640_v36 = vunpack.i.h.bf16 %v5724_v20  ;;  %v4639_v43 = vunpack.i.l.bf16 %v5724_v20  ;;  %v4635_v50 = vunpack.i.h.bf16 %v5726_v41  ;;  %v2480_v20 = vsel %vm2476_vm7, %v4620_v18, %v4630_v17 }
 0x294   : > { %3844 = vmatmul.mubr.msk.f32.vlgmr.msra.gmra.mrb[16].mxu0 %vm802_vm3, %v726_v5  ;;  %v729_v5 = vld [vmem:[%s6750_s3 + $0x18] sm:$0xff] }
 0x295   : > { %4081 = vmatpush1.bf16.msra.mxu0 %v4080_v21  ;;  %3948 = vmatmul.mubr.msk.f32.gmra.mrb[10].mxu1 %vm802_vm3, %v3936_v47  ;;  %v4092_v21 = vpack.c.bf16 %v1189_v13, %v1188_v16  ;;  %v732_v16 = vld [vmem:[%s6750_s3 + $0x30] sm:$0xff] }
 0x296   : > { %4083 = vmatprep.subr.bf16.mxu0 %v4082_v54  ;;  %v5749_v48 = vpop.permute.xlu1 %4647  ;;  %v5751_v31 = vpop.permute.xlu0 %4642  ;;  %1082 = vmatprep.mubr.f32.mxu0 %v4863_v0  ;;  %v2477_v54 = vsel %vm2476_vm7, %v4604_v7, %v4609_v63  ;;  %v4634_v63 = vunpack.i.l.bf16 %v5726_v41  ;;  %v2479_v41 = vsel %vm2476_vm7, %v4619_v44, %v4629_v1 }
 0x297   : > { %2142 = vmatprep.mubr.f32.mxu1 %v4863_v0  ;;  %v4160_v4 = vpack.c.bf16 %v2478_v27, %v2477_v54  ;;  %v4644_v57 = vunpack.i.l.bf16 %v5751_v31  ;;  %v4164_v23 = vpack.c.bf16 %v2480_v20, %v2479_v41  ;;  %v3955_v54 = vld [vmem:[%s6750_s3 + $0x258] sm:$0xff]  ;;  %v3958_v20 = vld [vmem:[%s6750_s3 + $0x270] sm:$0xff] }
 0x298   : > { %3845 = vmatmul.mubr.msk.f32.gmra.mrb[18].mxu0 %vm802_vm3, %v727_v45  ;;  %v4650_v45 = vunpack.i.h.bf16 %v5749_v48 }
 0x299   : > { %4085 = vmatpush1.bf16.msra.mxu0 %v4084_v11  ;;  %3949 = vmatmul.mubr.msk.f32.gmra.mrb[12].mxu1 %vm802_vm3, %v3937_v2  ;;  %v4649_v2 = vunpack.i.l.bf16 %v5749_v48  ;;  %v4645_v11 = vunpack.i.h.bf16 %v5751_v31  ;;  %v2489_v48 = vsel %vm2476_vm7, %v4639_v43, %v4634_v63  ;;  %v2490_v31 = vsel %vm2476_vm7, %v4640_v36, %v4635_v50 }
 0x29a   : > { %4087 = vmatprep.subr.bf16.mxu0 %v4086_v56  ;;  %v5771_v35 = vpop.permute.xlu1 %4657  ;;  %v5774_v22 = vpop.permute.xlu0 %4652  ;;  %1088 = vmatprep.mubr.f32.mxu0 %v4863_v0  ;;  %v3953_v56 = vld [vmem:[%s6750_s3 + $0x248] sm:$0xff]  ;;  %v4166_v13 = vpack.c.bf16 %v2490_v31, %v2489_v48 }
 0x29b   : > { %v4660_v3 = vunpack.i.h.bf16 %v5771_v35  ;;  %v4659_v34 = vunpack.i.l.bf16 %v5771_v35  ;;  %v4655_v19 = vunpack.i.h.bf16 %v5774_v22  ;;  %v4654_v25 = vunpack.i.l.bf16 %v5774_v22  ;;  %2148 = vmatprep.mubr.f32.mxu1 %v4863_v0  ;;  %v3856_v35 = vld [vmem:[%s6750_s3 + $0xc0] sm:$0xff] }
 0x29c   : > { %3846 = vmatmul.mubr.msk.f32.gmra.mrb[20].mxu0 %vm802_vm3, %v728_v59  ;;  %v2491_v17 = vsel %vm2476_vm7, %v4649_v2, %v4644_v57 }
 0x29d   : > { %4089 = vmatpush1.bf16.msra.mxu0 %v4088_v58  ;;  %3950 = vmatmul.mubr.msk.f32.gmra.mrb[14].mxu1 %vm802_vm3, %v3938_v24  ;;  %v1449_v12 = vsel %vm1440_vm8, %v4659_v34, %v4654_v25  ;;  %v1450_v47 = vsel %vm1440_vm8, %v4660_v3, %v4655_v19  ;;  %v2482_v58 = vsel %vm2476_vm7, %v4635_v50, %v4640_v36  ;;  %v3956_v50 = vld [vmem:[%s6750_s3 + $0x260] sm:$0xff] }
 0x29e   : > { %4091 = vmatprep.subr.bf16.mxu0 %v4090_v52  ;;  %v5804_v51 = vpop.permute.xlu1 %4667  ;;  %v5806_v46 = vpop.permute.xlu0 %4662  ;;  %1094 = vmatprep.mubr.f32.mxu0 %v4863_v0  ;;  %v4094_v42 = vpack.c.bf16 %v1450_v47, %v1449_v12  ;;  %v2481_v24 = vsel %vm2476_vm7, %v4634_v63, %v4639_v43  ;;  %v2492_v52 = vsel %vm2476_vm7, %v4650_v45, %v4645_v11  ;;  %v3954_v12 = vld [vmem:[%s6750_s3 + $0x250] sm:$0xff]  ;;  %v734_v43 = vld [vmem:[%s6750_s3 + $0x40] sm:$0xff]  ;;  %v735_v63 = vld [vmem:[%s6750_s3 + $0x48] sm:$0xff] }
 0x29f   : > { %2154 = vmatprep.mubr.f32.mxu1 %v4863_v0  ;;  %v2484_v47 = vsel %vm2476_vm7, %v4645_v11, %v4650_v45  ;;  %v4170_v27 = vpack.c.bf16 %v2492_v52, %v2491_v17  ;;  %v4670_v41 = vunpack.i.h.bf16 %v5804_v51  ;;  %v4665_v45 = vunpack.i.h.bf16 %v5806_v46  ;;  %v737_v11 = vld [vmem:[%s6750_s3 + $0x58] sm:$0xff] }
 0x2a0   : > { %3847 = vmatmul.mubr.msk.f32.gmra.mrb[22].mxu0 %vm802_vm3, %v729_v5 }
 0x2a1   : > { %4093 = vmatpush1.bf16.msra.mxu0 %v4092_v21  ;;  %3951 = vmatmul.mubr.msk.f32.gmra.mrb[16].mxu1 %vm802_vm3, %v3939_v8  ;;  %v4168_v8 = vpack.c.bf16 %v2482_v58, %v2481_v24  ;;  %v2483_v21 = vsel %vm2476_vm7, %v4644_v57, %v4649_v2  ;;  %v4664_v2 = vunpack.i.l.bf16 %v5806_v46  ;;  %v3959_v57 = vld [vmem:[%s6750_s3 + $0x278] sm:$0xff]  ;;  %v1441_v46 = vsel %vm1440_vm8, %v4654_v25, %v4659_v34  ;;  %v3960_v34 = vld [vmem:[%s6750_s3 + $0x280] sm:$0xff] }
 0x2a2   : > { %4095 = vmatprep.subr.bf16.mxu0 %v4094_v42  ;;  %v5844_v7 = vpop.permute.xlu1 %4677  ;;  %v5846_v49 = vpop.permute.xlu0 %4672  ;;  %1100 = vmatprep.mubr.f32.mxu0 %v4863_v0  ;;  %v733_v42 = vld [vmem:[%s6750_s3 + $0x38] sm:$0xff]  ;;  %v4172_v38 = vpack.c.bf16 %v2484_v47, %v2483_v21  ;;  %v1444_v25 = vsel %vm1440_vm8, %v4665_v45, %v4670_v41  ;;  %v3961_v47 = vld [vmem:[%s6750_s3 + $0x288] sm:$0xff] }
 0x2a3   : > { %2347 = vmatprep.mubr.f32.mxu1 %v4863_v0  ;;  %v4675_v48 = vunpack.i.h.bf16 %v5846_v49  ;;  %v4674_v31 = vunpack.i.l.bf16 %v5846_v49 }
 0x2a4   : > { %3848 = vmatmul.mubr.msk.f32.gmra.mrb[24].mxu0 %vm802_vm3, %v730_v9 }
 0x2a5   : > { %3964 = vmatmul.mubr.msk.f32.vlgmr.msra.gmra.mrb[18].mxu1 %vm802_vm3, %v3952_v28  ;;  %1106 = vmatprep.mubr.f32.mxu0 %v4863_v0  ;;  %v3957_v28 = vld [vmem:[%s6750_s3 + $0x268] sm:$0xff] }
 0x2a6   : > { %4161 = vmatpush1.bf16.msra.mxu1 %v4160_v4  ;;  %2353 = vmatprep.mubr.f32.mxu1 %v4863_v0  ;;  %v5875_v59 = vpop.permute.xlu1 %4687  ;;  %v5877_v60 = vpop.permute.xlu0 %4682  ;;  %v736_v4 = vld [vmem:[%s6750_s3 + $0x50] sm:$0xff] }
 0x2a7   : > { %4163 = vmatprep.subr.bf16.mxu1 %v4162_v10  ;;  %v4690_v1 = vunpack.i.h.bf16 %v5875_v59  ;;  %v4689_v18 = vunpack.i.l.bf16 %v5875_v59  ;;  %v4685_v44 = vunpack.i.h.bf16 %v5877_v60  ;;  %v4684_v5 = vunpack.i.l.bf16 %v5877_v60  ;;  %v3976_v59 = vld [vmem:[%s6750_s3 + $0x2a0] sm:$0xff] }
 0x2a8   : > { %3849 = vmatmul.mubr.msk.f32.gmra.mrb[26].mxu0 %vm802_vm3, %v731_v53  ;;  %v4669_v10 = vunpack.i.l.bf16 %v5804_v51  ;;  %v1442_v51 = vsel %vm1440_vm8, %v4655_v19, %v4660_v3  ;;  %v4680_v53 = vunpack.i.h.bf16 %v5844_v7  ;;  %v1452_v3 = vsel %vm1440_vm8, %v4670_v41, %v4665_v45  ;;  %v3859_v45 = vld [vmem:[%s6750_s3 + $0xd8] sm:$0xff] }
 0x2a9   : > { %3965 = vmatmul.mubr.msk.f32.gmra.mrb[20].mxu1 %vm802_vm3, %v3953_v56  ;;  %1112 = vmatprep.mubr.f32.mxu0 %v4863_v0  ;;  %v2744_v9 = vsel %vm2735_vm9, %v4689_v18, %v4684_v5  ;;  %v2745_v6 = vsel %vm2735_vm9, %v4690_v1, %v4685_v44  ;;  %v4679_v56 = vunpack.i.l.bf16 %v5844_v7  ;;  %v4096_v19 = vpack.c.bf16 %v1442_v51, %v1441_v46  ;;  %v3963_v46 = vld [vmem:[%s6750_s3 + $0x298] sm:$0xff] }
 0x2aa   : > { %4165 = vmatpush1.bf16.msra.mxu1 %v4164_v23  ;;  %2359 = vmatprep.mubr.f32.mxu1 %v4863_v0  ;;  %v4174_v36 = vpack.c.bf16 %v2745_v6, %v2744_v9  ;;  %v4703_v23 = vpop.permute.xlu1 %4702  ;;  %v4693_v58 = vpop.permute.xlu0 %4692  ;;  %v1451_v22 = vsel %vm1440_vm8, %v4669_v10, %v4664_v2  ;;  %v1443_v7 = vsel %vm1440_vm8, %v4664_v2, %v4669_v10 }
 0x2ab   : > { %4167 = vmatprep.subr.bf16.mxu1 %v4166_v13  ;;  %v4098_v49 = vpack.c.bf16 %v1452_v3, %v1451_v22  ;;  %v1453_v24 = vsel %vm1440_vm8, %v4679_v56, %v4674_v31  ;;  %v1454_v13 = vsel %vm1440_vm8, %v4680_v53, %v4675_v48  ;;  %v4704_v17 = vunpack.i.l.bf16 %v4703_v23 }
 0x2ac   : > { %3850 = vmatmul.mubr.msk.f32.gmra.mrb[28].mxu0 %vm802_vm3, %v732_v16  ;;  %v4705_v16 = vunpack.i.h.bf16 %v4703_v23  ;;  %v4695_v52 = vunpack.i.h.bf16 %v4693_v58  ;;  %v4100_v21 = vpack.c.bf16 %v1444_v25, %v1443_v7  ;;  %v1445_v9 = vsel %vm1440_vm8, %v4674_v31, %v4679_v56 }
 0x2ad   : > { %3966 = vmatmul.mubr.msk.f32.gmra.mrb[22].mxu1 %vm802_vm3, %v3954_v12  ;;  %1118 = vmatprep.mubr.f32.mxu0 %v4863_v0  ;;  %v4694_v12 = vunpack.i.l.bf16 %v4693_v58  ;;  %v4102_v6 = vpack.c.bf16 %v1454_v13, %v1453_v24  ;;  %v2737_v56 = vsel %vm2735_vm9, %v4685_v44, %v4690_v1  ;;  %v3860_v1 = vld [vmem:[%s6750_s3 + $0xe0] sm:$0xff] }
 0x2ae   : > { %4169 = vmatpush1.bf16.msra.mxu1 %v4168_v8  ;;  %2365 = vmatprep.mubr.f32.mxu1 %v4863_v0  ;;  %v3857_v8 = vld [vmem:[%s6750_s3 + $0xc8] sm:$0xff] }
 0x2af   : > { %4171 = vmatprep.subr.bf16.mxu1 %v4170_v27  ;;  %v4708_v27 = vpop.permute.xlu1 %4707 }
 0x2b0   : > { %3851 = vmatmul.mubr.msk.f32.gmra.mrb[30].mxu0 %vm802_vm3, %v733_v42  ;;  %v4698_v42 = vpop.permute.xlu0 %4697  ;;  %v4710_v2 = vunpack.i.h.bf16 %v4708_v27 }
 0x2b1   : > { %3967 = vmatmul.mubr.msk.f32.gmra.mrb[0].mxu1 %vm802_vm3, %v3955_v54  ;;  %1124 = vmatprep.mubr.f32.mxu0 %v4863_v0  ;;  %v1446_v54 = vsel %vm1440_vm8, %v4675_v48, %v4680_v53  ;;  %v4699_v51 = vunpack.i.l.bf16 %v4698_v42  ;;  %v2736_v48 = vsel %vm2735_vm9, %v4684_v5, %v4689_v18 }
 0x2b2   : > { %4173 = vmatpush1.bf16.msra.mxu1 %v4172_v38  ;;  %2371 = vmatprep.mubr.f32.mxu1 %v4863_v0  ;;  %v3858_v38 = vld [vmem:[%s6750_s3 + $0xd0] sm:$0xff]  ;;  %v4176_v22 = vpack.c.bf16 %v2737_v56, %v2736_v48 }
 0x2b3   : > { %4175 = vmatprep.subr.bf16.mxu1 %v4174_v36  ;;  %v1455_v36 = vsel %vm1440_vm8, %v4704_v17, %v4694_v12  ;;  %v4718_v41 = vpop.permute.xlu1 %4717  ;;  %v3886_v56 = vld [vmem:[%s6750_s3 + $0x150] sm:$0xff] }
 0x2b4   : > { %3852 = vmatmul.mubr.msk.f32.gmra.mrb[32].mxu0 %vm802_vm3, %v734_v43  ;;  %v1456_v43 = vsel %vm1440_vm8, %v4705_v16, %v4695_v52  ;;  %v4713_v10 = vpop.permute.xlu0 %4712  ;;  %v4720_v31 = vunpack.i.h.bf16 %v4718_v41  ;;  %v4719_v23 = vunpack.i.l.bf16 %v4718_v41  ;;  %v3866_v41 = vld [vmem:[%s6750_s3 + $0x110] sm:$0xff] }
 0x2b5   : > { %3968 = vmatmul.mubr.msk.f32.gmra.mrb[2].mxu1 %vm802_vm3, %v3956_v50  ;;  %1130 = vmatprep.mubr.f32.mxu0 %v4863_v0  ;;  %v3962_v50 = vld [vmem:[%s6750_s3 + $0x290] sm:$0xff]  ;;  %v4715_v58 = vunpack.i.h.bf16 %v4713_v10 }
 0x2b6   : > { %2377 = vmatprep.mubr.f32.mxu1 %v4863_v0  ;;  %v4002_v48 = vld [vmem:[%s6750_s3 + $0x310] sm:$0xff] }
 0x2b7   : > { %v4728_v44 = vpop.permute.xlu1 %4727  ;;  %v2749_v7 = vsel %vm2735_vm9, %v4720_v31, %v4715_v58 }
 0x2b8   : > { %3853 = vmatmul.mubr.msk.f32.gmra.mrb[34].mxu0 %vm802_vm3, %v735_v63  ;;  %v4104_v63 = vpack.c.bf16 %v1446_v54, %v1445_v9  ;;  %v4723_v5 = vpop.permute.xlu0 %4722  ;;  %v4729_v24 = vunpack.i.l.bf16 %v4728_v44 }
 0x2b9   : > { %3969 = vmatmul.mubr.msk.f32.gmra.mrb[4].mxu1 %vm802_vm3, %v3957_v28  ;;  %1136 = vmatprep.mubr.f32.mxu0 %v4863_v0  ;;  %v1448_v28 = vsel %vm1440_vm8, %v4695_v52, %v4705_v16  ;;  %v4725_v13 = vunpack.i.h.bf16 %v4723_v5  ;;  %v4724_v16 = vunpack.i.l.bf16 %v4723_v5  ;;  %v4007_v5 = vld [vmem:[%s6750_s3 + $0x338] sm:$0xff] }
 0x2ba   : > { %2383 = vmatprep.mubr.f32.mxu1 %v4863_v0 }
 0x2bc   : > { %3854 = vmatmul.mubr.msk.f32.gmra.mrb[36].mxu0 %vm802_vm3, %v736_v4  ;;  %v1447_v4 = vsel %vm1440_vm8, %v4694_v12, %v4704_v17  ;;  %v3977_v17 = vld [vmem:[%s6750_s3 + $0x2a8] sm:$0xff]  ;;  %v2741_v12 = vsel %vm2735_vm9, %v4715_v58, %v4720_v31  ;;  %v3887_v31 = vld [vmem:[%s6750_s3 + $0x158] sm:$0xff]  ;;  %v3888_v58 = vld [vmem:[%s6750_s3 + $0x160] sm:$0xff] }
 0x2bd   : > { %3970 = vmatmul.mubr.msk.f32.gmra.mrb[6].mxu1 %vm802_vm3, %v3958_v20  ;;  %1142 = vmatprep.mubr.f32.mxu0 %v4863_v0  ;;  %v4106_v20 = vpack.c.bf16 %v1456_v43, %v1455_v36  ;;  %v4108_v53 = vpack.c.bf16 %v1448_v28, %v1447_v4  ;;  %v3863_v43 = vld [vmem:[%s6750_s3 + $0xf8] sm:$0xff]  ;;  %v3980_v28 = vld [vmem:[%s6750_s3 + $0x2c0] sm:$0xff]  ;;  %v3865_v4 = vld [vmem:[%s6750_s3 + $0x108] sm:$0xff] }
 0x2be   : > { %2389 = vmatprep.mubr.f32.mxu1 %v4863_v0 }
 0x2c0   : > { %3855 = vmatmul.mubr.msk.f32.gmra.mrb[38].mxu0 %vm802_vm3, %v737_v11  ;;  %v4709_v11 = vunpack.i.l.bf16 %v4708_v27  ;;  %v3978_v27 = vld [vmem:[%s6750_s3 + $0x2b0] sm:$0xff] }
 0x2c1   : > { %3971 = vmatmul.mubr.msk.f32.gmra.mrb[8].mxu1 %vm802_vm3, %v3959_v57  ;;  %1311 = vmatprep.mubr.f32.mxu0 %v4863_v0  ;;  %v4700_v57 = vunpack.i.h.bf16 %v4698_v42  ;;  %v2750_v42 = vsel %vm2735_vm9, %v4729_v24, %v4724_v16 }
 0x2c2   : > { %2395 = vmatprep.mubr.f32.mxu1 %v4863_v0  ;;  %v2746_v60 = vsel %vm2735_vm9, %v4709_v11, %v4699_v51  ;;  %v2738_v3 = vsel %vm2735_vm9, %v4699_v51, %v4709_v11  ;;  %v3880_v11 = vld [vmem:[%s6750_s3 + $0x120] sm:$0xff]  ;;  %v3881_v51 = vld [vmem:[%s6750_s3 + $0x128] sm:$0xff] }
 0x2c3   : > { %v2747_v18 = vsel %vm2735_vm9, %v4710_v2, %v4700_v57 }
 0x2c4   : > { %3868 = vmatmul.mubr.msk.f32.vlgmr.msra.gmra.mrb[16].mxu0 %vm802_vm3, %v3856_v35  ;;  %v4714_v35 = vunpack.i.l.bf16 %v4713_v10  ;;  %v3982_v10 = vld [vmem:[%s6750_s3 + $0x2d0] sm:$0xff] }
 0x2c5   : > { %4097 = vmatpush1.bf16.msra.mxu0 %v4096_v19  ;;  %3972 = vmatmul.mubr.msk.f32.gmra.mrb[10].mxu1 %vm802_vm3, %v3960_v34  ;;  %v4178_v34 = vpack.c.bf16 %v2747_v18, %v2746_v60  ;;  %v3861_v19 = vld [vmem:[%s6750_s3 + $0xe8] sm:$0xff]  ;;  %v3890_v60 = vld [vmem:[%s6750_s3 + $0x170] sm:$0xff] }
 0x2c6   : > { %4099 = vmatprep.subr.bf16.mxu0 %v4098_v49  ;;  %1317 = vmatprep.mubr.f32.mxu0 %v4863_v0  ;;  %v2748_v25 = vsel %vm2735_vm9, %v4719_v23, %v4714_v35  ;;  %v4730_v49 = vunpack.i.h.bf16 %v4728_v44  ;;  %v4006_v18 = vld [vmem:[%s6750_s3 + $0x330] sm:$0xff]  ;;  %v3891_v44 = vld [vmem:[%s6750_s3 + $0x178] sm:$0xff] }
 0x2c7   : > { %2401 = vmatprep.mubr.f32.mxu1 %v4863_v0 }
 0x2c8   : > { %3869 = vmatmul.mubr.msk.f32.gmra.mrb[18].mxu0 %vm802_vm3, %v3857_v8  ;;  %v2740_v8 = vsel %vm2735_vm9, %v4714_v35, %v4719_v23  ;;  %v2751_v54 = vsel %vm2735_vm9, %v4730_v49, %v4725_v13  ;;  %v4003_v23 = vld [vmem:[%s6750_s3 + $0x318] sm:$0xff]  ;;  %v4004_v35 = vld [vmem:[%s6750_s3 + $0x320] sm:$0xff] }
 0x2c9   : > { %4101 = vmatpush1.bf16.msra.mxu0 %v4100_v21  ;;  %3973 = vmatmul.mubr.msk.f32.gmra.mrb[12].mxu1 %vm802_vm3, %v3961_v47  ;;  %v4182_v47 = vpack.c.bf16 %v2749_v7, %v2748_v25  ;;  %v3862_v21 = vld [vmem:[%s6750_s3 + $0xf0] sm:$0xff]  ;;  %v4184_v9 = vpack.c.bf16 %v2741_v12, %v2740_v8  ;;  %v4186_v36 = vpack.c.bf16 %v2751_v54, %v2750_v42  ;;  %v4011_v7 = vld [vmem:[%s6750_s3 + $0x358] sm:$0xff] }
 0x2ca   : > { %4103 = vmatprep.subr.bf16.mxu0 %v4102_v6  ;;  %1323 = vmatprep.mubr.f32.mxu0 %v4863_v0  ;;  %v2743_v6 = vsel %vm2735_vm9, %v4725_v13, %v4730_v49  ;;  %v4010_v25 = vld [vmem:[%s6750_s3 + $0x350] sm:$0xff] }
 0x2cb   : > { %2407 = vmatprep.mubr.f32.mxu1 %v4863_v0 }
 0x2cc   : > { %3870 = vmatmul.mubr.msk.f32.gmra.mrb[20].mxu0 %vm802_vm3, %v3858_v38  ;;  %v2742_v38 = vsel %vm2735_vm9, %v4724_v16, %v4729_v24 }
 0x2cd   : > { %4105 = vmatpush1.bf16.msra.mxu0 %v4104_v63  ;;  %3974 = vmatmul.mubr.msk.f32.gmra.mrb[14].mxu1 %vm802_vm3, %v3962_v50  ;;  %v3979_v50 = vld [vmem:[%s6750_s3 + $0x2b8] sm:$0xff]  ;;  %v4188_v63 = vpack.c.bf16 %v2743_v6, %v2742_v38 }
 0x2ce   : > { %4107 = vmatprep.subr.bf16.mxu0 %v4106_v20  ;;  %1329 = vmatprep.mubr.f32.mxu0 %v4863_v0  ;;  %v3981_v20 = vld [vmem:[%s6750_s3 + $0x2c8] sm:$0xff] }
 0x2cf   : > { %2413 = vmatprep.mubr.f32.mxu1 %v4863_v0 }
 0x2d0   : > { %3871 = vmatmul.mubr.msk.f32.gmra.mrb[22].mxu0 %vm802_vm3, %v3859_v45  ;;  %v3867_v45 = vld [vmem:[%s6750_s3 + $0x118] sm:$0xff] }
 0x2d1   : > { %4109 = vmatpush1.bf16.msra.mxu0 %v4108_v53  ;;  %3975 = vmatmul.mubr.msk.f32.gmra.mrb[16].mxu1 %vm802_vm3, %v3963_v46  ;;  %v3985_v46 = vld [vmem:[%s6750_s3 + $0x2e8] sm:$0xff] }
 0x2d2   : > { %4111 = vmatprep.subr.bf16.mxu0 %v5288_v14  ;;  %1335 = vmatprep.mubr.f32.mxu0 %v4863_v0  ;;  %v2739_v14 = vsel %vm2735_vm9, %v4700_v57, %v4710_v2  ;;  %v3983_v2 = vld [vmem:[%s6750_s3 + $0x2d8] sm:$0xff]  ;;  %v3984_v57 = vld [vmem:[%s6750_s3 + $0x2e0] sm:$0xff]  ;;  %v4001_v53 = vld [vmem:[%s6750_s3 + $0x308] sm:$0xff] }
 0x2d3   : > { %2606 = vmatprep.mubr.f32.mxu1 %v4863_v0  ;;  %v4180_v52 = vpack.c.bf16 %v2739_v14, %v2738_v3  ;;  %v4008_v14 = vld [vmem:[%s6750_s3 + $0x340] sm:$0xff]  ;;  %v3905_v3 = vld [vmem:[%s6750_s3 + $0x188] sm:$0xff] }
 0x2d4   : > { %3872 = vmatmul.mubr.msk.f32.gmra.mrb[24].mxu0 %vm802_vm3, %v3860_v1  ;;  %v3889_v1 = vld [vmem:[%s6750_s3 + $0x168] sm:$0xff] }
 0x2d5   : > { %3988 = vmatmul.mubr.msk.f32.vlgmr.msra.gmra.mrb[18].mxu1 %vm802_vm3, %v3976_v59  ;;  %1341 = vmatprep.mubr.f32.mxu0 %v4863_v0  ;;  %v4005_v59 = vld [vmem:[%s6750_s3 + $0x328] sm:$0xff] }
 0x2d6   : > { %4177 = vmatpush1.bf16.msra.mxu1 %v4176_v22  ;;  %2612 = vmatprep.mubr.f32.mxu1 %v4863_v0  ;;  %v3904_v22 = vld [vmem:[%s6750_s3 + $0x180] sm:$0xff] }
 0x2d7   : > { %4179 = vmatprep.subr.bf16.mxu1 %v4178_v34  ;;  %v4009_v34 = vld [vmem:[%s6750_s3 + $0x348] sm:$0xff] }
 0x2d8   : > { %3873 = vmatmul.mubr.msk.f32.gmra.mrb[26].mxu0 %vm802_vm3, %v3861_v19  ;;  %v3906_v19 = vld [vmem:[%s6750_s3 + $0x190] sm:$0xff] }
 0x2d9   : > { %3989 = vmatmul.mubr.msk.f32.gmra.mrb[20].mxu1 %vm802_vm3, %v3977_v17  ;;  %1347 = vmatprep.mubr.f32.mxu0 %v4863_v0 }
 0x2da   : > { %4181 = vmatpush1.bf16.msra.mxu1 %v4180_v52  ;;  %2618 = vmatprep.mubr.f32.mxu1 %v4863_v0 }
 0x2db   : > { %4183 = vmatprep.subr.bf16.mxu1 %v4182_v47 }
 0x2dc   : > { %3874 = vmatmul.mubr.msk.f32.gmra.mrb[28].mxu0 %vm802_vm3, %v3862_v21 }
 0x2dd   : > { %3990 = vmatmul.mubr.msk.f32.gmra.mrb[22].mxu1 %vm802_vm3, %v3978_v27  ;;  %1353 = vmatprep.mubr.f32.mxu0 %v4863_v0 }
 0x2de   : > { %4185 = vmatpush1.bf16.msra.mxu1 %v4184_v9  ;;  %2624 = vmatprep.mubr.f32.mxu1 %v4863_v0 }
 0x2df   : > { %4187 = vmatprep.subr.bf16.mxu1 %v4186_v36 }
 0x2e0   : > { %3875 = vmatmul.mubr.msk.f32.gmra.mrb[30].mxu0 %vm802_vm3, %v3863_v43 }
 0x2e1   : > { %3991 = vmatmul.mubr.msk.f32.gmra.mrb[0].mxu1 %vm802_vm3, %v3979_v50  ;;  %1359 = vmatprep.mubr.f32.mxu0 %v4863_v0 }
 0x2e2   : > { %4189 = vmatpush1.bf16.msra.mxu1 %v4188_v63  ;;  %2630 = vmatprep.mubr.f32.mxu1 %v4863_v0 }
 0x2e4   : > { %3876 = vmatmul.mubr.msk.f32.gmra.mrb[32].mxu0 %vm802_vm3, %v3864_v55 }
 0x2e5   : > { %3992 = vmatmul.mubr.msk.f32.gmra.mrb[2].mxu1 %vm802_vm3, %v3980_v28  ;;  %1365 = vmatprep.mubr.f32.mxu0 %v4863_v0 }
 0x2e6   : > { %2636 = vmatprep.mubr.f32.mxu1 %v4863_v0 }
 0x2e8   : > { %3877 = vmatmul.mubr.msk.f32.gmra.mrb[34].mxu0 %vm802_vm3, %v3865_v4 }
 0x2e9   : > { %3993 = vmatmul.mubr.msk.f32.gmra.mrb[4].mxu1 %vm802_vm3, %v3981_v20  ;;  %1371 = vmatprep.mubr.f32.mxu0 %v4863_v0 }
 0x2ea   : > { %2642 = vmatprep.mubr.f32.mxu1 %v4863_v0 }
 0x2ec   : > { %3878 = vmatmul.mubr.msk.f32.gmra.mrb[36].mxu0 %vm802_vm3, %v3866_v41 }
 0x2ed   : > { %3994 = vmatmul.mubr.msk.f32.gmra.mrb[6].mxu1 %vm802_vm3, %v3982_v10  ;;  %1377 = vmatprep.mubr.f32.mxu0 %v4863_v0 }
 0x2ee   : > { %2648 = vmatprep.mubr.f32.mxu1 %v4863_v0 }
 0x2f0   : > { %3879 = vmatmul.mubr.msk.f32.gmra.mrb[38].mxu0 %vm802_vm3, %v3867_v45 }
 0x2f1   : > { %3995 = vmatmul.mubr.msk.f32.gmra.mrb[8].mxu1 %vm802_vm3, %v3983_v2  ;;  %1570 = vmatprep.mubr.f32.mxu0 %v4863_v0 }
 0x2f2   : > { %2654 = vmatprep.mubr.f32.mxu1 %v4863_v0 }
 0x2f4   : > { %3892 = vmatmul.mubr.msk.f32.vlgmr.msra.gmra.mrb[16].mxu0 %vm802_vm3, %v3880_v11 }
 0x2f5   : > { %4113 = vmatpush1.bf16.msra.mxu0 %v5290_v15  ;;  %3996 = vmatmul.mubr.msk.f32.gmra.mrb[10].mxu1 %vm802_vm3, %v3984_v57  ;;  %v3882_v15 = vld [vmem:[%s6750_s3 + $0x130] sm:$0xff] }
 0x2f6   : > { %4115 = vmatprep.subr.bf16.mxu0 %v5312_v33  ;;  %1576 = vmatprep.mubr.f32.mxu0 %v4863_v0  ;;  %v3986_v33 = vld [vmem:[%s6750_s3 + $0x2f0] sm:$0xff] }
 0x2f7   : > { %2660 = vmatprep.mubr.f32.mxu1 %v4863_v0 }
 0x2f8   : > { %3893 = vmatmul.mubr.msk.f32.gmra.mrb[18].mxu0 %vm802_vm3, %v3881_v51 }
 0x2f9   : > { %4117 = vmatpush1.bf16.msra.mxu0 %v5314_v40  ;;  %3997 = vmatmul.mubr.msk.f32.gmra.mrb[12].mxu1 %vm802_vm3, %v3985_v46  ;;  %v3883_v40 = vld [vmem:[%s6750_s3 + $0x138] sm:$0xff] }
 0x2fa   : > { %4119 = vmatprep.subr.bf16.mxu0 %v5336_v61  ;;  %1582 = vmatprep.mubr.f32.mxu0 %v4863_v0  ;;  %v3987_v61 = vld [vmem:[%s6750_s3 + $0x2f8] sm:$0xff] }
 0x2fb   : > { %2666 = vmatprep.mubr.f32.mxu1 %v4863_v0 }
 0x2fc   : > { %3894 = vmatmul.mubr.msk.f32.gmra.mrb[20].mxu0 %vm802_vm3, %v3882_v15 }
 0x2fd   : > { %4121 = vmatpush1.bf16.msra.mxu0 %v5338_v62  ;;  %3998 = vmatmul.mubr.msk.f32.gmra.mrb[14].mxu1 %vm802_vm3, %v3986_v33  ;;  %v3884_v62 = vld [vmem:[%s6750_s3 + $0x140] sm:$0xff] }
 0x2fe   : > { %4123 = vmatprep.subr.bf16.mxu0 %v5367_v29  ;;  %1588 = vmatprep.mubr.f32.mxu0 %v4863_v0  ;;  %v4000_v29 = vld [vmem:[%s6750_s3 + $0x300] sm:$0xff] }
 0x2ff   : > { %2672 = vmatprep.mubr.f32.mxu1 %v4863_v0 }
 0x300   : > { %3895 = vmatmul.mubr.msk.f32.gmra.mrb[22].mxu0 %vm802_vm3, %v3883_v40 }
 0x301   : > { %4125 = vmatpush1.bf16.msra.mxu0 %v5369_v30  ;;  %3999 = vmatmul.mubr.msk.f32.gmra.mrb[16].mxu1 %vm802_vm3, %v3987_v61  ;;  %v3885_v30 = vld [vmem:[%s6750_s3 + $0x148] sm:$0xff] }
 0x302   : > { %1594 = vmatprep.mubr.f32.mxu0 %v4863_v0  ;;  %2865 = vmatprep.mubr.f32.mxu1 %v4863_v0 }
 0x304   : > { %3896 = vmatmul.mubr.msk.f32.gmra.mrb[24].mxu0 %vm802_vm3, %v3884_v62 }
 0x305   : > { %4012 = vmatmul.mubr.msk.f32.vlgmr.msra.gmra.mrb[18].mxu1 %vm802_vm3, %v4000_v29  ;;  %1600 = vmatprep.mubr.f32.mxu0 %v4863_v0 }
 0x306   : > { %2871 = vmatprep.mubr.f32.mxu1 %v4863_v0 }
 0x308   : > { %3897 = vmatmul.mubr.msk.f32.gmra.mrb[26].mxu0 %vm802_vm3, %v3885_v30 }
 0x309   : > { %4013 = vmatmul.mubr.msk.f32.gmra.mrb[20].mxu1 %vm802_vm3, %v4001_v53  ;;  %1606 = vmatprep.mubr.f32.mxu0 %v4863_v0 }
 0x30a   : > { %2877 = vmatprep.mubr.f32.mxu1 %v4863_v0 }
 0x30c   : > { %3898 = vmatmul.mubr.msk.f32.gmra.mrb[28].mxu0 %vm802_vm3, %v3886_v56 }
 0x30d   : > { %4014 = vmatmul.mubr.msk.f32.gmra.mrb[22].mxu1 %vm802_vm3, %v4002_v48  ;;  %1612 = vmatprep.mubr.f32.mxu0 %v4863_v0 }
 0x30e   : > { %2883 = vmatprep.mubr.f32.mxu1 %v4863_v0 }
 0x310   : > { %3899 = vmatmul.mubr.msk.f32.gmra.mrb[30].mxu0 %vm802_vm3, %v3887_v31  ;;  %v3004_v31 = vpop.permute.xlu1 %3003 }
 0x311   : > { %4015 = vmatmul.mubr.msk.f32.gmra.mrb[0].mxu1 %vm802_vm3, %v4003_v23  ;;  %1618 = vmatprep.mubr.f32.mxu0 %v4863_v0 }
 0x312   : > { %2889 = vmatprep.mubr.f32.mxu1 %v4863_v0 }
 0x314   : > { %3900 = vmatmul.mubr.msk.f32.gmra.mrb[32].mxu0 %vm802_vm3, %v3888_v58  ;;  %v3000_v58 = vpop.permute.xlu0 %2999 }
 0x315   : > { %4016 = vmatmul.mubr.msk.f32.gmra.mrb[2].mxu1 %vm802_vm3, %v4004_v35  ;;  %1624 = vmatprep.mubr.f32.mxu0 %v4863_v0 }
 0x316   : > { %2895 = vmatprep.mubr.f32.mxu1 %v4863_v0 }
 0x318   : > { %3901 = vmatmul.mubr.msk.f32.gmra.mrb[34].mxu0 %vm802_vm3, %v3889_v1 }
 0x319   : > { %4017 = vmatmul.mubr.msk.f32.gmra.mrb[4].mxu1 %vm802_vm3, %v4005_v59  ;;  %1630 = vmatprep.mubr.f32.mxu0 %v4863_v0 }
 0x31a   : > { %2901 = vmatprep.mubr.f32.mxu1 %v4863_v0 }
 0x31c   : > { %3902 = vmatmul.mubr.msk.f32.gmra.mrb[36].mxu0 %vm802_vm3, %v3890_v60 }
 0x31d   : > { %4018 = vmatmul.mubr.msk.f32.gmra.mrb[6].mxu1 %vm802_vm3, %v4006_v18  ;;  %1636 = vmatprep.mubr.f32.mxu0 %v4863_v0 }
 0x31e   : > { %2907 = vmatprep.mubr.f32.mxu1 %v4863_v0 }
 0x320   : > { %3903 = vmatmul.mubr.msk.f32.gmra.mrb[38].mxu0 %vm802_vm3, %v3891_v44 }
 0x321   : > { %4019 = vmatmul.mubr.msk.f32.gmra.mrb[8].mxu1 %vm802_vm3, %v4007_v5  ;;  %1829 = vmatprep.mubr.f32.mxu0 %v4863_v0 }
 0x322   : > { %2913 = vmatprep.mubr.f32.mxu1 %v4863_v0 }
 0x324   : > { %3916 = vmatmul.mubr.msk.f32.vlgmr.msra.gmra.mrb[16].mxu0 %vm802_vm3, %v3904_v22 }
 0x325   : > { %4020 = vmatmul.mubr.msk.f32.gmra.mrb[10].mxu1 %vm802_vm3, %v4008_v14  ;;  %1835 = vmatprep.mubr.f32.mxu0 %v4863_v0 }
 0x326   : > { %2919 = vmatprep.mubr.f32.mxu1 %v4863_v0 }
 0x328   : > { %3917 = vmatmul.mubr.msk.f32.gmra.mrb[18].mxu0 %vm802_vm3, %v3905_v3 }
 0x329   : > { %4021 = vmatmul.mubr.msk.f32.gmra.mrb[12].mxu1 %vm802_vm3, %v4009_v34  ;;  %1841 = vmatprep.mubr.f32.mxu0 %v4863_v0 }
 0x32a   : > { %2925 = vmatprep.mubr.f32.mxu1 %v4863_v0 }
 0x32c   : > { %3918 = vmatmul.mubr.msk.f32.gmra.mrb[20].mxu0 %vm802_vm3, %v3906_v19 }
 0x32d   : > { %4022 = vmatmul.mubr.msk.f32.gmra.mrb[14].mxu1 %vm802_vm3, %v4010_v25 }
 0x32e   : > { %2931 = vmatprep.mubr.f32.mxu1 %v4863_v0 }
 0x331   : > { %4023 = vmatmul.mubr.msk.f32.gmra.mrb[16].mxu1 %vm802_vm3, %v4011_v7 }
 0x3d3   : > { %v1590_v49 = vpop.f32.mrb[22].mxu0 }
 0x3d4   : > { %v1592_v24 = vpop.f32.mrb[23].mxu0 }
 0x3d7   : > { %v1596_v13 = vpop.f32.mrb[24].mxu0 }
 0x3d8   : > { %v2867_v16 = vpop.f32.mrb[18].mxu1  ;;  %v1598_v17 = vpop.f32.mrb[25].mxu0 }
 0x3d9   : > { %v2869_v52 = vpop.f32.mrb[19].mxu1 }
 0x3db   : > { %v1602_v12 = vpop.f32.mrb[26].mxu0 }
 0x3dc   : > { %v2873_v8 = vpop.f32.mrb[20].mxu1  ;;  %v1604_v47 = vpop.f32.mrb[27].mxu0 }
 0x3dd   : > { %v2875_v21 = vpop.f32.mrb[21].mxu1 }
 0x3df   : > { %v1608_v27 = vpop.f32.mrb[28].mxu0 }
 0x3e0   : > { %v6333_v42 = vpop.f32.mrb[22].mxu1  ;;  %v1610_v0 = vpop.f32.mrb[29].mxu0 }
 0x3e1   : > { %v6335_v54 = vpop.f32.mrb[23].mxu1 }
 0x3e3   : > { %v1614_v9 = vpop.f32.mrb[30].mxu0 }
 0x3e4   : > { %v2885_v6 = vpop.f32.mrb[0].mxu1  ;;  %v1616_v38 = vpop.f32.mrb[31].mxu0 }
 0x3e5   : > { %v4204_v36 = vadd.f32 %v2885_v6, %v1590_v49  ;;  %v2887_v43 = vpop.f32.mrb[1].mxu1 }
 0x3e6   : > { %v4205_v50 = vadd.f32 %v2887_v43, %v1592_v24 }
 0x3e7   : > { %v1620_v63 = vpop.f32.mrb[32].mxu0  ;;  %v3028_v35 = vadd.f32 %v4204_v36, %v3004_v31 }
 0x3e8   : > { %v2891_v55 = vpop.f32.mrb[2].mxu1  ;;  %v1622_v28 = vpop.f32.mrb[33].mxu0  ;;  %v3029_v44 = vadd.f32 %v4205_v50, %v3004_v31 }
 0x3e9   : > { %v4206_v4 = vadd.f32 %v2891_v55, %v1596_v13  ;;  %v2893_v20 = vpop.f32.mrb[3].mxu1  ;;  %4771 = vtanh.f32 %v3028_v35  ;;  %v280_v55 = vld [vmem:[%s6753_s6] sm:$0x3] }
 0x3ea   : > { %v4207_v41 = vadd.f32 %v2893_v20, %v1598_v17 }
 0x3eb   : > { %v1626_v10 = vpop.f32.mrb[34].mxu0 }
 0x3ec   : > { %v2897_v45 = vpop.f32.mrb[4].mxu1  ;;  %v1628_v2 = vpop.f32.mrb[35].mxu0 }
 0x3ed   : > { %v6337_v11 = vadd.f32 %v2897_v45, %v1602_v12  ;;  %v2899_v57 = vpop.f32.mrb[5].mxu1  ;;  %v3008_v12 = vpop.permute.xlu0 %3007 }
 0x3ee   : > { %v6339_v51 = vadd.f32 %v2899_v57, %v1604_v47  ;;  %v3031_v6 = vadd.f32 %v4207_v41, %v3008_v12 }
 0x3ef   : > { %v1632_v46 = vpop.f32.mrb[36].mxu0 }
 0x3f0   : > { %v2903_v15 = vpop.f32.mrb[6].mxu1  ;;  %v1634_v33 = vpop.f32.mrb[37].mxu0  ;;  %v3033_v32 = vadd.f32 %v6339_v51, %v3008_v12 }
 0x3f1   : > { %v6341_v40 = vadd.f32 %v2903_v15, %v1608_v27  ;;  %v2905_v61 = vpop.f32.mrb[7].mxu1  ;;  %v3030_v27 = vadd.f32 %v4206_v4, %v3008_v12 }
 0x3f2   : > { %v6343_v62 = vadd.f32 %v2905_v61, %v1610_v0  ;;  %v3012_v61 = vpop.permute.xlu1 %3011 }
 0x3f3   : > { %v1638_v29 = vpop.f32.mrb[38].mxu0 }
 0x3f4   : > { %v2909_v30 = vpop.f32.mrb[8].mxu1  ;;  %v1640_v53 = vpop.f32.mrb[39].mxu0 }
 0x3f5   : > { %v6345_v56 = vadd.f32 %v2909_v30, %v1614_v9  ;;  %v2911_v48 = vpop.f32.mrb[9].mxu1 }
 0x3f6   : > { %v6347_v23 = vadd.f32 %v2911_v48, %v1616_v38 }
 0x3f7   : > { %v1831_v1 = vpop.f32.mrb[16].mxu0 }
 0x3f8   : > { %v4198_v59 = vadd.f32 %v2867_v16, %v1831_v1  ;;  %v2915_v60 = vpop.f32.mrb[10].mxu1  ;;  %v1833_v18 = vpop.f32.mrb[17].mxu0 }
 0x3f9   : > { %v6349_v5 = vadd.f32 %v2915_v60, %v1620_v63  ;;  %v4199_v22 = vadd.f32 %v2869_v52, %v1833_v18  ;;  %v2917_v14 = vpop.f32.mrb[11].mxu1 }
 0x3fa   : > { %v3022_v3 = vadd.f32 %v4198_v59, %v3000_v58  ;;  %v6351_v34 = vadd.f32 %v2917_v14, %v1622_v28  ;;  %v3035_v59 = vadd.f32 %v6343_v62, %v3012_v61 }
 0x3fb   : > { %v3023_v19 = vadd.f32 %v4199_v22, %v3000_v58  ;;  %v1837_v25 = vpop.f32.mrb[18].mxu0 }
 0x3fc   : > { %4773 = vtanh.f32 %v3022_v3  ;;  %v4200_v7 = vadd.f32 %v2873_v8, %v1837_v25  ;;  %v2921_v49 = vpop.f32.mrb[12].mxu1  ;;  %v1839_v24 = vpop.f32.mrb[19].mxu0  ;;  %v3036_v3 = vadd.f32 %v6345_v56, %v3012_v61 }
 0x3fd   : > { %4775 = vtanh.f32 %v3029_v44  ;;  %v6353_v13 = vadd.f32 %v2921_v49, %v1626_v10  ;;  %v4201_v16 = vadd.f32 %v2875_v21, %v1839_v24  ;;  %v2923_v17 = vpop.f32.mrb[13].mxu1 }
 0x3fe   : > { %4777 = vtanh.f32 %v3023_v19  ;;  %v3024_v47 = vadd.f32 %v4200_v7, %v3000_v58  ;;  %v6355_v52 = vadd.f32 %v2923_v17, %v1628_v2  ;;  %v3037_v17 = vadd.f32 %v6347_v23, %v3012_v61 }
 0x3ff   : > { %v3025_v0 = vadd.f32 %v4201_v16, %v3000_v58  ;;  %v1843_v9 = vpop.f32.mrb[20].mxu0  ;;  %v3016_v16 = vpop.permute.xlu0 %3015 }
 0x400   : > { %4779 = vtanh.f32 %v3024_v47  ;;  %v4202_v38 = vadd.f32 %v6333_v42, %v1843_v9  ;;  %v2927_v8 = vpop.f32.mrb[14].mxu1  ;;  %v1845_v36 = vpop.f32.mrb[21].mxu0 }
 0x401   : > { %v6358_v43 = vadd.f32 %v2927_v8, %v1632_v46  ;;  %v4203_v50 = vadd.f32 %v6335_v54, %v1845_v36  ;;  %v2929_v21 = vpop.f32.mrb[15].mxu1  ;;  %4781 = vtanh.f32 %v3025_v0  ;;  %v6366_v42 = vpop.eup %4771  ;;  %v6371_v54 = vrot.slane %v280_v55, %v4985_v37 }
 0x402   : > { %v6361_v63 = vadd.f32 %v2929_v21, %v1634_v33  ;;  %4783 = vtanh.f32 %v3030_v27  ;;  %v3026_v28 = vadd.f32 %v4202_v38, %v3004_v31  ;;  %v6381_v46 = vrot.slane %v280_v55, %v514_v39 }
 0x403   : > { %4785 = vtanh.f32 %v3031_v6  ;;  %v3027_v4 = vadd.f32 %v4203_v50, %v3004_v31  ;;  %v3034_v39 = vadd.f32 %v6341_v40, %v3012_v61  ;;  %v3093_v35 = vmul.f32 %v6366_v42, %v6371_v54 }
 0x404   : > { %v2933_v20 = vpop.f32.mrb[16].mxu1  ;;  %4787 = vtanh.f32 %v3026_v28  ;;  %v3039_v0 = vadd.f32 %v6351_v34, %v3016_v16  ;;  %v3040_v21 = vadd.f32 %v6353_v13, %v3016_v16 }
 0x405   : > { %v6368_v41 = vadd.f32 %v2933_v20, %v1638_v29  ;;  %v2935_v10 = vpop.f32.mrb[17].mxu1  ;;  %4789 = vtanh.f32 %v3027_v4  ;;  %v3032_v29 = vadd.f32 %v6337_v11, %v3008_v12  ;;  %v3195_v14 = vmul.f32 %v6366_v42, %v3093_v35 }
 0x406   : > { %v6373_v45 = vpop.eup %4773  ;;  %v6375_v2 = vadd.f32 %v2935_v10, %v1640_v53  ;;  %v3038_v12 = vadd.f32 %v6349_v5, %v3016_v16  ;;  %v3020_v10 = vpop.permute.xlu1 %3019 }
 0x407   : > { %v6377_v57 = vpop.eup %4775  ;;  %v3087_v15 = vmul.f32 %v6373_v45, %v6371_v54  ;;  %4791 = vtanh.f32 %v3032_v29  ;;  %v3042_v61 = vadd.f32 %v6358_v43, %v3020_v10 }
 0x408   : > { %v6385_v33 = vpop.eup %4777  ;;  %v3094_v11 = vmul.f32 %v6377_v57, %v6381_v46  ;;  %4793 = vtanh.f32 %v3033_v32 }
 0x409   : > { %v3088_v30 = vmul.f32 %v6385_v33, %v6381_v46  ;;  %v3189_v53 = vmul.f32 %v6373_v45, %v3087_v15  ;;  %4795 = vtanh.f32 %v3034_v39 }
 0x40a   : > { %v6391_v48 = vpop.eup %4779  ;;  %v3120_v22 = vadd.f32 %v3094_v11, %v3093_v35  ;;  %v3196_v62 = vmul.f32 %v6377_v57, %v3094_v11  ;;  %4797 = vtanh.f32 %v3035_v59  ;;  %v3044_v59 = vadd.f32 %v6368_v41, %v3020_v10 }
 0x40b   : > { %v3111_v31 = vadd.f32 %v3088_v30, %v3087_v15  ;;  %v3190_v58 = vmul.f32 %v6385_v33, %v3088_v30  ;;  %v6400_v1 = vpop.eup %4781  ;;  %v3089_v40 = vmul.f32 %v6391_v48, %v6371_v54  ;;  %4799 = vtanh.f32 %v3036_v3 }
 0x40c   : > { %v6403_v60 = vpop.eup %4783  ;;  %v3090_v18 = vmul.f32 %v6400_v1, %v6381_v46  ;;  %v3222_v47 = vadd.f32 %v3196_v62, %v3195_v14  ;;  %4801 = vtanh.f32 %v3037_v17  ;;  %v3041_v15 = vadd.f32 %v6355_v52, %v3016_v16 }
 0x40d   : > { %3112 = vadd.xlane.f32.xlu0 %v3111_v31  ;;  %v3213_v51 = vadd.f32 %v3190_v58, %v3189_v53  ;;  %v6409_v44 = vpop.eup %4785  ;;  %v3095_v19 = vmul.f32 %v6403_v60, %v6371_v54  ;;  %v3191_v56 = vmul.f32 %v6391_v48, %v3089_v40  ;;  %4803 = vtanh.f32 %v3038_v12 }
 0x40e   : > { %v6416_v25 = vpop.eup %4787  ;;  %v3114_v7 = vadd.f32 %v3090_v18, %v3089_v40  ;;  %v3096_v49 = vmul.f32 %v6409_v44, %v6381_v46  ;;  %v3192_v27 = vmul.f32 %v6400_v1, %v3090_v18  ;;  %4805 = vtanh.f32 %v3039_v0 }
 0x40f   : > { %3214 = vadd.xlane.f32.xlu1 %v3213_v51  ;;  %v6420_v24 = vpop.eup %4789  ;;  %v3197_v9 = vmul.f32 %v6403_v60, %v3095_v19  ;;  %v3091_v23 = vmul.f32 %v6416_v25, %v6371_v54  ;;  %v3043_v53 = vadd.f32 %v6361_v63, %v3020_v10  ;;  %4807 = vtanh.f32 %v3040_v21 }
 0x410   : > { %v3123_v6 = vadd.f32 %v3096_v49, %v3095_v19  ;;  %v3198_v38 = vmul.f32 %v6409_v44, %v3096_v49  ;;  %v3092_v5 = vmul.f32 %v6420_v24, %v6381_v46  ;;  %v3216_v36 = vadd.f32 %v3192_v27, %v3191_v56 }
 0x411   : > { %3121 = vadd.xlane.f32.xlu0 %v3120_v22  ;;  %v6433_v8 = vpop.eup %4791  ;;  %v3193_v28 = vmul.f32 %v6416_v25, %v3091_v23  ;;  %4809 = vtanh.f32 %v3041_v15  ;;  %v3045_v14 = vadd.f32 %v6375_v2, %v3020_v10 }
 0x412   : > { %v6435_v50 = vpop.eup %4793  ;;  %v3225_v55 = vadd.f32 %v3198_v38, %v3197_v9  ;;  %v3194_v4 = vmul.f32 %v6420_v24, %v3092_v5  ;;  %v3117_v29 = vadd.f32 %v3092_v5, %v3091_v23  ;;  %v3097_v30 = vmul.f32 %v6433_v8, %v6371_v54 }
 0x413   : > { %3115 = vadd.xlane.f32.xlu1 %v3114_v7  ;;  %v6437_v34 = vpop.eup %4795  ;;  %v3098_v13 = vmul.f32 %v6435_v50, %v6381_v46  ;;  %4811 = vtanh.f32 %v3042_v61 }
 0x414   : > { %v6442_v20 = vpop.eup %4797  ;;  %v3219_v32 = vadd.f32 %v3194_v4, %v3193_v28  ;;  %v3099_v39 = vmul.f32 %v6437_v34, %v6371_v54  ;;  %v3199_v58 = vmul.f32 %v6433_v8, %v3097_v30  ;;  %4813 = vtanh.f32 %v3043_v53 }
 0x415   : > { %3223 = vadd.xlane.f32.xlu0 %v3222_v47  ;;  %v3100_v52 = vmul.f32 %v6442_v20, %v6381_v46  ;;  %v6455_v43 = vpop.eup %4799  ;;  %v3126_v31 = vadd.f32 %v3098_v13, %v3097_v30  ;;  %v3200_v35 = vmul.f32 %v6435_v50, %v3098_v13  ;;  %4815 = vtanh.f32 %v3044_v59 }
 0x416   : > { %v6459_v63 = vpop.eup %4801  ;;  %v3201_v40 = vmul.f32 %v6437_v34, %v3099_v39  ;;  %v3101_v3 = vmul.f32 %v6455_v43, %v6371_v54  ;;  %4817 = vtanh.f32 %v3045_v14 }
 0x417   : > { %3124 = vadd.xlane.f32.xlu1 %v3123_v6  ;;  %v6461_v11 = vpop.eup %4803  ;;  %v3129_v51 = vadd.f32 %v3100_v52, %v3099_v39  ;;  %v3202_v18 = vmul.f32 %v6442_v20, %v3100_v52  ;;  %v3228_v62 = vadd.f32 %v3200_v35, %v3199_v58  ;;  %v3102_v19 = vmul.f32 %v6459_v63, %v6381_v46 }
 0x418   : > { %v6466_v22 = vpop.eup %4805  ;;  %v3103_v7 = vmul.f32 %v6461_v11, %v6371_v54  ;;  %v3203_v17 = vmul.f32 %v6455_v43, %v3101_v3 }
 0x419   : > { %3217 = vadd.xlane.f32.xlu0 %v3216_v36  ;;  %v3231_v41 = vadd.f32 %v3202_v18, %v3201_v40  ;;  %v3104_v49 = vmul.f32 %v6466_v22, %v6381_v46  ;;  %v6477_v16 = vpop.eup %4807  ;;  %v3132_v2 = vadd.f32 %v3102_v19, %v3101_v3  ;;  %v3204_v12 = vmul.f32 %v6459_v63, %v3102_v19 }
 0x41a   : > { %v3205_v0 = vmul.f32 %v6461_v11, %v3103_v7  ;;  %v3105_v23 = vmul.f32 %v6477_v16, %v6371_v54 }
 0x41b   : > { %3226 = vadd.xlane.f32.xlu1 %v3225_v55  ;;  %v6481_v47 = vpop.eup %4809  ;;  %v3135_v27 = vadd.f32 %v3104_v49, %v3103_v7  ;;  %v3206_v9 = vmul.f32 %v6466_v22, %v3104_v49  ;;  %v3234_v38 = vadd.f32 %v3204_v12, %v3203_v17 }
 0x41c   : > { %v3106_v5 = vmul.f32 %v6481_v47, %v6381_v46  ;;  %v3207_v10 = vmul.f32 %v6477_v16, %v3105_v23 }
 0x41d   : > { %3118 = vadd.xlane.f32.xlu0 %v3117_v29  ;;  %v6483_v56 = vpop.eup %4811  ;;  %v3237_v36 = vadd.f32 %v3206_v9, %v3205_v0 }
 0x41e   : > { %v6487_v6 = vpop.eup %4813  ;;  %v3107_v21 = vmul.f32 %v6483_v56, %v6371_v54  ;;  %v3138_v4 = vadd.f32 %v3106_v5, %v3105_v23  ;;  %v3208_v15 = vmul.f32 %v6481_v47, %v3106_v5 }
 0x41f   : > { %3220 = vadd.xlane.f32.xlu1 %v3219_v32  ;;  %v3108_v55 = vmul.f32 %v6487_v6, %v6381_v46  ;;  %v6497_v28 = vpop.eup %4815 }
 0x420   : > { %v6501_v61 = vpop.eup %4817  ;;  %v3209_v30 = vmul.f32 %v6483_v56, %v3107_v21  ;;  %v3240_v53 = vadd.f32 %v3208_v15, %v3207_v10  ;;  %v3109_v32 = vmul.f32 %v6497_v28, %v6371_v54  ;;  %v4843_v54 = vld [vmem:[%s6751_s4] sm:$0x1] }
 0x421   : > { %3127 = vadd.xlane.f32.xlu0 %v3126_v31  ;;  %v3141_v29 = vadd.f32 %v3108_v55, %v3107_v21  ;;  %v3210_v13 = vmul.f32 %v6487_v6, %v3108_v55  ;;  %v3110_v39 = vmul.f32 %v6501_v61, %v6381_v46  ;;  %4819 = vtanh.f32 %v4843_v54  ;;  %v4845_v55 = vld [vmem:[%s6751_s4 + $0x2] sm:$0x1] }
 0x422   : > { %v3211_v58 = vmul.f32 %v6497_v28, %v3109_v32 }
 0x423   : > { %3130 = vadd.xlane.f32.xlu1 %v3129_v51  ;;  %v3243_v52 = vadd.f32 %v3210_v13, %v3209_v30  ;;  %v3144_v31 = vadd.f32 %v3110_v39, %v3109_v32  ;;  %v3212_v35 = vmul.f32 %v6501_v61, %v3110_v39 }
 0x425   : > { %3229 = vadd.xlane.f32.xlu0 %v3228_v62  ;;  %v3246_v59 = vadd.f32 %v3212_v35, %v3211_v58 }
 0x427   : > { %3232 = vadd.xlane.f32.xlu1 %v3231_v41  ;;  %v4844_v41 = vld [vmem:[%s6751_s4 + $0x1] sm:$0x1] }
 0x428   : > { %4821 = vtanh.f32 %v4844_v41 }
 0x429   : > { %3133 = vadd.xlane.f32.xlu0 %v3132_v2  ;;  %4823 = vtanh.f32 %v4845_v55 }
 0x42b   : > { %3136 = vadd.xlane.f32.xlu1 %v3135_v27  ;;  %v6517_v12 = vpop.eup %4819 }
 0x42c   : > { %v3291_v23 = vmul.f32 392.0, %v6517_v12 }
 0x42d   : > { %3235 = vadd.xlane.f32.xlu0 %v3234_v38 }
 0x42e   : > { %v3303_v58 = vmul.f32 %v6517_v12, %v3291_v23 }
 0x42f   : > { %3238 = vadd.xlane.f32.xlu1 %v3237_v36 }
 0x431   : > { %3139 = vadd.xlane.f32.xlu0 %v3138_v4 }
 0x433   : > { %3142 = vadd.xlane.f32.xlu1 %v3141_v29 }
 0x435   : > { %3241 = vadd.xlane.f32.xlu0 %v3240_v53  ;;  %v6523_v53 = vpop.eup %4821 }
 0x437   : > { %3244 = vadd.xlane.f32.xlu1 %v3243_v52 }
 0x439   : > { %3145 = vadd.xlane.f32.xlu0 %v3144_v31 }
 0x43d   : > { %3247 = vadd.xlane.f32.xlu0 %v3246_v59 }
 0x49a   : > { %v3113_v51 = vpop.xlane.xlu0 %3112 }
 0x49c   : > { %v3215_v40 = vpop.xlane.xlu1 %3214 }
 0x49e   : > { %v3122_v18 = vpop.xlane.xlu0 %3121 }
 0x4a0   : > { %v3116_v46 = vpop.xlane.xlu1 %3115 }
 0x4a1   : > { %v3147_v14 = vadd.f32 %v3116_v46, %v3113_v51  ;;  %v3292_v46 = vmul.f32 392.0, %v6523_v53 }
 0x4a2   : > { %v3224_v62 = vpop.xlane.xlu0 %3223 }
 0x4a3   : > { %v3148_v3 = vrot.slane %v3147_v14, 4 }
 0x4a4   : > { %v3125_v19 = vpop.xlane.xlu1 %3124 }
 0x4a5   : > { %v3149_v7 = vadd.f32 %v3148_v3, %v3147_v14 }
 0x4a6   : > { %v3218_v49 = vpop.xlane.xlu0 %3217 }
 0x4a7   : > { %v3150_v2 = vrot.slane %v3149_v7, 2  ;;  %v3249_v17 = vadd.f32 %v3218_v49, %v3215_v40  ;;  %v4846_v49 = vld [vmem:[%s6751_s4 + $0x3] sm:$0x1] }
 0x4a8   : > { %v3227_v27 = vpop.xlane.xlu1 %3226  ;;  %4825 = vtanh.f32 %v4846_v49 }
 0x4a9   : > { %v3151_v0 = vadd.f32 %v3150_v2, %v3149_v7  ;;  %v3250_v9 = vrot.slane %v3249_v17, 4 }
 0x4aa   : > { %v3119_v38 = vpop.xlane.xlu0 %3118 }
 0x4ab   : > { %v3152_v5 = vrot.slane %v3151_v0, 1  ;;  %v3251_v36 = vadd.f32 %v3250_v9, %v3249_v17  ;;  %v3154_v21 = vadd.f32 %v3122_v18, %v3119_v38 }
 0x4ac   : > { %v3221_v4 = vpop.xlane.xlu1 %3220 }
 0x4ad   : > { %v3153_v10 = vadd.f32 %v3152_v5, %v3151_v0  ;;  %v3252_v15 = vrot.slane %v3251_v36, 2  ;;  %v3155_v29 = vrot.slane %v3154_v21, 4  ;;  %v3256_v30 = vadd.f32 %v3224_v62, %v3221_v4  ;;  %v6534_v5 = vpop.eup %4823 }
 0x4ae   : > { %v3128_v13 = vpop.xlane.xlu0 %3127 }
 0x4af   : > { %v3297_v32 = vadd.f32 %v3291_v23, %v3153_v10  ;;  %v3253_v39 = vadd.f32 %v3252_v15, %v3251_v36  ;;  %v3156_v52 = vadd.f32 %v3155_v29, %v3154_v21  ;;  %v3257_v31 = vrot.slane %v3256_v30, 4 }
 0x4b0   : > { %v3161_v35 = vadd.f32 %v3128_v13, %v3125_v19  ;;  %v3131_v59 = vpop.xlane.xlu1 %3130  ;;  %v3304_v21 = vmul.f32 %v6523_v53, %v3292_v46 }
 0x4b1   : > { %v6526_v51 = vmul.f32 0.00028344672, %v3297_v32  ;;  %v3254_v40 = vrot.slane %v3253_v39, 1  ;;  %v3157_v54 = vrot.slane %v3156_v52, 2  ;;  %v3258_v18 = vadd.f32 %v3257_v31, %v3256_v30 }
 0x4b2   : > { %v3162_v14 = vrot.slane %v3161_v35, 4  ;;  %v3230_v62 = vpop.xlane.xlu0 %3229 }
 0x4b3   : > { %v3255_v3 = vadd.f32 %v3254_v40, %v3253_v39  ;;  %v3158_v41 = vadd.f32 %v3157_v54, %v3156_v52  ;;  %v3259_v7 = vrot.slane %v3258_v18, 2  ;;  %v3263_v19 = vadd.f32 %v3230_v62, %v3227_v27  ;;  %v4847_v40 = vld [vmem:[%s6751_s4 + $0x4] sm:$0x1] }
 0x4b4   : > { %v3163_v2 = vadd.f32 %v3162_v14, %v3161_v35  ;;  %v3233_v17 = vpop.xlane.xlu1 %3232  ;;  %v3360_v0 = vrot.slane %v6526_v51, %v4985_v37  ;;  %v3327_v36 = vmul.f32 %v6526_v51, %v6526_v51  ;;  %4827 = vtanh.f32 %v4847_v40 }
 0x4b5   : > { %v3309_v9 = vadd.f32 %v3303_v58, %v3255_v3  ;;  %v3159_v38 = vrot.slane %v3158_v41, 1  ;;  %v3260_v23 = vadd.f32 %v3259_v7, %v3258_v18  ;;  %v3264_v4 = vrot.slane %v3263_v19, 4 }
 0x4b6   : > { %v3164_v55 = vrot.slane %v3163_v2, 2  ;;  %3382 = vperm.xlu1 %4410, %v3360_v0   ;;  %v3134_v10 = vpop.xlane.xlu0 %3133  ;;  %v3293_v54 = vmul.f32 392.0, %v6534_v5 }
 0x4b7   : > { %v3321_v15 = vmul.f32 0.00028344672, %v3309_v9  ;;  %v3160_v27 = vadd.f32 %v3159_v38, %v3158_v41  ;;  %v3261_v29 = vrot.slane %v3260_v23, 1  ;;  %v3168_v30 = vadd.f32 %v3134_v10, %v3131_v59 }
 0x4b8   : > { %v3165_v13 = vadd.f32 %v3164_v55, %v3163_v2  ;;  %v3265_v32 = vadd.f32 %v3264_v4, %v3263_v19  ;;  %v3137_v39 = vpop.xlane.xlu1 %3136 }
 0x4b9   : > { %v3333_v52 = vsub.f32 %v3321_v15, %v3327_v36  ;;  %v3298_v31 = vadd.f32 %v3292_v46, %v3160_v27  ;;  %v3262_v58 = vadd.f32 %v3261_v29, %v3260_v23  ;;  %v3169_v35 = vrot.slane %v3168_v30, 4  ;;  %v6548_v23 = vpop.eup %4825 }
 0x4ba   : > { %v3166_v18 = vrot.slane %v3165_v13, 1  ;;  %v3266_v14 = vrot.slane %v3265_v32, 2  ;;  %v3236_v62 = vpop.xlane.xlu0 %3235  ;;  %v3305_v46 = vmul.f32 %v6534_v5, %v3293_v54 }
 0x4bb   : > { %v3339_v3 = vadd.f32 1e-05, %v3333_v52  ;;  %v6543_v41 = vmul.f32 0.00028344672, %v3298_v31  ;;  %v3310_v59 = vadd.f32 %v3304_v21, %v3262_v58  ;;  %v3170_v7 = vadd.f32 %v3169_v35, %v3168_v30 }
 0x4bc   : > { %v3167_v49 = vadd.f32 %v3166_v18, %v3165_v13  ;;  %v3267_v2 = vadd.f32 %v3266_v14, %v3265_v32  ;;  %v3270_v19 = vadd.f32 %v3236_v62, %v3233_v17  ;;  %v3239_v10 = vpop.xlane.xlu1 %3238  ;;  %v3294_v31 = vmul.f32 392.0, %v6548_v23 }
 0x4bd   : > { %4829 = vrsqrt.f32 %v3339_v3  ;;  %v3322_v0 = vmul.f32 0.00028344672, %v3310_v59  ;;  %v3328_v9 = vmul.f32 %v6543_v41, %v6543_v41  ;;  %v3171_v38 = vrot.slane %v3170_v7, 2 }
 0x4be   : > { %v3299_v36 = vadd.f32 %v3293_v54, %v3167_v49  ;;  %v3268_v55 = vrot.slane %v3267_v2, 1  ;;  %v3271_v4 = vrot.slane %v3270_v19, 4  ;;  %v3140_v15 = vpop.xlane.xlu0 %3139  ;;  %v3364_v21 = vrot.slane %v6543_v41, %v4985_v37  ;;  %v6557_v59 = vpop.eup %4827 }
 0x4bf   : > { %v3334_v27 = vsub.f32 %v3322_v0, %v3328_v9  ;;  %v3172_v29 = vadd.f32 %v3171_v38, %v3170_v7  ;;  %v3175_v30 = vadd.f32 %v3140_v15, %v3137_v39  ;;  %v4848_v7 = vld [vmem:[%s6751_s4 + $0x5] sm:$0x1] }
 0x4c0   : > { %v6552_v17 = vmul.f32 0.00028344672, %v3299_v36  ;;  %v3269_v13 = vadd.f32 %v3268_v55, %v3267_v2  ;;  %v3272_v32 = vadd.f32 %v3271_v4, %v3270_v19  ;;  %3386 = vperm.xlu0 %4409, %v3364_v21   ;;  %v3143_v19 = vpop.xlane.xlu1 %3142  ;;  %v3306_v55 = vmul.f32 %v6548_v23, %v3294_v31 }
 0x4c1   : > { %v3340_v52 = vadd.f32 1e-05, %v3334_v27  ;;  %v3173_v58 = vrot.slane %v3172_v29, 1  ;;  %v3176_v35 = vrot.slane %v3175_v30, 4 }
 0x4c2   : > { %v3311_v40 = vadd.f32 %v3305_v46, %v3269_v13  ;;  %v3273_v54 = vrot.slane %v3272_v32, 2  ;;  %v3242_v18 = vpop.xlane.xlu0 %3241  ;;  %v3368_v14 = vrot.slane %v6552_v17, %v4985_v37  ;;  %v3329_v49 = vmul.f32 %v6552_v17, %v6552_v17 }
 0x4c3   : > { %4831 = vrsqrt.f32 %v3340_v52  ;;  %v3174_v62 = vadd.f32 %v3173_v58, %v3172_v29  ;;  %v3177_v3 = vadd.f32 %v3176_v35, %v3175_v30  ;;  %v3277_v39 = vadd.f32 %v3242_v18, %v3239_v10 }
 0x4c4   : > { %4833 = vtanh.f32 %v4848_v7  ;;  %v3323_v46 = vmul.f32 0.00028344672, %v3311_v40  ;;  %v3274_v2 = vadd.f32 %v3273_v54, %v3272_v32  ;;  %3390 = vperm.xlu1 %4410, %v3368_v14   ;;  %v3295_v58 = vmul.f32 392.0, %v6557_v59 }
 0x4c5   : > { %v3300_v0 = vadd.f32 %v3294_v31, %v3174_v62  ;;  %v3178_v9 = vrot.slane %v3177_v3, 2  ;;  %v3278_v38 = vrot.slane %v3277_v39, 4  ;;  %v3245_v31 = vpop.xlane.xlu1 %3244 }
 0x4c6   : > { %v3335_v36 = vsub.f32 %v3323_v46, %v3329_v49  ;;  %v3275_v4 = vrot.slane %v3274_v2, 1  ;;  %v3146_v10 = vpop.xlane.xlu0 %3145 }
 0x4c7   : > { %v4830_v15 = vpop.eup %4829  ;;  %v6565_v21 = vmul.f32 0.00028344672, %v3300_v0  ;;  %v3179_v27 = vadd.f32 %v3178_v9, %v3177_v3  ;;  %v3279_v29 = vadd.f32 %v3278_v38, %v3277_v39  ;;  %v3182_v30 = vadd.f32 %v3146_v10, %v3143_v19 }
 0x4c8   : > { %v3341_v13 = vadd.f32 1e-05, %v3335_v36  ;;  %v3276_v52 = vadd.f32 %v3275_v4, %v3274_v2  ;;  %v3438_v32 = vrot.slane %v4830_v15, %v4985_v37  ;;  %v3640_v3 = vsub.f32 %v6517_v12, %v6526_v51 }
 0x4c9   : > { %v3180_v35 = vrot.slane %v3179_v27, 1  ;;  %v3280_v40 = vrot.slane %v3279_v29, 2  ;;  %v3183_v54 = vrot.slane %v3182_v30, 4  ;;  %v3372_v62 = vrot.slane %v6565_v21, %v4985_v37 }
 0x4ca   : > { %4835 = vrsqrt.f32 %v3341_v13  ;;  %v3312_v18 = vadd.f32 %v3306_v55, %v3276_v52  ;;  %3460 = vperm.xlu0 %4409, %v3438_v32   ;;  %v3248_v14 = vpop.xlane.xlu0 %3247  ;;  %v3330_v2 = vmul.f32 %v6565_v21, %v6565_v21  ;;  %v3307_v0 = vmul.f32 %v6557_v59, %v3295_v58 }
 0x4cb   : > { %v3181_v39 = vadd.f32 %v3180_v35, %v3179_v27  ;;  %v3281_v7 = vadd.f32 %v3280_v40, %v3279_v29  ;;  %v3184_v49 = vadd.f32 %v3183_v54, %v3182_v30  ;;  %v3284_v46 = vadd.f32 %v3248_v14, %v3245_v31  ;;  %3394 = vperm.xlu1 %4410, %v3372_v62  }
 0x4cc   : > { %v3324_v19 = vmul.f32 0.00028344672, %v3312_v18  ;;  %v3646_v9 = vmul.f32 %v4830_v15, %v3640_v3  ;;  %v3641_v15 = vsub.f32 %v6523_v53, %v6543_v41 }
 0x4cd   : > { %v4832_v38 = vpop.eup %4831  ;;  %v3301_v36 = vadd.f32 %v3295_v58, %v3181_v39  ;;  %v3282_v55 = vrot.slane %v3281_v7, 1  ;;  %v3185_v4 = vrot.slane %v3184_v49, 2  ;;  %v3285_v10 = vrot.slane %v3284_v46, 4 }
 0x4ce   : > { %v6576_v13 = vpop.eup %4833  ;;  %v3336_v12 = vsub.f32 %v3324_v19, %v3330_v2  ;;  %3654 = vperm.xlu0 %4409, %v3646_v9   ;;  %v3442_v51 = vrot.slane %v4832_v38, %v4985_v37  ;;  %v3647_v31 = vmul.f32 %v4832_v38, %v3641_v15  ;;  %v3642_v38 = vsub.f32 %v6534_v5, %v6552_v17 }
 0x4cf   : > { %v3319_v27 = vmul.f32 0.00028344672, %v3301_v36  ;;  %v3283_v29 = vadd.f32 %v3282_v55, %v3281_v7  ;;  %v3186_v30 = vadd.f32 %v3185_v4, %v3184_v49  ;;  %v3286_v52 = vadd.f32 %v3285_v10, %v3284_v46 }
 0x4d0   : > { %v3342_v32 = vadd.f32 1e-05, %v3336_v12  ;;  %3464 = vperm.xlu1 %4410, %v3442_v51   ;;  %v3296_v58 = vmul.f32 392.0, %v6576_v13 }
 0x4d1   : > { %v3313_v35 = vadd.f32 %v3307_v0, %v3283_v29  ;;  %v3187_v40 = vrot.slane %v3186_v30, 1  ;;  %v3287_v54 = vrot.slane %v3286_v52, 2  ;;  %v3376_v18 = vrot.slane %v3319_v27, %v4985_v37 }
 0x4d2   : > { %4837 = vrsqrt.f32 %v3342_v32  ;;  %v3331_v14 = vmul.f32 %v3319_v27, %v3319_v27  ;;  %v3308_v49 = vmul.f32 %v6576_v13, %v3296_v58  ;;  %v3643_v32 = vsub.f32 %v6548_v23, %v6565_v21 }
 0x4d3   : > { %v3325_v62 = vmul.f32 0.00028344672, %v3313_v35  ;;  %v3188_v3 = vadd.f32 %v3187_v40, %v3186_v30  ;;  %v3288_v39 = vadd.f32 %v3287_v54, %v3286_v52  ;;  %3398 = vperm.xlu0 %4409, %v3376_v18   ;;  %v3644_v35 = vsub.f32 %v6557_v59, %v3319_v27 }
 0x4d4   : > { %v4836_v7 = vpop.eup %4835  ;;  %3663 = vperm.xlu1 %4410, %v3647_v31  }
 0x4d5   : > { %v3337_v46 = vsub.f32 %v3325_v62, %v3331_v14  ;;  %v3302_v53 = vadd.f32 %v3296_v58, %v3188_v3  ;;  %v3289_v41 = vrot.slane %v3288_v39, 1  ;;  %v3446_v2 = vrot.slane %v4836_v7, %v4985_v37 }
 0x4d6   : > { %v3648_v4 = vmul.f32 %v4836_v7, %v3642_v38 }
 0x4d7   : > { %v3343_v19 = vadd.f32 1e-05, %v3337_v46  ;;  %v3320_v0 = vmul.f32 0.00028344672, %v3302_v53  ;;  %v3290_v9 = vadd.f32 %v3289_v41, %v3288_v39  ;;  %3468 = vperm.xlu0 %4409, %v3446_v2  }
 0x4d9   : > { %4839 = vrsqrt.f32 %v3343_v19  ;;  %v3314_v36 = vadd.f32 %v3308_v49, %v3290_v9  ;;  %v3380_v55 = vrot.slane %v3320_v0, %v4985_v37  ;;  %v3332_v10 = vmul.f32 %v3320_v0, %v3320_v0 }
 0x4da   : > { %v3645_v18 = vsub.f32 %v6576_v13, %v3320_v0 }
 0x4db   : > { %v3326_v12 = vmul.f32 0.00028344672, %v3314_v36  ;;  %3402 = vperm.xlu1 %4410, %v3380_v55   ;;  %3672 = vperm.xlu0 %4409, %v3648_v4  }
 0x4dc   : > { %v4838_v51 = vpop.eup %4837 }
 0x4dd   : > { %v3338_v29 = vsub.f32 %v3326_v12, %v3332_v10  ;;  %v3450_v30 = vrot.slane %v4838_v51, %v4985_v37  ;;  %v3649_v5 = vmul.f32 %v4838_v51, %v3643_v32 }
 0x4df   : > { %v3344_v52 = vadd.f32 1e-05, %v3338_v29  ;;  %3472 = vperm.xlu1 %4410, %v3450_v30  }
 0x4e1   : > { %4841 = vrsqrt.f32 %v3344_v52 }
 0x4e3   : > { %v4840_v17 = vpop.eup %4839  ;;  %3681 = vperm.xlu1 %4410, %v3649_v5  }
 0x4e4   : > { %v3454_v15 = vrot.slane %v4840_v17, %v4985_v37  ;;  %v3650_v58 = vmul.f32 %v4840_v17, %v3644_v35 }
 0x4e6   : > { %3476 = vperm.xlu0 %4409, %v3454_v15  }
 0x4ea   : > { %3690 = vperm.xlu0 %4409, %v3650_v58  }
 0x4eb   : > { %v4842_v40 = vpop.eup %4841 }
 0x4ec   : > { %v3458_v54 = vrot.slane %v4842_v40, %v4985_v37  ;;  %v3651_v31 = vmul.f32 %v4842_v40, %v3645_v18 }
 0x4ee   : > { %3480 = vperm.xlu1 %4410, %v3458_v54  }
 0x4f2   : > { %3699 = vperm.xlu1 %4410, %v3651_v31  }
 0x535   : > { %v3383_v23 = vpop.permute.xlu1 %3382 }
 0x536   : > { %v3405_v62 = vsub.f32 %v6373_v45, %v3383_v23  ;;  %v3406_v3 = vsub.f32 %v6385_v33, %v3383_v23  ;;  %v3407_v59 = vsub.f32 %v6391_v48, %v3383_v23  ;;  %v3408_v27 = vsub.f32 %v6400_v1, %v3383_v23 }
 0x53f   : > { %v3387_v21 = vpop.permute.xlu0 %3386 }
 0x540   : > { %v3409_v41 = vsub.f32 %v6416_v25, %v3387_v21  ;;  %v3410_v2 = vsub.f32 %v6420_v24, %v3387_v21  ;;  %v3411_v19 = vsub.f32 %v6366_v42, %v3387_v21  ;;  %v3412_v38 = vsub.f32 %v6377_v57, %v3387_v21 }
 0x543   : > { %v6596_v14 = vpop.permute.xlu1 %3390 }
 0x544   : > { %v3413_v15 = vsub.f32 %v6403_v60, %v6596_v14  ;;  %v3414_v35 = vsub.f32 %v6409_v44, %v6596_v14  ;;  %v3415_v58 = vsub.f32 %v6433_v8, %v6596_v14  ;;  %v3416_v40 = vsub.f32 %v6435_v50, %v6596_v14 }
 0x549   : > { %v3461_v39 = vpop.permute.xlu0 %3460 }
 0x54a   : > { %v3483_v7 = vmul.f32 %v3461_v39, %v3405_v62  ;;  %v3484_v49 = vmul.f32 %v3461_v39, %v3406_v3  ;;  %v3485_v46 = vmul.f32 %v3461_v39, %v3407_v59  ;;  %v3486_v13 = vmul.f32 %v3461_v39, %v3408_v27  ;;  %v6607_v45 = vpop.permute.xlu1 %3394 }
 0x54b   : > { %v3417_v39 = vsub.f32 %v6437_v34, %v6607_v45 }
 0x54c   : > { %v3532_v33 = vrot.slane %v3483_v7, 7  ;;  %v3533_v48 = vrot.slane %v3484_v49, 7  ;;  %v3534_v1 = vrot.slane %v3485_v46, 7  ;;  %v3536_v53 = vrot.slane %v3486_v13, 7 }
 0x54d   : > { %v3655_v9 = vpop.permute.xlu0 %3654  ;;  %v3418_v7 = vsub.f32 %v6442_v20, %v6607_v45  ;;  %v3419_v49 = vsub.f32 %v6455_v43, %v6607_v45  ;;  %v3420_v46 = vsub.f32 %v6459_v63, %v6607_v45 }
 0x54e   : > { %v3535_v36 = vsel %vm3531_vm10, %v3532_v33, %v3534_v1  ;;  %v3537_v55 = vsel %vm3531_vm10, %v3533_v48, %v3536_v53  ;;  %3604 = vst [vmem:[%s6605_s13] sm:$0xfe] %v3532_v33  ;;  %3605 = vst [vmem:[%s6605_s13 + $0x8] sm:$0xfe] %v3533_v48  ;;  %v3660_v25 = vrot.slane %v3655_v9, %v4985_v37 }
 0x54f   : > { %3608 = vst [vmem:[%s6605_s13 + $0x20] sm:$0x1] %v3534_v1  ;;  %3609 = vst [vmem:[%s6605_s13 + $0x28] sm:$0x1] %v3536_v53  ;;  %v3465_v26 = vpop.permute.xlu1 %3464 }
 0x550   : > { %3606 = vst [vmem:[%s6605_s13 + $0x10] sm:$0xff] %v3535_v36  ;;  %3607 = vst [vmem:[%s6605_s13 + $0x18] sm:$0xff] %v3537_v55  ;;  %v3487_v42 = vmul.f32 %v3465_v26, %v3409_v41  ;;  %v3488_v57 = vmul.f32 %v3465_v26, %v3410_v2  ;;  %v3489_v24 = vmul.f32 %v3465_v26, %v3411_v19 }
 0x551   : > { %3710 = vst.msk [vmem:[%s6605_s13] ss:$8 sm:$0x3] %vm6613_vm11, %v3660_v25  ;;  %4029 = vst.msk [vmem:[%s6605_s13 + $0x21] ss:$8 sm:$0x3] %vm6613_vm11, %v3660_v25  ;;  %v3490_v4 = vmul.f32 %v3465_v26, %v3412_v38 }
 0x552   : > { %v3538_v10 = vrot.slane %v3487_v42, 7  ;;  %v3539_v12 = vrot.slane %v3488_v57, 7  ;;  %v3540_v51 = vrot.slane %v3489_v24, 7  ;;  %v6633_v30 = vpop.permute.xlu0 %3398 }
 0x553   : > { %v3542_v29 = vrot.slane %v3490_v4, 7  ;;  %v3664_v52 = vpop.permute.xlu1 %3663  ;;  %v3421_v9 = vsub.f32 %v6461_v11, %v6633_v30  ;;  %v3422_v38 = vsub.f32 %v6466_v22, %v6633_v30  ;;  %v3423_v36 = vsub.f32 %v6477_v16, %v6633_v30 }
 0x554   : > { %v3541_v32 = vsel %vm3531_vm10, %v3538_v10, %v3540_v51  ;;  %3610 = vst [vmem:[%s6605_s13 + $0x30] sm:$0xfe] %v3538_v10  ;;  %3611 = vst [vmem:[%s6605_s13 + $0x38] sm:$0xfe] %v3539_v12  ;;  %v3669_v17 = vrot.slane %v3664_v52, %v4985_v37  ;;  %v3424_v55 = vsub.f32 %v6481_v47, %v6633_v30 }
 0x555   : > { %v3543_v5 = vsel %vm3531_vm10, %v3539_v12, %v3542_v29  ;;  %3614 = vst [vmem:[%s6605_s13 + $0x50] sm:$0x1] %v3540_v51  ;;  %3615 = vst [vmem:[%s6605_s13 + $0x58] sm:$0x1] %v3542_v29 }
 0x556   : > { %3612 = vst [vmem:[%s6605_s13 + $0x40] sm:$0xff] %v3541_v32  ;;  %3613 = vst [vmem:[%s6605_s13 + $0x48] sm:$0xff] %v3543_v5  ;;  %v3469_v54 = vpop.permute.xlu0 %3468 }
 0x557   : > { %4024 = vst.msk [vmem:[%s6605_s13 + $0x30] ss:$8 sm:$0x3] %vm6613_vm11, %v3669_v17  ;;  %4030 = vst.msk [vmem:[%s6605_s13 + $0x51] ss:$8 sm:$0x3] %vm6613_vm11, %v3669_v17  ;;  %v3491_v60 = vmul.f32 %v3469_v54, %v3413_v15  ;;  %v3492_v18 = vmul.f32 %v3469_v54, %v3414_v35  ;;  %v3493_v44 = vmul.f32 %v3469_v54, %v3415_v58 }
 0x558   : > { %v3494_v31 = vmul.f32 %v3469_v54, %v3416_v40 }
 0x559   : > { %v3544_v23 = vrot.slane %v3491_v60, 7  ;;  %v3545_v8 = vrot.slane %v3492_v18, 7  ;;  %v3546_v21 = vrot.slane %v3493_v44, 7 }
 0x55a   : > { %v3548_v50 = vrot.slane %v3494_v31, 7  ;;  %v6658_v14 = vpop.permute.xlu1 %3402  ;;  %v3673_v62 = vpop.permute.xlu0 %3672 }
 0x55b   : > { %v3547_v3 = vsel %vm3531_vm10, %v3544_v23, %v3546_v21  ;;  %3616 = vst [vmem:[%s6605_s13 + $0x60] sm:$0xfe] %v3544_v23  ;;  %3617 = vst [vmem:[%s6605_s13 + $0x68] sm:$0xfe] %v3545_v8  ;;  %v3678_v27 = vrot.slane %v3673_v62, %v4985_v37  ;;  %v3425_v29 = vsub.f32 %v6483_v56, %v6658_v14 }
 0x55c   : > { %v3549_v59 = vsel %vm3531_vm10, %v3545_v8, %v3548_v50  ;;  %3620 = vst [vmem:[%s6605_s13 + $0x80] sm:$0x1] %v3546_v21  ;;  %3621 = vst [vmem:[%s6605_s13 + $0x88] sm:$0x1] %v3548_v50  ;;  %v3426_v30 = vsub.f32 %v6487_v6, %v6658_v14  ;;  %v3427_v52 = vsub.f32 %v6497_v28, %v6658_v14 }
 0x55d   : > { %3618 = vst [vmem:[%s6605_s13 + $0x70] sm:$0xff] %v3547_v3  ;;  %3619 = vst [vmem:[%s6605_s13 + $0x78] sm:$0xff] %v3549_v59  ;;  %v3428_v32 = vsub.f32 %v6501_v61, %v6658_v14 }
 0x55e   : > { %4025 = vst.msk [vmem:[%s6605_s13 + $0x60] ss:$8 sm:$0x3] %vm6613_vm11, %v3678_v27  ;;  %4031 = vst.msk [vmem:[%s6605_s13 + $0x81] ss:$8 sm:$0x3] %vm6613_vm11, %v3678_v27  ;;  %v3473_v34 = vpop.permute.xlu1 %3472 }
 0x55f   : > { %v3495_v20 = vmul.f32 %v3473_v34, %v3417_v39  ;;  %v3496_v13 = vmul.f32 %v3473_v34, %v3418_v7  ;;  %v3497_v33 = vmul.f32 %v3473_v34, %v3419_v49  ;;  %v3498_v43 = vmul.f32 %v3473_v34, %v3420_v46 }
 0x561   : > { %v3550_v48 = vrot.slane %v3495_v20, 7  ;;  %v3551_v63 = vrot.slane %v3496_v13, 7  ;;  %v3552_v45 = vrot.slane %v3497_v33, 7  ;;  %v3554_v1 = vrot.slane %v3498_v43, 7 }
 0x562   : > { %v3682_v53 = vpop.permute.xlu1 %3681 }
 0x563   : > { %v3553_v41 = vsel %vm3531_vm10, %v3550_v48, %v3552_v45  ;;  %v3555_v2 = vsel %vm3531_vm10, %v3551_v63, %v3554_v1  ;;  %3622 = vst [vmem:[%s6605_s13 + $0x90] sm:$0xfe] %v3550_v48  ;;  %3623 = vst [vmem:[%s6605_s13 + $0x98] sm:$0xfe] %v3551_v63  ;;  %v3687_v19 = vrot.slane %v3682_v53, %v4985_v37 }
 0x564   : > { %3626 = vst [vmem:[%s6605_s13 + $0xb0] sm:$0x1] %v3552_v45  ;;  %3627 = vst [vmem:[%s6605_s13 + $0xb8] sm:$0x1] %v3554_v1 }
 0x565   : > { %3624 = vst [vmem:[%s6605_s13 + $0xa0] sm:$0xff] %v3553_v41  ;;  %3625 = vst [vmem:[%s6605_s13 + $0xa8] sm:$0xff] %v3555_v2  ;;  %v3477_v11 = vpop.permute.xlu0 %3476 }
 0x566   : > { %4026 = vst.msk [vmem:[%s6605_s13 + $0x90] ss:$8 sm:$0x3] %vm6613_vm11, %v3687_v19  ;;  %4032 = vst.msk [vmem:[%s6605_s13 + $0xb1] ss:$8 sm:$0x3] %vm6613_vm11, %v3687_v19  ;;  %v3499_v22 = vmul.f32 %v3477_v11, %v3421_v9  ;;  %v3500_v25 = vmul.f32 %v3477_v11, %v3422_v38  ;;  %v3501_v16 = vmul.f32 %v3477_v11, %v3423_v36 }
 0x567   : > { %v3502_v26 = vmul.f32 %v3477_v11, %v3424_v55 }
 0x568   : > { %v3556_v47 = vrot.slane %v3499_v22, 7  ;;  %v3557_v42 = vrot.slane %v3500_v25, 7  ;;  %v3558_v57 = vrot.slane %v3501_v16, 7 }
 0x569   : > { %v3560_v24 = vrot.slane %v3502_v26, 7  ;;  %v3691_v4 = vpop.permute.xlu0 %3690 }
 0x56a   : > { %v3559_v10 = vsel %vm3531_vm10, %v3556_v47, %v3558_v57  ;;  %3628 = vst [vmem:[%s6605_s13 + $0xc0] sm:$0xfe] %v3556_v47  ;;  %3629 = vst [vmem:[%s6605_s13 + $0xc8] sm:$0xfe] %v3557_v42  ;;  %v3696_v51 = vrot.slane %v3691_v4, %v4985_v37 }
 0x56b   : > { %v3561_v12 = vsel %vm3531_vm10, %v3557_v42, %v3560_v24  ;;  %3632 = vst [vmem:[%s6605_s13 + $0xe0] sm:$0x1] %v3558_v57  ;;  %3633 = vst [vmem:[%s6605_s13 + $0xe8] sm:$0x1] %v3560_v24 }
 0x56c   : > { %3630 = vst [vmem:[%s6605_s13 + $0xd0] sm:$0xff] %v3559_v10  ;;  %3631 = vst [vmem:[%s6605_s13 + $0xd8] sm:$0xff] %v3561_v12 }
 0x56d   : > { %4027 = vst.msk [vmem:[%s6605_s13 + $0xc0] ss:$8 sm:$0x3] %vm6613_vm11, %v3696_v51  ;;  %4033 = vst.msk [vmem:[%s6605_s13 + $0xe1] ss:$8 sm:$0x3] %vm6613_vm11, %v3696_v51  ;;  %v3481_v56 = vpop.permute.xlu1 %3480 }
 0x56e   : > { %v3503_v5 = vmul.f32 %v3481_v56, %v3425_v29  ;;  %v3504_v6 = vmul.f32 %v3481_v56, %v3426_v30  ;;  %v3505_v17 = vmul.f32 %v3481_v56, %v3427_v52  ;;  %v3506_v28 = vmul.f32 %v3481_v56, %v3428_v32 }
 0x570   : > { %v3562_v15 = vrot.slane %v3503_v5, 7  ;;  %v3563_v61 = vrot.slane %v3504_v6, 7  ;;  %v3564_v35 = vrot.slane %v3505_v17, 7  ;;  %v3566_v58 = vrot.slane %v3506_v28, 7 }
 0x571   : > { %v3700_v40 = vpop.permute.xlu1 %3699 }
 0x572   : > { %v3565_v54 = vsel %vm3531_vm10, %v3562_v15, %v3564_v35  ;;  %v3567_v60 = vsel %vm3531_vm10, %v3563_v61, %v3566_v58  ;;  %3634 = vst [vmem:[%s6605_s13 + $0xf0] sm:$0xfe] %v3562_v15  ;;  %3635 = vst [vmem:[%s6605_s13 + $0xf8] sm:$0xfe] %v3563_v61  ;;  %v3705_v18 = vrot.slane %v3700_v40, %v4985_v37 }
 0x573   : > { %3638 = vst [vmem:[%s6605_s13 + $0x110] sm:$0x1] %v3564_v35  ;;  %3639 = vst [vmem:[%s6605_s13 + $0x118] sm:$0x1] %v3566_v58 }
 0x574   : > { %3636 = vst [vmem:[%s6605_s13 + $0x100] sm:$0xff] %v3565_v54  ;;  %3637 = vst [vmem:[%s6605_s13 + $0x108] sm:$0xff] %v3567_v60 }
 0x575   : > { %4028 = vst.msk [vmem:[%s6605_s13 + $0xf0] ss:$8 sm:$0x3] %vm6613_vm11, %v3705_v18  ;;  %4034 = vst.msk [vmem:[%s6605_s13 + $0x111] ss:$8 sm:$0x3] %vm6613_vm11, %v3705_v18 }
 0x576 PF: > { %s17_s24 = sadd.s32 1, %s4861_s24  }
 0x577   : > { %p14_p4 = scmp.ge.s32.totalorder %s17_s24, 4  }
 0x579   :  { %16 = sbr.rel (!%p14_p4) target bundleno = 1 (0x1), region = 97 }

</bundles_post_ra>
